<compile_context>
chip_gen: v7x
topology: tpu7x:2x2x1
jax: 0.10.0
libtpu: 0.0.40
codegen_flags: <defaults>
</compile_context>

<pallas_src>
import math

import jax
import jax.numpy as jnp
from jax.experimental import pallas as pl
from jax.experimental.pallas import tpu as pltpu

# Hyper-parameters (TOTAL_INPUT_DIM / MODEL_DIM / ... are unspecified
# placeholders in the reference; small deterministic values are used).
INPUT_DIM = 32
MODEL_DIM = 32
NUM_LAYERS = 2
NHEAD = 4            # seq_len==1 makes attention == value path; nhead is moot
FF_DIM = 2048        # nn.TransformerEncoderLayer default dim_feedforward
EPS = 1e-5           # nn.LayerNorm default eps

D_PAD = 128          # model dim padded to full lane width
HEAD_PAD = 128       # output head padded to full lane width (real column = 0)


def _layer_norm(h, gamma, beta):
    # LayerNorm over the REAL feature dim (MODEL_DIM).  Padded lanes of h are
    # guaranteed zero, so sums over all D_PAD lanes equal sums over the real
    # features; divide by MODEL_DIM and use E[x^2] - E[x]^2 for the variance.
    # gamma/beta are zero on padded lanes, preserving the zero-lane invariant.
    inv_d = 1.0 / MODEL_DIM
    mean = jnp.sum(h, axis=-1, keepdims=True) * inv_d
    var = jnp.maximum(
        jnp.sum(h * h, axis=-1, keepdims=True) * inv_d - mean * mean, 0.0)
    return (h - mean) * jax.lax.rsqrt(var + EPS) * gamma + beta


def combined_model_kernel(x_ref, we_ref, be_ref, wvo_ref, bvo_ref,
                          g1_ref, b1_ref, w1_ref, bf1_ref,
                          w2_ref, bf2_ref, g2_ref, b2_ref,
                          wfc_ref, bfc_ref, out_ref):
    # Embedding (positional-encoding row 0 already folded into the bias).
    h = jnp.dot(x_ref[...].astype(jnp.bfloat16), we_ref[...],
                preferred_element_type=jnp.float32) + be_ref[...]

    for l in range(NUM_LAYERS):
        # Fused self-attention (exact for seq_len == 1, eval-mode dropout).
        attn = jnp.dot(h.astype(jnp.bfloat16), wvo_ref[l],
                       preferred_element_type=jnp.float32) + bvo_ref[l]
        h = _layer_norm(h + attn, g1_ref[l], b1_ref[l])

        # Feed-forward: Linear -> ReLU -> Linear (dropouts are identity).
        ff = jnp.dot(h.astype(jnp.bfloat16), w1_ref[l],
                     preferred_element_type=jnp.float32) + bf1_ref[l]
        ff = jnp.maximum(ff, 0.0)
        ff = jnp.dot(ff.astype(jnp.bfloat16), w2_ref[l],
                     preferred_element_type=jnp.float32) + bf2_ref[l]
        h = _layer_norm(h + ff, g2_ref[l], b2_ref[l])

    # Output head padded to 128 lane-dense columns (real result in column 0).
    out_ref[...] = jnp.dot(h.astype(jnp.bfloat16), wfc_ref[...],
                           preferred_element_type=jnp.float32) + bfc_ref[...]


_PARAM_ORDER = ("we", "be", "wvo", "bvo", "g1", "b1", "w1", "bf1",
                "w2", "bf2", "g2", "b2", "wfc", "bfc")


def combined_model_forward(x, prepared):
    B = x.shape[0]
    # Batch tile: big enough to amortize the VMEM-resident weights, small
    # enough that the (BM, FF_DIM) f32 ReLU intermediate (2 MiB at BM=256)
    # stays comfortably inside v7x's 64 MiB VMEM.
    BM = 256 if B >= 256 else ((B + 7) // 8) * 8
    n_tiles = pl.cdiv(B, BM)
    B_pad = n_tiles * BM
    if B_pad != B:
        x = jnp.pad(x, ((0, B_pad - B), (0, 0)))

    weights = [prepared[k] for k in _PARAM_ORDER]

    def resident_spec(a):
        nd = a.ndim
        return pl.BlockSpec(a.shape, lambda i, _nd=nd: (0,) * _nd)

    in_specs = ([pl.BlockSpec((BM, INPUT_DIM), lambda i: (i, 0))]
                + [resident_spec(a) for a in weights])
    out_specs = pl.BlockSpec((BM, HEAD_PAD), lambda i: (i, 0))

    weight_bytes = sum(int(a.size) * a.dtype.itemsize for a in weights)
    cost = pl.CostEstimate(
        flops=2 * B_pad * (INPUT_DIM * D_PAD
                           + NUM_LAYERS * (D_PAD * D_PAD + 2 * D_PAD * FF_DIM)
                           + D_PAD * HEAD_PAD),
        transcendentals=2 * NUM_LAYERS * B_pad,
        bytes_accessed=weight_bytes + int(x.size) * 4 + B_pad * HEAD_PAD * 4)

    out = pl.pallas_call(
        combined_model_kernel,
        out_shape=jax.ShapeDtypeStruct((B_pad, HEAD_PAD), jnp.float32),
        grid=(n_tiles,),
        in_specs=in_specs,
        out_specs=out_specs,
        compiler_params=pltpu.CompilerParams(
            dimension_semantics=("parallel",),
            vmem_limit_bytes=32 * 1024 * 1024),
        cost_estimate=cost,
    )(x, *weights)
    return out[:B, 0]  # == .squeeze(-1) of the (B, 1) head output


def _linear_init(key, fan_in, shape):
    # PyTorch nn.Linear default init: U(-1/sqrt(fan_in), 1/sqrt(fan_in)).
    bound = 1.0 / math.sqrt(fan_in)
    return jax.random.uniform(key, shape, jnp.float32, -bound, bound)


def init_params(key):
    D, In, L, F = MODEL_DIM, INPUT_DIM, NUM_LAYERS, FF_DIM
    ks = list(jax.random.split(key, 12))
    return {
        "we": _linear_init(ks[0], In, (In, D)),       # embedding W^T
        "be": _linear_init(ks[1], In, (1, D)),
        # attention value / output projections, stacked over layers (W^T)
        "wv": _linear_init(ks[2], D, (L, D, D)),
        "bv": _linear_init(ks[3], D, (L, 1, D)),
        "wo": _linear_init(ks[4], D, (L, D, D)),
        "bo": _linear_init(ks[5], D, (L, 1, D)),
        # layer norms
        "g1": jnp.ones((L, 1, D), jnp.float32),
        "b1": jnp.zeros((L, 1, D), jnp.float32),
        "g2": jnp.ones((L, 1, D), jnp.float32),
        "b2": jnp.zeros((L, 1, D), jnp.float32),
        # feed-forward
        "w1": _linear_init(ks[6], D, (L, D, F)),
        "bf1": _linear_init(ks[7], D, (L, 1, F)),
        "w2": _linear_init(ks[8], F, (L, F, D)),
        "bf2": _linear_init(ks[9], F, (L, 1, D)),
        # output head
        "wfc": _linear_init(ks[10], D, (D, 1)),
        "bfc": _linear_init(ks[11], D, (1, 1)),
    }


def _pad_to(a, shape):
    return jnp.pad(a, [(0, t - s) for s, t in zip(a.shape, shape)])


def prepare_params(p):
    """Offline fusions, zero-padding to lane width, and bf16 casts."""
    D, Dp, In, L, F = MODEL_DIM, D_PAD, INPUT_DIM, NUM_LAYERS, FF_DIM

    # PositionalEncoding row 0: sin(0)=0 on even, cos(0)=1 on odd indices;
    # fold it into the embedding bias (dropout is identity in eval mode).
    pe_row = jnp.where(jnp.arange(D) % 2 == 0, 0.0, 1.0).astype(jnp.float32)
    be_eff = p["be"] + pe_row[None, :]

    # Fuse the seq_len==1 attention (value proj -> output proj) offline.
    wvo = jnp.einsum("lij,ljk->lik", p["wv"], p["wo"])
    bvo = jnp.einsum("lxj,ljk->lxk", p["bv"], p["wo"]) + p["bo"]

    return {
        "we":  _pad_to(p["we"], (In, Dp)).astype(jnp.bfloat16),
        "be":  _pad_to(be_eff, (1, Dp)),
        "wvo": _pad_to(wvo, (L, Dp, Dp)).astype(jnp.bfloat16),
        "bvo": _pad_to(bvo, (L, 1, Dp)),
        "g1":  _pad_to(p["g1"], (L, 1, Dp)),
        "b1":  _pad_to(p["b1"], (L, 1, Dp)),
        "w1":  _pad_to(p["w1"], (L, Dp, F)).astype(jnp.bfloat16),
        "bf1": p["bf1"],
        "w2":  _pad_to(p["w2"], (L, F, Dp)).astype(jnp.bfloat16),
        "bf2": _pad_to(p["bf2"], (L, 1, Dp)),
        "g2":  _pad_to(p["g2"], (L, 1, Dp)),
        "b2":  _pad_to(p["b2"], (L, 1, Dp)),
        "wfc": _pad_to(p["wfc"], (Dp, HEAD_PAD)).astype(jnp.bfloat16),
        "bfc": _pad_to(p["bfc"], (1, HEAD_PAD)),
    }


if __name__ == "__main__":
    key = jax.random.PRNGKey(0)
    k_x, k_p = jax.random.split(key)

    B = 8
    x = jax.random.normal(k_x, (B, INPUT_DIM), jnp.float32)
    prepared = prepare_params(init_params(k_p))

    out = combined_model_forward(x, prepared)
    jax.block_until_ready(out)
    assert out.shape == (B,) and out.dtype == jnp.float32
    print("KERNEL_OK")
</pallas_src>

<mosaic_0001>
module attributes {stable_mosaic.version = 11 : i64} {
  func.func @combined_model_kernel(%arg0: i32, %arg1: memref<8x32xf32, #tpu.memory_space<vmem>>, %arg2: memref<32x128xbf16, #tpu.memory_space<vmem>>, %arg3: memref<1x128xf32, #tpu.memory_space<vmem>>, %arg4: memref<2x128x128xbf16, #tpu.memory_space<vmem>>, %arg5: memref<2x1x128xf32, #tpu.memory_space<vmem>>, %arg6: memref<2x1x128xf32, #tpu.memory_space<vmem>>, %arg7: memref<2x1x128xf32, #tpu.memory_space<vmem>>, %arg8: memref<2x128x2048xbf16, #tpu.memory_space<vmem>>, %arg9: memref<2x1x2048xf32, #tpu.memory_space<vmem>>, %arg10: memref<2x2048x128xbf16, #tpu.memory_space<vmem>>, %arg11: memref<2x1x128xf32, #tpu.memory_space<vmem>>, %arg12: memref<2x1x128xf32, #tpu.memory_space<vmem>>, %arg13: memref<2x1x128xf32, #tpu.memory_space<vmem>>, %arg14: memref<128x128xbf16, #tpu.memory_space<vmem>>, %arg15: memref<1x128xf32, #tpu.memory_space<vmem>>, %arg16: memref<8x128xf32, #tpu.memory_space<vmem>>) attributes {dimension_semantics = [#tpu.dimension_semantics<parallel>], iteration_bounds = array<i64: 1>, scalar_prefetch = 0 : i64, scratch_operands = 0 : i64, tpu.core_type = #tpu.core_type<tc>, window_params = [{transform_indices = @transform_0, window_bounds = array<i64: 8, 32>}, {pipeline_mode = #tpu.pipeline_mode<synchronous>, transform_indices = @transform_1, window_bounds = array<i64: 32, 128>}, {pipeline_mode = #tpu.pipeline_mode<synchronous>, transform_indices = @transform_2, window_bounds = array<i64: 1, 128>}, {pipeline_mode = #tpu.pipeline_mode<synchronous>, transform_indices = @transform_3, window_bounds = array<i64: 2, 128, 128>}, {pipeline_mode = #tpu.pipeline_mode<synchronous>, transform_indices = @transform_4, window_bounds = array<i64: 2, 1, 128>}, {pipeline_mode = #tpu.pipeline_mode<synchronous>, transform_indices = @transform_5, window_bounds = array<i64: 2, 1, 128>}, {pipeline_mode = #tpu.pipeline_mode<synchronous>, transform_indices = @transform_6, window_bounds = array<i64: 2, 1, 128>}, {pipeline_mode = #tpu.pipeline_mode<synchronous>, transform_indices = @transform_7, window_bounds = array<i64: 2, 128, 2048>}, {pipeline_mode = #tpu.pipeline_mode<synchronous>, transform_indices = @transform_8, window_bounds = array<i64: 2, 1, 2048>}, {pipeline_mode = #tpu.pipeline_mode<synchronous>, transform_indices = @transform_9, window_bounds = array<i64: 2, 2048, 128>}, {pipeline_mode = #tpu.pipeline_mode<synchronous>, transform_indices = @transform_10, window_bounds = array<i64: 2, 1, 128>}, {pipeline_mode = #tpu.pipeline_mode<synchronous>, transform_indices = @transform_11, window_bounds = array<i64: 2, 1, 128>}, {pipeline_mode = #tpu.pipeline_mode<synchronous>, transform_indices = @transform_12, window_bounds = array<i64: 2, 1, 128>}, {pipeline_mode = #tpu.pipeline_mode<synchronous>, transform_indices = @transform_13, window_bounds = array<i64: 128, 128>}, {pipeline_mode = #tpu.pipeline_mode<synchronous>, transform_indices = @transform_14, window_bounds = array<i64: 1, 128>}, {transform_indices = @transform_15, window_bounds = array<i64: 8, 128>}]} {
    %c0 = arith.constant 0 : index
    %c0_0 = arith.constant 0 : index
    %0 = vector.load %arg1[%c0, %c0_0] : memref<8x32xf32, #tpu.memory_space<vmem>>, vector<8x32xf32>
    %1 = arith.truncf %0 : vector<8x32xf32> to vector<8x32xbf16>
    %c0_1 = arith.constant 0 : index
    %c0_2 = arith.constant 0 : index
    %2 = vector.load %arg2[%c0_1, %c0_2] : memref<32x128xbf16, #tpu.memory_space<vmem>>, vector<32x128xbf16>
    %cst = arith.constant dense<0.000000e+00> : vector<8x128xf32>
    %3 = tpu.matmul %1, %2, %cst {dimension_numbers = #tpu.dot_dimension_numbers<[1], [0], [0], [1], [0, 0, 1, 1], [], []>} : vector<8x32xbf16>, vector<32x128xbf16>, vector<8x128xf32> -> vector<8x128xf32>
    %c0_3 = arith.constant 0 : index
    %c0_4 = arith.constant 0 : index
    %4 = vector.load %arg3[%c0_3, %c0_4] : memref<1x128xf32, #tpu.memory_space<vmem>>, vector<1x128xf32>
    %5 = vector.broadcast %4 : vector<1x128xf32> to vector<8x128xf32>
    %6 = arith.addf %3, %5 : vector<8x128xf32>
    %7 = arith.truncf %6 : vector<8x128xf32> to vector<8x128xbf16>
    %c0_5 = arith.constant 0 : index
    %c0_6 = arith.constant 0 : index
    %c0_7 = arith.constant 0 : index
    %8 = vector.load %arg4[%c0_5, %c0_6, %c0_7] : memref<2x128x128xbf16, #tpu.memory_space<vmem>>, vector<1x128x128xbf16>
    %9 = vector.shape_cast %8 : vector<1x128x128xbf16> to vector<128x128xbf16>
    %cst_8 = arith.constant dense<0.000000e+00> : vector<8x128xf32>
    %10 = tpu.matmul %7, %9, %cst_8 {dimension_numbers = #tpu.dot_dimension_numbers<[1], [0], [0], [1], [0, 0, 1, 1], [], []>} : vector<8x128xbf16>, vector<128x128xbf16>, vector<8x128xf32> -> vector<8x128xf32>
    %c0_9 = arith.constant 0 : index
    %c0_10 = arith.constant 0 : index
    %c0_11 = arith.constant 0 : index
    %11 = vector.load %arg5[%c0_9, %c0_10, %c0_11] : memref<2x1x128xf32, #tpu.memory_space<vmem>>, vector<1x1x128xf32>
    %12 = vector.shape_cast %11 : vector<1x1x128xf32> to vector<1x128xf32>
    %13 = vector.broadcast %12 : vector<1x128xf32> to vector<8x128xf32>
    %14 = arith.addf %10, %13 : vector<8x128xf32>
    %15 = arith.addf %6, %14 : vector<8x128xf32>
    %c0_12 = arith.constant 0 : index
    %c0_13 = arith.constant 0 : index
    %c0_14 = arith.constant 0 : index
    %16 = vector.load %arg6[%c0_12, %c0_13, %c0_14] : memref<2x1x128xf32, #tpu.memory_space<vmem>>, vector<1x1x128xf32>
    %17 = vector.shape_cast %16 : vector<1x1x128xf32> to vector<1x128xf32>
    %c0_15 = arith.constant 0 : index
    %c0_16 = arith.constant 0 : index
    %c0_17 = arith.constant 0 : index
    %18 = vector.load %arg7[%c0_15, %c0_16, %c0_17] : memref<2x1x128xf32, #tpu.memory_space<vmem>>, vector<1x1x128xf32>
    %19 = vector.shape_cast %18 : vector<1x1x128xf32> to vector<1x128xf32>
    %cst_18 = arith.constant dense<0.000000e+00> : vector<8xf32>
    %20 = vector.multi_reduction <add>, %15, %cst_18 [1] : vector<8x128xf32> to vector<8xf32>
    %21 = vector.shape_cast %20 : vector<8xf32> to vector<8x1xf32>
    %cst_19 = arith.constant 3.125000e-02 : f32
    %22 = vector.broadcast %cst_19 : f32 to vector<8x1xf32>
    %23 = arith.mulf %21, %22 : vector<8x1xf32>
    %24 = arith.mulf %15, %15 : vector<8x128xf32>
    %cst_20 = arith.constant dense<0.000000e+00> : vector<8xf32>
    %25 = vector.multi_reduction <add>, %24, %cst_20 [1] : vector<8x128xf32> to vector<8xf32>
    %26 = vector.shape_cast %25 : vector<8xf32> to vector<8x1xf32>
    %cst_21 = arith.constant 3.125000e-02 : f32
    %27 = vector.broadcast %cst_21 : f32 to vector<8x1xf32>
    %28 = arith.mulf %26, %27 : vector<8x1xf32>
    %29 = arith.mulf %23, %23 : vector<8x1xf32>
    %30 = arith.subf %28, %29 : vector<8x1xf32>
    %cst_22 = arith.constant 0.000000e+00 : f32
    %31 = vector.broadcast %cst_22 : f32 to vector<8x1xf32>
    %32 = arith.maximumf %30, %31 : vector<8x1xf32>
    %33 = vector.broadcast %23 : vector<8x1xf32> to vector<8x128xf32>
    %34 = arith.subf %15, %33 : vector<8x128xf32>
    %cst_23 = arith.constant 9.99999974E-6 : f32
    %35 = vector.broadcast %cst_23 : f32 to vector<8x1xf32>
    %36 = arith.addf %32, %35 : vector<8x1xf32>
    %37 = math.rsqrt %36 : vector<8x1xf32>
    %38 = vector.broadcast %37 : vector<8x1xf32> to vector<8x128xf32>
    %39 = arith.mulf %34, %38 : vector<8x128xf32>
    %40 = vector.broadcast %17 : vector<1x128xf32> to vector<8x128xf32>
    %41 = arith.mulf %39, %40 : vector<8x128xf32>
    %42 = vector.broadcast %19 : vector<1x128xf32> to vector<8x128xf32>
    %43 = arith.addf %41, %42 : vector<8x128xf32>
    %44 = arith.truncf %43 : vector<8x128xf32> to vector<8x128xbf16>
    %c0_24 = arith.constant 0 : index
    %c0_25 = arith.constant 0 : index
    %c0_26 = arith.constant 0 : index
    %45 = vector.load %arg8[%c0_24, %c0_25, %c0_26] : memref<2x128x2048xbf16, #tpu.memory_space<vmem>>, vector<1x128x2048xbf16>
    %46 = vector.shape_cast %45 : vector<1x128x2048xbf16> to vector<128x2048xbf16>
    %cst_27 = arith.constant dense<0.000000e+00> : vector<8x2048xf32>
    %47 = tpu.matmul %44, %46, %cst_27 {dimension_numbers = #tpu.dot_dimension_numbers<[1], [0], [0], [1], [0, 0, 1, 1], [], []>} : vector<8x128xbf16>, vector<128x2048xbf16>, vector<8x2048xf32> -> vector<8x2048xf32>
    %c0_28 = arith.constant 0 : index
    %c0_29 = arith.constant 0 : index
    %c0_30 = arith.constant 0 : index
    %48 = vector.load %arg9[%c0_28, %c0_29, %c0_30] : memref<2x1x2048xf32, #tpu.memory_space<vmem>>, vector<1x1x2048xf32>
    %49 = vector.shape_cast %48 : vector<1x1x2048xf32> to vector<1x2048xf32>
    %50 = vector.broadcast %49 : vector<1x2048xf32> to vector<8x2048xf32>
    %51 = arith.addf %47, %50 : vector<8x2048xf32>
    %cst_31 = arith.constant 0.000000e+00 : f32
    %52 = vector.broadcast %cst_31 : f32 to vector<8x2048xf32>
    %53 = arith.maximumf %51, %52 : vector<8x2048xf32>
    %54 = arith.truncf %53 : vector<8x2048xf32> to vector<8x2048xbf16>
    %c0_32 = arith.constant 0 : index
    %c0_33 = arith.constant 0 : index
    %c0_34 = arith.constant 0 : index
    %55 = vector.load %arg10[%c0_32, %c0_33, %c0_34] : memref<2x2048x128xbf16, #tpu.memory_space<vmem>>, vector<1x2048x128xbf16>
    %56 = vector.shape_cast %55 : vector<1x2048x128xbf16> to vector<2048x128xbf16>
    %cst_35 = arith.constant dense<0.000000e+00> : vector<8x128xf32>
    %57 = tpu.matmul %54, %56, %cst_35 {dimension_numbers = #tpu.dot_dimension_numbers<[1], [0], [0], [1], [0, 0, 1, 1], [], []>} : vector<8x2048xbf16>, vector<2048x128xbf16>, vector<8x128xf32> -> vector<8x128xf32>
    %c0_36 = arith.constant 0 : index
    %c0_37 = arith.constant 0 : index
    %c0_38 = arith.constant 0 : index
    %58 = vector.load %arg11[%c0_36, %c0_37, %c0_38] : memref<2x1x128xf32, #tpu.memory_space<vmem>>, vector<1x1x128xf32>
    %59 = vector.shape_cast %58 : vector<1x1x128xf32> to vector<1x128xf32>
    %60 = vector.broadcast %59 : vector<1x128xf32> to vector<8x128xf32>
    %61 = arith.addf %57, %60 : vector<8x128xf32>
    %62 = arith.addf %43, %61 : vector<8x128xf32>
    %c0_39 = arith.constant 0 : index
    %c0_40 = arith.constant 0 : index
    %c0_41 = arith.constant 0 : index
    %63 = vector.load %arg12[%c0_39, %c0_40, %c0_41] : memref<2x1x128xf32, #tpu.memory_space<vmem>>, vector<1x1x128xf32>
    %64 = vector.shape_cast %63 : vector<1x1x128xf32> to vector<1x128xf32>
    %c0_42 = arith.constant 0 : index
    %c0_43 = arith.constant 0 : index
    %c0_44 = arith.constant 0 : index
    %65 = vector.load %arg13[%c0_42, %c0_43, %c0_44] : memref<2x1x128xf32, #tpu.memory_space<vmem>>, vector<1x1x128xf32>
    %66 = vector.shape_cast %65 : vector<1x1x128xf32> to vector<1x128xf32>
    %cst_45 = arith.constant dense<0.000000e+00> : vector<8xf32>
    %67 = vector.multi_reduction <add>, %62, %cst_45 [1] : vector<8x128xf32> to vector<8xf32>
    %68 = vector.shape_cast %67 : vector<8xf32> to vector<8x1xf32>
    %cst_46 = arith.constant 3.125000e-02 : f32
    %69 = vector.broadcast %cst_46 : f32 to vector<8x1xf32>
    %70 = arith.mulf %68, %69 : vector<8x1xf32>
    %71 = arith.mulf %62, %62 : vector<8x128xf32>
    %cst_47 = arith.constant dense<0.000000e+00> : vector<8xf32>
    %72 = vector.multi_reduction <add>, %71, %cst_47 [1] : vector<8x128xf32> to vector<8xf32>
    %73 = vector.shape_cast %72 : vector<8xf32> to vector<8x1xf32>
    %cst_48 = arith.constant 3.125000e-02 : f32
    %74 = vector.broadcast %cst_48 : f32 to vector<8x1xf32>
    %75 = arith.mulf %73, %74 : vector<8x1xf32>
    %76 = arith.mulf %70, %70 : vector<8x1xf32>
    %77 = arith.subf %75, %76 : vector<8x1xf32>
    %cst_49 = arith.constant 0.000000e+00 : f32
    %78 = vector.broadcast %cst_49 : f32 to vector<8x1xf32>
    %79 = arith.maximumf %77, %78 : vector<8x1xf32>
    %80 = vector.broadcast %70 : vector<8x1xf32> to vector<8x128xf32>
    %81 = arith.subf %62, %80 : vector<8x128xf32>
    %cst_50 = arith.constant 9.99999974E-6 : f32
    %82 = vector.broadcast %cst_50 : f32 to vector<8x1xf32>
    %83 = arith.addf %79, %82 : vector<8x1xf32>
    %84 = math.rsqrt %83 : vector<8x1xf32>
    %85 = vector.broadcast %84 : vector<8x1xf32> to vector<8x128xf32>
    %86 = arith.mulf %81, %85 : vector<8x128xf32>
    %87 = vector.broadcast %64 : vector<1x128xf32> to vector<8x128xf32>
    %88 = arith.mulf %86, %87 : vector<8x128xf32>
    %89 = vector.broadcast %66 : vector<1x128xf32> to vector<8x128xf32>
    %90 = arith.addf %88, %89 : vector<8x128xf32>
    %91 = arith.truncf %90 : vector<8x128xf32> to vector<8x128xbf16>
    %c1 = arith.constant 1 : index
    %c0_51 = arith.constant 0 : index
    %c0_52 = arith.constant 0 : index
    %92 = vector.load %arg4[%c1, %c0_51, %c0_52] : memref<2x128x128xbf16, #tpu.memory_space<vmem>>, vector<1x128x128xbf16>
    %93 = vector.shape_cast %92 : vector<1x128x128xbf16> to vector<128x128xbf16>
    %cst_53 = arith.constant dense<0.000000e+00> : vector<8x128xf32>
    %94 = tpu.matmul %91, %93, %cst_53 {dimension_numbers = #tpu.dot_dimension_numbers<[1], [0], [0], [1], [0, 0, 1, 1], [], []>} : vector<8x128xbf16>, vector<128x128xbf16>, vector<8x128xf32> -> vector<8x128xf32>
    %c1_54 = arith.constant 1 : index
    %c0_55 = arith.constant 0 : index
    %c0_56 = arith.constant 0 : index
    %95 = vector.load %arg5[%c1_54, %c0_55, %c0_56] : memref<2x1x128xf32, #tpu.memory_space<vmem>>, vector<1x1x128xf32>
    %96 = vector.shape_cast %95 : vector<1x1x128xf32> to vector<1x128xf32>
    %97 = vector.broadcast %96 : vector<1x128xf32> to vector<8x128xf32>
    %98 = arith.addf %94, %97 : vector<8x128xf32>
    %99 = arith.addf %90, %98 : vector<8x128xf32>
    %c1_57 = arith.constant 1 : index
    %c0_58 = arith.constant 0 : index
    %c0_59 = arith.constant 0 : index
    %100 = vector.load %arg6[%c1_57, %c0_58, %c0_59] : memref<2x1x128xf32, #tpu.memory_space<vmem>>, vector<1x1x128xf32>
    %101 = vector.shape_cast %100 : vector<1x1x128xf32> to vector<1x128xf32>
    %c1_60 = arith.constant 1 : index
    %c0_61 = arith.constant 0 : index
    %c0_62 = arith.constant 0 : index
    %102 = vector.load %arg7[%c1_60, %c0_61, %c0_62] : memref<2x1x128xf32, #tpu.memory_space<vmem>>, vector<1x1x128xf32>
    %103 = vector.shape_cast %102 : vector<1x1x128xf32> to vector<1x128xf32>
    %cst_63 = arith.constant dense<0.000000e+00> : vector<8xf32>
    %104 = vector.multi_reduction <add>, %99, %cst_63 [1] : vector<8x128xf32> to vector<8xf32>
    %105 = vector.shape_cast %104 : vector<8xf32> to vector<8x1xf32>
    %cst_64 = arith.constant 3.125000e-02 : f32
    %106 = vector.broadcast %cst_64 : f32 to vector<8x1xf32>
    %107 = arith.mulf %105, %106 : vector<8x1xf32>
    %108 = arith.mulf %99, %99 : vector<8x128xf32>
    %cst_65 = arith.constant dense<0.000000e+00> : vector<8xf32>
    %109 = vector.multi_reduction <add>, %108, %cst_65 [1] : vector<8x128xf32> to vector<8xf32>
    %110 = vector.shape_cast %109 : vector<8xf32> to vector<8x1xf32>
    %cst_66 = arith.constant 3.125000e-02 : f32
    %111 = vector.broadcast %cst_66 : f32 to vector<8x1xf32>
    %112 = arith.mulf %110, %111 : vector<8x1xf32>
    %113 = arith.mulf %107, %107 : vector<8x1xf32>
    %114 = arith.subf %112, %113 : vector<8x1xf32>
    %cst_67 = arith.constant 0.000000e+00 : f32
    %115 = vector.broadcast %cst_67 : f32 to vector<8x1xf32>
    %116 = arith.maximumf %114, %115 : vector<8x1xf32>
    %117 = vector.broadcast %107 : vector<8x1xf32> to vector<8x128xf32>
    %118 = arith.subf %99, %117 : vector<8x128xf32>
    %cst_68 = arith.constant 9.99999974E-6 : f32
    %119 = vector.broadcast %cst_68 : f32 to vector<8x1xf32>
    %120 = arith.addf %116, %119 : vector<8x1xf32>
    %121 = math.rsqrt %120 : vector<8x1xf32>
    %122 = vector.broadcast %121 : vector<8x1xf32> to vector<8x128xf32>
    %123 = arith.mulf %118, %122 : vector<8x128xf32>
    %124 = vector.broadcast %101 : vector<1x128xf32> to vector<8x128xf32>
    %125 = arith.mulf %123, %124 : vector<8x128xf32>
    %126 = vector.broadcast %103 : vector<1x128xf32> to vector<8x128xf32>
    %127 = arith.addf %125, %126 : vector<8x128xf32>
    %128 = arith.truncf %127 : vector<8x128xf32> to vector<8x128xbf16>
    %c1_69 = arith.constant 1 : index
    %c0_70 = arith.constant 0 : index
    %c0_71 = arith.constant 0 : index
    %129 = vector.load %arg8[%c1_69, %c0_70, %c0_71] : memref<2x128x2048xbf16, #tpu.memory_space<vmem>>, vector<1x128x2048xbf16>
    %130 = vector.shape_cast %129 : vector<1x128x2048xbf16> to vector<128x2048xbf16>
    %cst_72 = arith.constant dense<0.000000e+00> : vector<8x2048xf32>
    %131 = tpu.matmul %128, %130, %cst_72 {dimension_numbers = #tpu.dot_dimension_numbers<[1], [0], [0], [1], [0, 0, 1, 1], [], []>} : vector<8x128xbf16>, vector<128x2048xbf16>, vector<8x2048xf32> -> vector<8x2048xf32>
    %c1_73 = arith.constant 1 : index
    %c0_74 = arith.constant 0 : index
    %c0_75 = arith.constant 0 : index
    %132 = vector.load %arg9[%c1_73, %c0_74, %c0_75] : memref<2x1x2048xf32, #tpu.memory_space<vmem>>, vector<1x1x2048xf32>
    %133 = vector.shape_cast %132 : vector<1x1x2048xf32> to vector<1x2048xf32>
    %134 = vector.broadcast %133 : vector<1x2048xf32> to vector<8x2048xf32>
    %135 = arith.addf %131, %134 : vector<8x2048xf32>
    %cst_76 = arith.constant 0.000000e+00 : f32
    %136 = vector.broadcast %cst_76 : f32 to vector<8x2048xf32>
    %137 = arith.maximumf %135, %136 : vector<8x2048xf32>
    %138 = arith.truncf %137 : vector<8x2048xf32> to vector<8x2048xbf16>
    %c1_77 = arith.constant 1 : index
    %c0_78 = arith.constant 0 : index
    %c0_79 = arith.constant 0 : index
    %139 = vector.load %arg10[%c1_77, %c0_78, %c0_79] : memref<2x2048x128xbf16, #tpu.memory_space<vmem>>, vector<1x2048x128xbf16>
    %140 = vector.shape_cast %139 : vector<1x2048x128xbf16> to vector<2048x128xbf16>
    %cst_80 = arith.constant dense<0.000000e+00> : vector<8x128xf32>
    %141 = tpu.matmul %138, %140, %cst_80 {dimension_numbers = #tpu.dot_dimension_numbers<[1], [0], [0], [1], [0, 0, 1, 1], [], []>} : vector<8x2048xbf16>, vector<2048x128xbf16>, vector<8x128xf32> -> vector<8x128xf32>
    %c1_81 = arith.constant 1 : index
    %c0_82 = arith.constant 0 : index
    %c0_83 = arith.constant 0 : index
    %142 = vector.load %arg11[%c1_81, %c0_82, %c0_83] : memref<2x1x128xf32, #tpu.memory_space<vmem>>, vector<1x1x128xf32>
    %143 = vector.shape_cast %142 : vector<1x1x128xf32> to vector<1x128xf32>
    %144 = vector.broadcast %143 : vector<1x128xf32> to vector<8x128xf32>
    %145 = arith.addf %141, %144 : vector<8x128xf32>
    %146 = arith.addf %127, %145 : vector<8x128xf32>
    %c1_84 = arith.constant 1 : index
    %c0_85 = arith.constant 0 : index
    %c0_86 = arith.constant 0 : index
    %147 = vector.load %arg12[%c1_84, %c0_85, %c0_86] : memref<2x1x128xf32, #tpu.memory_space<vmem>>, vector<1x1x128xf32>
    %148 = vector.shape_cast %147 : vector<1x1x128xf32> to vector<1x128xf32>
    %c1_87 = arith.constant 1 : index
    %c0_88 = arith.constant 0 : index
    %c0_89 = arith.constant 0 : index
    %149 = vector.load %arg13[%c1_87, %c0_88, %c0_89] : memref<2x1x128xf32, #tpu.memory_space<vmem>>, vector<1x1x128xf32>
    %150 = vector.shape_cast %149 : vector<1x1x128xf32> to vector<1x128xf32>
    %cst_90 = arith.constant dense<0.000000e+00> : vector<8xf32>
    %151 = vector.multi_reduction <add>, %146, %cst_90 [1] : vector<8x128xf32> to vector<8xf32>
    %152 = vector.shape_cast %151 : vector<8xf32> to vector<8x1xf32>
    %cst_91 = arith.constant 3.125000e-02 : f32
    %153 = vector.broadcast %cst_91 : f32 to vector<8x1xf32>
    %154 = arith.mulf %152, %153 : vector<8x1xf32>
    %155 = arith.mulf %146, %146 : vector<8x128xf32>
    %cst_92 = arith.constant dense<0.000000e+00> : vector<8xf32>
    %156 = vector.multi_reduction <add>, %155, %cst_92 [1] : vector<8x128xf32> to vector<8xf32>
    %157 = vector.shape_cast %156 : vector<8xf32> to vector<8x1xf32>
    %cst_93 = arith.constant 3.125000e-02 : f32
    %158 = vector.broadcast %cst_93 : f32 to vector<8x1xf32>
    %159 = arith.mulf %157, %158 : vector<8x1xf32>
    %160 = arith.mulf %154, %154 : vector<8x1xf32>
    %161 = arith.subf %159, %160 : vector<8x1xf32>
    %cst_94 = arith.constant 0.000000e+00 : f32
    %162 = vector.broadcast %cst_94 : f32 to vector<8x1xf32>
    %163 = arith.maximumf %161, %162 : vector<8x1xf32>
    %164 = vector.broadcast %154 : vector<8x1xf32> to vector<8x128xf32>
    %165 = arith.subf %146, %164 : vector<8x128xf32>
    %cst_95 = arith.constant 9.99999974E-6 : f32
    %166 = vector.broadcast %cst_95 : f32 to vector<8x1xf32>
    %167 = arith.addf %163, %166 : vector<8x1xf32>
    %168 = math.rsqrt %167 : vector<8x1xf32>
    %169 = vector.broadcast %168 : vector<8x1xf32> to vector<8x128xf32>
    %170 = arith.mulf %165, %169 : vector<8x128xf32>
    %171 = vector.broadcast %148 : vector<1x128xf32> to vector<8x128xf32>
    %172 = arith.mulf %170, %171 : vector<8x128xf32>
    %173 = vector.broadcast %150 : vector<1x128xf32> to vector<8x128xf32>
    %174 = arith.addf %172, %173 : vector<8x128xf32>
    %175 = arith.truncf %174 : vector<8x128xf32> to vector<8x128xbf16>
    %c0_96 = arith.constant 0 : index
    %c0_97 = arith.constant 0 : index
    %176 = vector.load %arg14[%c0_96, %c0_97] : memref<128x128xbf16, #tpu.memory_space<vmem>>, vector<128x128xbf16>
    %cst_98 = arith.constant dense<0.000000e+00> : vector<8x128xf32>
    %177 = tpu.matmul %175, %176, %cst_98 {dimension_numbers = #tpu.dot_dimension_numbers<[1], [0], [0], [1], [0, 0, 1, 1], [], []>} : vector<8x128xbf16>, vector<128x128xbf16>, vector<8x128xf32> -> vector<8x128xf32>
    %c0_99 = arith.constant 0 : index
    %c0_100 = arith.constant 0 : index
    %178 = vector.load %arg15[%c0_99, %c0_100] : memref<1x128xf32, #tpu.memory_space<vmem>>, vector<1x128xf32>
    %179 = vector.broadcast %178 : vector<1x128xf32> to vector<8x128xf32>
    %180 = arith.addf %177, %179 : vector<8x128xf32>
    %c0_101 = arith.constant 0 : index
    %c0_102 = arith.constant 0 : index
    %181 = vector.load %arg16[%c0_101, %c0_102] : memref<8x128xf32, #tpu.memory_space<vmem>>, vector<8x128xf32>
    tpu.vector_store %arg16[%c0_101, %c0_102], %180 {strides = array<i32>} : memref<8x128xf32, #tpu.memory_space<vmem>>, vector<8x128xf32>,
    return
  }
  func.func @transform_0(%arg0: i32) -> (i32, i32) {
    %c0_i32 = arith.constant 0 : i32
    %c0_i32_0 = arith.constant 0 : i32
    return %arg0, %c0_i32 : i32, i32
  }
  func.func @transform_1(%arg0: i32) -> (i32, i32) {
    %c0_i32 = arith.constant 0 : i32
    %c0_i32_0 = arith.constant 0 : i32
    %c0_i32_1 = arith.constant 0 : i32
    return %c0_i32, %c0_i32_0 : i32, i32
  }
  func.func @transform_2(%arg0: i32) -> (i32, i32) {
    %c0_i32 = arith.constant 0 : i32
    %c0_i32_0 = arith.constant 0 : i32
    %c0_i32_1 = arith.constant 0 : i32
    return %c0_i32, %c0_i32_0 : i32, i32
  }
  func.func @transform_3(%arg0: i32) -> (i32, i32, i32) {
    %c0_i32 = arith.constant 0 : i32
    %c0_i32_0 = arith.constant 0 : i32
    %c0_i32_1 = arith.constant 0 : i32
    %c0_i32_2 = arith.constant 0 : i32
    return %c0_i32, %c0_i32_0, %c0_i32_1 : i32, i32, i32
  }
  func.func @transform_4(%arg0: i32) -> (i32, i32, i32) {
    %c0_i32 = arith.constant 0 : i32
    %c0_i32_0 = arith.constant 0 : i32
    %c0_i32_1 = arith.constant 0 : i32
    %c0_i32_2 = arith.constant 0 : i32
    return %c0_i32, %c0_i32_0, %c0_i32_1 : i32, i32, i32
  }
  func.func @transform_5(%arg0: i32) -> (i32, i32, i32) {
    %c0_i32 = arith.constant 0 : i32
    %c0_i32_0 = arith.constant 0 : i32
    %c0_i32_1 = arith.constant 0 : i32
    %c0_i32_2 = arith.constant 0 : i32
    return %c0_i32, %c0_i32_0, %c0_i32_1 : i32, i32, i32
  }
  func.func @transform_6(%arg0: i32) -> (i32, i32, i32) {
    %c0_i32 = arith.constant 0 : i32
    %c0_i32_0 = arith.constant 0 : i32
    %c0_i32_1 = arith.constant 0 : i32
    %c0_i32_2 = arith.constant 0 : i32
    return %c0_i32, %c0_i32_0, %c0_i32_1 : i32, i32, i32
  }
  func.func @transform_7(%arg0: i32) -> (i32, i32, i32) {
    %c0_i32 = arith.constant 0 : i32
    %c0_i32_0 = arith.constant 0 : i32
    %c0_i32_1 = arith.constant 0 : i32
    %c0_i32_2 = arith.constant 0 : i32
    return %c0_i32, %c0_i32_0, %c0_i32_1 : i32, i32, i32
  }
  func.func @transform_8(%arg0: i32) -> (i32, i32, i32) {
    %c0_i32 = arith.constant 0 : i32
    %c0_i32_0 = arith.constant 0 : i32
    %c0_i32_1 = arith.constant 0 : i32
    %c0_i32_2 = arith.constant 0 : i32
    return %c0_i32, %c0_i32_0, %c0_i32_1 : i32, i32, i32
  }
  func.func @transform_9(%arg0: i32) -> (i32, i32, i32) {
    %c0_i32 = arith.constant 0 : i32
    %c0_i32_0 = arith.constant 0 : i32
    %c0_i32_1 = arith.constant 0 : i32
    %c0_i32_2 = arith.constant 0 : i32
    return %c0_i32, %c0_i32_0, %c0_i32_1 : i32, i32, i32
  }
  func.func @transform_10(%arg0: i32) -> (i32, i32, i32) {
    %c0_i32 = arith.constant 0 : i32
    %c0_i32_0 = arith.constant 0 : i32
    %c0_i32_1 = arith.constant 0 : i32
    %c0_i32_2 = arith.constant 0 : i32
    return %c0_i32, %c0_i32_0, %c0_i32_1 : i32, i32, i32
  }
  func.func @transform_11(%arg0: i32) -> (i32, i32, i32) {
    %c0_i32 = arith.constant 0 : i32
    %c0_i32_0 = arith.constant 0 : i32
    %c0_i32_1 = arith.constant 0 : i32
    %c0_i32_2 = arith.constant 0 : i32
    return %c0_i32, %c0_i32_0, %c0_i32_1 : i32, i32, i32
  }
  func.func @transform_12(%arg0: i32) -> (i32, i32, i32) {
    %c0_i32 = arith.constant 0 : i32
    %c0_i32_0 = arith.constant 0 : i32
    %c0_i32_1 = arith.constant 0 : i32
    %c0_i32_2 = arith.constant 0 : i32
    return %c0_i32, %c0_i32_0, %c0_i32_1 : i32, i32, i32
  }
  func.func @transform_13(%arg0: i32) -> (i32, i32) {
    %c0_i32 = arith.constant 0 : i32
    %c0_i32_0 = arith.constant 0 : i32
    %c0_i32_1 = arith.constant 0 : i32
    return %c0_i32, %c0_i32_0 : i32, i32
  }
  func.func @transform_14(%arg0: i32) -> (i32, i32) {
    %c0_i32 = arith.constant 0 : i32
    %c0_i32_0 = arith.constant 0 : i32
    %c0_i32_1 = arith.constant 0 : i32
    return %c0_i32, %c0_i32_0 : i32, i32
  }
  func.func @transform_15(%arg0: i32) -> (i32, i32) {
    %c0_i32 = arith.constant 0 : i32
    %c0_i32_0 = arith.constant 0 : i32
    return %arg0, %c0_i32 : i32, i32
  }
}

</mosaic_0001>

<bundles_post_ra>
// kernel: tpu_custom_call.1
= control target key start
LH: loop header
LB: loop body
LE: loop exit
PB: predicated region body
PF: predicated region fallthrough
CT: control target
= control target key end

     0   :  { %20 = vsyncpa [#allocation3], 0  ;;  %s7769_s0 = inlined_call_operand.hbm [shape: f32[8,32], index: 0, kind: input, shape index: {}]   ;;  %s7770_s1 = inlined_call_operand.hbm [shape: bf16[32,128], index: 1, kind: input, shape index: {}]   ;;  %s7771_s2 = inlined_call_operand.vmem [shape: f32[1,128], index: 2, kind: input, shape index: {}]   ;;  %s7772_s3 = inlined_call_operand.hbm [shape: bf16[2,128,128], index: 3, kind: input, shape index: {}]   ;;  %s7773_s4 = inlined_call_operand.vmem [shape: f32[2,1,128], index: 4, kind: input, shape index: {}]   ;;  %s7774_s5 = inlined_call_operand.vmem [shape: f32[2,1,128], index: 5, kind: input, shape index: {}]   ;;  %s7775_s6 = inlined_call_operand.vmem [shape: f32[2,1,128], index: 6, kind: input, shape index: {}]   ;;  %s7776_s7 = inlined_call_operand.hbm [shape: bf16[2,128,2048], index: 7, kind: input, shape index: {}]   ;;  %s7777_s8 = inlined_call_operand.hbm [shape: f32[2,1,2048], index: 8, kind: input, shape index: {}]   ;;  %s7778_s9 = inlined_call_operand.hbm [shape: bf16[2,2048,128], index: 9, kind: input, shape index: {}]   ;;  %s7779_s10 = inlined_call_operand.vmem [shape: f32[2,1,128], index: 10, kind: input, shape index: {}]   ;;  %s7780_s11 = inlined_call_operand.vmem [shape: f32[2,1,128], index: 11, kind: input, shape index: {}]   ;;  %s7781_s12 = inlined_call_operand.vmem [shape: f32[2,1,128], index: 12, kind: input, shape index: {}]   ;;  %s7782_s13 = inlined_call_operand.hbm [shape: bf16[128,128], index: 13, kind: input, shape index: {}]   ;;  %s7783_s14 = inlined_call_operand.vmem [shape: f32[1,128], index: 14, kind: input, shape index: {}]   ;;  %s7784_s15 = inlined_call_operand.hbm [shape: f32[8,128], index: 15, kind: output, shape index: {}]  }
   0x1   :  { %21 = vsyncpa [#allocation6], 0 }
   0x2   :  { %22 = vsyncpa [#allocation9], 0 }
   0x3   :  { %23 = vsyncpa [#allocation12], 0 }
   0x4   :  { %24 = vsyncpa [#allocation4], 0  ;;  %s7332_s18 = smov [#allocation5]   ;;  %s7146_s22 = scalar_lea.hbm %s7770_s1, 256 }
   0x5   :  { %s40_s19 = sshll.u32 %s7332_s18, 4  ;;  %p7147_p0 = scmp.ne.s32.totalorder %s7770_s1, %s7146_s22  ;;  %s41_s19 = int_to_ptr.vmem [resolvable:$true] %s40_s19 }
   0x6   :  { %p7150_p1 = scmp.lt.u32.totalorder %s7146_s22, %s7770_s1 }
   0x8   :  { %p7152_p2 = pnand %p7150_p1, %p7147_p0 }
   0xa   :  { %7155 = shalt.err (!%p7152_p2)
}
   0xb   :  { %s7156_s27 = scalar_lea.vmem %s41_s19, 256  ;;  %p7161_p4 = scmp.lt.s32.totalorder %s41_s19, %s41_s19 }
   0xc   :  { %p7157_p3 = scmp.ne.s32.totalorder %s41_s19, %s7156_s27  ;;  %p7162_p5 = scmp.lt.s32.totalorder %s7156_s27, %s7156_s27 }
   0xe   :  { %p7163_p6 = por %p7162_p5, %p7161_p4 }
  0x10   :  { %p7164_p7 = pnand %p7163_p6, %p7157_p3 }
  0x12   :  { %7167 = shalt.err (!%p7164_p7)
}
  0x13   :  { %s7333_s28 = smov 64   ;;  %s7785_s29 = smov 4  }
  0x14   :  { %46 = dma.hbm_to_vmem [thread:$0]  %s7770_s1, 256, %s41_s19, [#allocation6], %s7333_s28, %s7333_s28, %s7785_s29  }
  0x15   :  { %s7335_s17 = smov [#allocation8]   ;;  %s7168_s22 = scalar_lea.hbm %s7776_s7, 32768 }
  0x16   :  { %s72_s18 = sshll.u32 %s7335_s17, 4  ;;  %p7169_p8 = scmp.ne.s32.totalorder %s7776_s7, %s7168_s22  ;;  %s73_s18 = int_to_ptr.vmem [resolvable:$true] %s72_s18 }
  0x17   :  { %p7172_p9 = scmp.lt.u32.totalorder %s7168_s22, %s7776_s7 }
  0x19   :  { %p7174_p10 = pnand %p7172_p9, %p7169_p8 }
  0x1b   :  { %7177 = shalt.err (!%p7174_p10)
}
  0x1c   :  { %s7178_s27 = scalar_lea.vmem %s73_s18, 32768  ;;  %p7183_p12 = scmp.lt.s32.totalorder %s73_s18, %s73_s18 }
  0x1d   :  { %p7179_p11 = scmp.ne.s32.totalorder %s73_s18, %s7178_s27  ;;  %p7184_p13 = scmp.lt.s32.totalorder %s7178_s27, %s7178_s27 }
  0x1f   :  { %p7185_p0 = por %p7184_p13, %p7183_p12 }
  0x21   :  { %p7186_p1 = pnand %p7185_p0, %p7179_p11 }
  0x23   :  { %7189 = shalt.err (!%p7186_p1)
}
  0x24   :  { %s7336_s1 = smov 1024   ;;  %s7337_s16 = smov [#allocation11]  }
  0x25   :  { %78 = dma.hbm_to_vmem [thread:$0]  %s7776_s7, 32768, %s73_s18, [#allocation9], %s7336_s1, %s7336_s1, %s7333_s28  }
  0x26   :  { %s96_s17 = sshll.u32 %s7337_s16, 4  ;;  %s7338_s20 = smov [#allocation2]   ;;  %s97_s17 = int_to_ptr.vmem [resolvable:$true] %s96_s17 }
  0x27   :  { %s31_s21 = sshll.u32 %s7338_s20, 4  ;;  %s7190_s24 = scalar_lea.hbm %s7778_s9, 32768  ;;  %s32_s21 = int_to_ptr.vmem [resolvable:$true] %s31_s21 }
  0x28   :  { %p7191_p2 = scmp.ne.s32.totalorder %s7778_s9, %s7190_s24  ;;  %p7194_p3 = scmp.lt.u32.totalorder %s7190_s24, %s7778_s9 }
  0x2a   :  { %p7196_p4 = pnand %p7194_p3, %p7191_p2 }
  0x2c   :  { %7199 = shalt.err (!%p7196_p4)
}
  0x2d   :  { %s7200_s7 = scalar_lea.vmem %s97_s17, 32768  ;;  %p7205_p6 = scmp.lt.s32.totalorder %s97_s17, %s97_s17 }
  0x2e   :  { %p7201_p5 = scmp.ne.s32.totalorder %s97_s17, %s7200_s7  ;;  %p7206_p7 = scmp.lt.s32.totalorder %s7200_s7, %s7200_s7 }
  0x30   :  { %p7207_p8 = por %p7206_p7, %p7205_p6 }
  0x32   :  { %p7208_p9 = pnand %p7207_p8, %p7201_p5 }
  0x34   :  { %7211 = shalt.err (!%p7208_p9)
}
  0x35   :  { %s7787_s18 = smov 4   ;;  %s7212_s16 = scalar_lea.hbm %s7769_s0, 128 }
  0x36   :  { %102 = dma.hbm_to_vmem [thread:$0]  %s7778_s9, 32768, %s97_s17, [#allocation12], %s7333_s28, %s7333_s28, %s7787_s18  }
  0x37   :  { %p7213_p10 = scmp.ne.s32.totalorder %s7769_s0, %s7212_s16  ;;  %p7216_p11 = scmp.lt.u32.totalorder %s7212_s16, %s7769_s0 }
  0x39   :  { %p7218_p12 = pnand %p7216_p11, %p7213_p10 }
  0x3b   :  { %7221 = shalt.err (!%p7218_p12)
}
  0x3c   :  { %s7222_s25 = scalar_lea.vmem %s32_s21, 128  ;;  %p7227_p0 = scmp.lt.s32.totalorder %s32_s21, %s32_s21 }
  0x3d   :  { %p7223_p13 = scmp.ne.s32.totalorder %s32_s21, %s7222_s25  ;;  %p7228_p1 = scmp.lt.s32.totalorder %s7222_s25, %s7222_s25 }
  0x3f   :  { %p7229_p2 = por %p7228_p1, %p7227_p0 }
  0x41   :  { %p7230_p3 = pnand %p7229_p2, %p7223_p13 }
  0x43   :  { %7233 = shalt.err (!%p7230_p3)
}
  0x44   :  { %34 = dma.hbm_to_vmem [thread:$0]  %s7769_s0, 128, %s32_s21, [#allocation3]  }
  0x45   :  { %s7339_s26 = smov [#allocation7]   ;;  %s7340_s7 = smov [#allocation10]  }
  0x46   :  { %s54_s27 = sshll.u32 %s7339_s26, 4  ;;  %s84_s1 = sshll.u32 %s7340_s7, 4  ;;  %s55_s27 = int_to_ptr.vmem [resolvable:$true] %s54_s27  ;;  %s85_s1 = int_to_ptr.vmem [resolvable:$true] %s84_s1 }
  0x47   :  { %s7234_s29 = scalar_lea.hbm %s7772_s3, 2048 }
  0x48   :  { %p7235_p4 = scmp.ne.s32.totalorder %s7772_s3, %s7234_s29  ;;  %p7238_p5 = scmp.lt.u32.totalorder %s7234_s29, %s7772_s3 }
  0x4a   :  { %p7240_p6 = pnand %p7238_p5, %p7235_p4 }
  0x4c   :  { %7243 = shalt.err (!%p7240_p6)
}
  0x4d   :  { %s7244_s0 = scalar_lea.vmem %s55_s27, 2048  ;;  %p7249_p8 = scmp.lt.s32.totalorder %s55_s27, %s55_s27 }
  0x4e   :  { %p7245_p7 = scmp.ne.s32.totalorder %s55_s27, %s7244_s0  ;;  %p7250_p9 = scmp.lt.s32.totalorder %s7244_s0, %s7244_s0 }
  0x50   :  { %p7251_p10 = por %p7250_p9, %p7249_p8 }
  0x52   :  { %p7252_p11 = pnand %p7251_p10, %p7245_p7 }
  0x54   :  { %7255 = shalt.err (!%p7252_p11)
}
  0x55   :  { %60 = dma.hbm_to_vmem [thread:$0]  %s7772_s3, 2048, %s55_s27, [#allocation6], %s7333_s28, %s7333_s28, %s7787_s18  }
  0x56   :  { %s7256_s17 = scalar_lea.hbm %s7777_s8, 512 }
  0x57   :  { %p7257_p12 = scmp.ne.s32.totalorder %s7777_s8, %s7256_s17  ;;  %p7260_p13 = scmp.lt.u32.totalorder %s7256_s17, %s7777_s8 }
  0x59   :  { %p7262_p0 = pnand %p7260_p13, %p7257_p12 }
  0x5b   :  { %7265 = shalt.err (!%p7262_p0)
}
  0x5c   :  { %s7266_s29 = scalar_lea.vmem %s85_s1, 512  ;;  %p7271_p2 = scmp.lt.s32.totalorder %s85_s1, %s85_s1 }
  0x5d   :  { %p7267_p1 = scmp.ne.s32.totalorder %s85_s1, %s7266_s29  ;;  %p7272_p3 = scmp.lt.s32.totalorder %s7266_s29, %s7266_s29 }
  0x5f   :  { %p7273_p4 = por %p7272_p3, %p7271_p2 }
  0x61   :  { %p7274_p5 = pnand %p7273_p4, %p7267_p1 }
  0x63   :  { %7277 = shalt.err (!%p7274_p5)
}
  0x64   :  { %s7341_s3 = smov 256   ;;  %s7342_s27 = smov 16  }
  0x65   :  { %90 = dma.hbm_to_vmem [thread:$0]  %s7777_s8, 512, %s85_s1, [#allocation9], %s7341_s3, %s7341_s3, %s7342_s27  }
  0x66   :  { %s7343_s22 = smov [#allocation13]   ;;  %s7278_s24 = scalar_lea.hbm %s7782_s13, 1024 }
  0x67   :  { %s114_s23 = sshll.u32 %s7343_s22, 4  ;;  %p7279_p6 = scmp.ne.s32.totalorder %s7782_s13, %s7278_s24  ;;  %s115_s23 = int_to_ptr.vmem [resolvable:$true] %s114_s23 }
  0x68   :  { %p7282_p7 = scmp.lt.u32.totalorder %s7278_s24, %s7782_s13 }
  0x6a   :  { %p7284_p8 = pnand %p7282_p7, %p7279_p6 }
  0x6c   :  { %7287 = shalt.err (!%p7284_p8)
}
  0x6d   :  { %s7288_s7 = scalar_lea.vmem %s115_s23, 1024  ;;  %p7293_p10 = scmp.lt.s32.totalorder %s115_s23, %s115_s23 }
  0x6e   :  { %p7289_p9 = scmp.ne.s32.totalorder %s115_s23, %s7288_s7  ;;  %p7294_p11 = scmp.lt.s32.totalorder %s7288_s7, %s7288_s7 }
  0x70   :  { %p7295_p12 = por %p7294_p11, %p7293_p10 }
  0x72   :  { %p7296_p13 = pnand %p7295_p12, %p7289_p9 }
  0x74   :  { %7299 = shalt.err (!%p7296_p13)
}
  0x75   :  { %120 = dma.hbm_to_vmem [thread:$0]  %s7782_s13, 1024, %s115_s23, [#allocation12], %s7333_s28, %s7333_s28, %s7787_s18  }
  0x76   :  { %7322 = dma.done.wait [#allocation3], 128  }
  0x77   :  { %7323 = vsyncadd [#allocation3], 4294967168 }
  0x78   :  { %7324 = dma.done.wait [#allocation6], 2304  }
  0x79   :  { %7325 = vsyncadd [#allocation6], 4294964992 }
  0x7a   :  { %7326 = dma.done.wait [#allocation9], 33280  }
  0x7b   :  { %7327 = vsyncadd [#allocation9], 4294934016 }
  0x7c   :  { %7328 = dma.done.wait [#allocation12], 33792  }
  0x7d   :  { %7329 = vsyncadd [#allocation12], 4294933504  ;;  %v7344_v0 = vmov 0.0   ;;  %vm7345_vm0 = vmmov 0   ;;  %v6856_v1 = vld [vmem:[#allocation5] sm:$0xff]   ;;  %v6857_v2 = vld [vmem:[#allocation5 + $0x8] sm:$0xff]  }
  0x7e   :  { %6772 = vmatprep.subr.bf16.mxu0 %v7344_v0  ;;  %6776 = vmatprep.mubr.msk.bf16.mxu0 %vm7345_vm0, %v7344_v0  ;;  %v145_v3 = vld [vmem:[#allocation2] sm:$0xff]  ;;  %v6858_v4 = vld [vmem:[#allocation7] sm:$0xff]   ;;  %vm170_vm1 = vcmask 261120   ;;  %v6860_v7 = vld [vmem:[#allocation7 + $0x10] sm:$0xff]   ;;  %s7347_s28 = smov [#allocation14]  }
  0x7f   :  { %6780 = vmatprep.subr.bf16.mxu1 %v7344_v0  ;;  %6796 = vmatprep.mubr.msk.bf16.mxu1 %vm7345_vm0, %v7344_v0  ;;  %v146_v5 = vpack.c.bf16 %v145_v3, %v145_v3  ;;  %v6859_v6 = vld [vmem:[#allocation7 + $0x8] sm:$0xff]   ;;  %v6861_v8 = vld [vmem:[#allocation7 + $0x18] sm:$0xff]   ;;  %v6862_v9 = vld [vmem:[#allocation7 + $0x20] sm:$0xff]  }
  0x80   :  { %6773 = vmatpush3.bf16.msra.mxu0 %v6856_v1  ;;  %6781 = vmatpush3.bf16.msra.mxu1 %v6858_v4  ;;  %v6863_v10 = vld [vmem:[#allocation7 + $0x28] sm:$0xff]   ;;  %v6864_v11 = vld [vmem:[#allocation7 + $0x30] sm:$0xff]   ;;  %v6865_v12 = vld [vmem:[#allocation7 + $0x38] sm:$0xff]  }
  0x81   :  { %6774 = vmatprep.subr.bf16.mxu0 %v7344_v0  ;;  %6782 = vmatprep.subr.bf16.mxu1 %v7344_v0  ;;  %v5831_v13 = vld [vmem:[%s7771_s2] ss:$0 sm:$0xff]  ;;  %v358_v20 = vld [vmem:[#allocation8] sm:$0xff]  ;;  %s5819_s2 = sshll.u32 %s7347_s28, 4  ;;  %s5820_s2 = int_to_ptr.vmem [resolvable:$true] %s5819_s2 }
  0x82   :  { %v366_v21 = vld [vmem:[#allocation8 + $0x40] sm:$0xff]  ;;  %v359_v22 = vld [vmem:[#allocation8 + $0x8] sm:$0xff]  ;;  %p7305_p1 = scmp.lt.s32.totalorder %s5820_s2, %s5820_s2 }
  0x83   :  { %v5846_v23 = vcombine.low %v358_v20, %v366_v21  ;;  %v5847_v24 = vcombine.high %v358_v20, %v366_v21  ;;  %v367_v25 = vld [vmem:[#allocation8 + $0x48] sm:$0xff]  ;;  %v374_v36 = vld [vmem:[#allocation8 + $0x80] sm:$0xff] }
  0x84   :  { %6775 = vmatpush3.bf16.msra.mxu0 %v6857_v2  ;;  %6783 = vmatpush3.bf16.msra.mxu1 %v6859_v6  ;;  %v5848_v26 = vcombine.low %v359_v22, %v367_v25  ;;  %v5849_v27 = vcombine.high %v359_v22, %v367_v25  ;;  %v5835_v28 = vld [vmem:[%s7773_s4] ss:$0 sm:$0xff]  ;;  %v382_v37 = vld [vmem:[#allocation8 + $0xc0] sm:$0xff] }
  0x85   :  { %6784 = vmatprep.subr.bf16.mxu1 %v7344_v0  ;;  %1210 = vmatprep.subr.bf16.mxu0 %v5847_v24  ;;  %v375_v38 = vld [vmem:[#allocation8 + $0x88] sm:$0xff]  ;;  %v5863_v39 = vcombine.high %v374_v36, %v382_v37  ;;  %v5862_v41 = vcombine.low %v374_v36, %v382_v37  ;;  %v390_v44 = vld [vmem:[#allocation8 + $0x100] sm:$0xff] }
  0x86   :  { %v383_v40 = vld [vmem:[#allocation8 + $0xc8] sm:$0xff]  ;;  %v398_v45 = vld [vmem:[#allocation8 + $0x140] sm:$0xff] }
  0x87   :  { %6777 = vmatmul.mubr.msk.bf16.vlgmr.msra.gmra.mrb[0].mxu0 %vm170_vm1, %v146_v5  ;;  %v5864_v42 = vcombine.low %v375_v38, %v383_v40  ;;  %v5865_v43 = vcombine.high %v375_v38, %v383_v40  ;;  %v391_v46 = vld [vmem:[#allocation8 + $0x108] sm:$0xff]  ;;  %v5879_v47 = vcombine.high %v390_v44, %v398_v45  ;;  %v5878_v49 = vcombine.low %v390_v44, %v398_v45  ;;  %v406_v52 = vld [vmem:[#allocation8 + $0x180] sm:$0xff] }
  0x88   :  { %6785 = vmatpush3.bf16.msra.mxu1 %v6860_v7  ;;  %1211 = vmatpush1.bf16.msra.mxu0 %v5846_v23  ;;  %v399_v48 = vld [vmem:[#allocation8 + $0x148] sm:$0xff]  ;;  %v414_v53 = vld [vmem:[#allocation8 + $0x1c0] sm:$0xff]  ;;  %v7346_v38 = vmov 0  }
  0x89   :  { %6786 = vmatprep.subr.bf16.mxu1 %v7344_v0  ;;  %1212 = vmatprep.subr.bf16.mxu0 %v5863_v39  ;;  %v5880_v50 = vcombine.low %v391_v46, %v399_v48  ;;  %v5881_v51 = vcombine.high %v391_v46, %v399_v48  ;;  %v407_v54 = vld [vmem:[#allocation8 + $0x188] sm:$0xff]  ;;  %v5895_v55 = vcombine.high %v406_v52, %v414_v53  ;;  %v422_v60 = vld [vmem:[#allocation8 + $0x200] sm:$0xff] }
  0x8a   :  { %v415_v56 = vld [vmem:[#allocation8 + $0x1c8] sm:$0xff]  ;;  %v5894_v57 = vcombine.low %v406_v52, %v414_v53  ;;  %v430_v61 = vld [vmem:[#allocation8 + $0x240] sm:$0xff]  ;;  %1242 = vmatprep.mubr.bf16.mxu0 %v7346_v38  ;;  %v376_v53 = vld [vmem:[#allocation8 + $0x90] sm:$0xff] }
  0x8b   :  { %v5896_v58 = vcombine.low %v407_v54, %v415_v56  ;;  %v5897_v59 = vcombine.high %v407_v54, %v415_v56  ;;  %v423_v62 = vld [vmem:[#allocation8 + $0x208] sm:$0xff]  ;;  %v5911_v63 = vcombine.high %v422_v60, %v430_v61  ;;  %v5910_v2 = vcombine.low %v422_v60, %v430_v61  ;;  %v438_v5 = vld [vmem:[#allocation8 + $0x280] sm:$0xff]  ;;  %v384_v54 = vld [vmem:[#allocation8 + $0xd0] sm:$0xff] }
  0x8c   :  { %6787 = vmatpush3.bf16.msra.mxu1 %v6861_v8  ;;  %1213 = vmatpush1.bf16.msra.mxu0 %v5862_v41  ;;  %v431_v1 = vld [vmem:[#allocation8 + $0x248] sm:$0xff]  ;;  %v446_v6 = vld [vmem:[#allocation8 + $0x2c0] sm:$0xff]  ;;  %v385_v56 = vld [vmem:[#allocation8 + $0xd8] sm:$0xff] }
  0x8d   :  { %6788 = vmatprep.subr.bf16.mxu1 %v7344_v0  ;;  %1214 = vmatprep.subr.bf16.mxu0 %v5879_v47  ;;  %v5912_v3 = vcombine.low %v423_v62, %v431_v1  ;;  %v5913_v4 = vcombine.high %v423_v62, %v431_v1  ;;  %v439_v7 = vld [vmem:[#allocation8 + $0x288] sm:$0xff]  ;;  %v5927_v8 = vcombine.high %v438_v5, %v446_v6  ;;  %v470_v21 = vld [vmem:[#allocation8 + $0x380] sm:$0xff]  ;;  %v392_v60 = vld [vmem:[#allocation8 + $0x110] sm:$0xff] }
  0x8e   :  { %v478_v22 = vld [vmem:[#allocation8 + $0x3c0] sm:$0xff]  ;;  %v471_v23 = vld [vmem:[#allocation8 + $0x388] sm:$0xff]  ;;  %v400_v61 = vld [vmem:[#allocation8 + $0x150] sm:$0xff]  ;;  %v5866_v1 = vcombine.low %v376_v53, %v384_v54 }
  0x8f   :  { %v5959_v24 = vcombine.high %v470_v21, %v478_v22  ;;  %v479_v25 = vld [vmem:[#allocation8 + $0x3c8] sm:$0xff]  ;;  %v393_v62 = vld [vmem:[#allocation8 + $0x118] sm:$0xff] }
  0x90   :  { %6789 = vmatpush3.bf16.msra.mxu1 %v6862_v9  ;;  %1215 = vmatpush1.bf16.msra.mxu0 %v5878_v49  ;;  %v447_v9 = vld [vmem:[#allocation8 + $0x2c8] sm:$0xff] }
  0x91   :  { %6790 = vmatprep.subr.bf16.mxu1 %v7344_v0  ;;  %1216 = vmatprep.subr.bf16.mxu0 %v5895_v55  ;;  %v5844_v49 = vld [vmem:[%s7774_s5] ss:$0 sm:$0xff]  ;;  %v377_v55 = vld [vmem:[#allocation8 + $0x98] sm:$0xff] }
  0x94   :  { %6791 = vmatpush3.bf16.msra.mxu1 %v6863_v10  ;;  %1217 = vmatpush1.bf16.msra.mxu0 %v5894_v57  ;;  %v5926_v10 = vcombine.low %v438_v5, %v446_v6  ;;  %v408_v5 = vld [vmem:[#allocation8 + $0x190] sm:$0xff] }
  0x95   :  { %6792 = vmatprep.subr.bf16.mxu1 %v7344_v0  ;;  %1218 = vmatprep.subr.bf16.mxu0 %v5911_v63  ;;  %v401_v63 = vld [vmem:[#allocation8 + $0x158] sm:$0xff]  ;;  %v416_v6 = vld [vmem:[#allocation8 + $0x1d0] sm:$0xff] }
  0x98   :  { %6793 = vmatpush3.bf16.msra.mxu1 %v6864_v11  ;;  %1219 = vmatpush1.bf16.msra.mxu0 %v5910_v2  ;;  %v5928_v11 = vcombine.low %v439_v7, %v447_v9  ;;  %v5868_v2 = vcombine.low %v377_v55, %v385_v56 }
  0x99   :  { %6794 = vmatprep.subr.bf16.mxu1 %v7344_v0  ;;  %1220 = vmatprep.subr.bf16.mxu0 %v5927_v8  ;;  %v417_v8 = vld [vmem:[#allocation8 + $0x1d8] sm:$0xff] }
  0x9c   :  { %6795 = vmatpush3.bf16.msra.mxu1 %v6865_v12  ;;  %v5929_v12 = vcombine.high %v439_v7, %v447_v9  ;;  %1221 = vmatpush1.bf16.msra.mxu0 %v5926_v10  ;;  %v409_v7 = vld [vmem:[#allocation8 + $0x198] sm:$0xff]  ;;  %v5882_v9 = vcombine.low %v392_v60, %v400_v61  ;;  %v5884_v10 = vcombine.low %v393_v62, %v401_v63 }
  0x9d   :  { %1251 = vmatprep.subr.bf16.mxu1 %v5849_v27  ;;  %v5960_v27 = vcombine.low %v471_v23, %v479_v25 }
 0x15a   :  { %v208_v14 = vpop.f32.mrb[0].mxu0 }
 0x15b   :  { %v209_v15 = vadd.f32 %v5831_v13, %v208_v14  ;;  %v6778_v16 = vpop.f32.mrb[1].mxu0  ;;  %v454_v13 = vld [vmem:[#allocation8 + $0x300] sm:$0xff] }
 0x15c   :  { %v211_v17 = vpop.f32.mrb[2].mxu0  ;;  %v462_v14 = vld [vmem:[#allocation8 + $0x340] sm:$0xff] }
 0x15d   :  { %v214_v18 = vpack.c.bf16 %v209_v15, %v209_v15  ;;  %v6779_v19 = vpop.f32.mrb[3].mxu0  ;;  %v5943_v16 = vcombine.high %v454_v13, %v462_v14  ;;  %v463_v17 = vld [vmem:[#allocation8 + $0x348] sm:$0xff] }
 0x15f   :  { %6797 = vmatmul.mubr.bf16.vlgmr.msra.gmra.mrb[0].mxu1 %v214_v18  ;;  %v5942_v18 = vcombine.low %v454_v13, %v462_v14  ;;  %1222 = vmatprep.subr.bf16.mxu0 %v5943_v16  ;;  %v424_v13 = vld [vmem:[#allocation8 + $0x210] sm:$0xff]  ;;  %v433_v16 = vld [vmem:[#allocation8 + $0x258] sm:$0xff] }
 0x160   :  { %1252 = vmatpush1.bf16.msra.mxu1 %v5848_v26  ;;  %v5958_v26 = vcombine.low %v470_v21, %v478_v22  ;;  %1283 = vmatprep.mubr.bf16.mxu1 %v7346_v38  ;;  %v432_v14 = vld [vmem:[#allocation8 + $0x250] sm:$0xff] }
 0x161   :  { %1253 = vmatprep.subr.bf16.mxu1 %v5865_v43  ;;  %1223 = vmatpush1.bf16.msra.mxu0 %v5942_v18  ;;  %v5900_v18 = vcombine.low %v409_v7, %v417_v8  ;;  %v440_v21 = vld [vmem:[#allocation8 + $0x290] sm:$0xff] }
 0x162   :  { %1224 = vmatprep.subr.bf16.mxu0 %v5959_v24  ;;  %v448_v22 = vld [vmem:[#allocation8 + $0x2d0] sm:$0xff]  ;;  %v449_v24 = vld [vmem:[#allocation8 + $0x2d8] sm:$0xff] }
 0x164   :  { %1254 = vmatpush1.bf16.msra.mxu1 %v5864_v42 }
 0x165   :  { %1255 = vmatprep.subr.bf16.mxu1 %v5881_v51  ;;  %1225 = vmatpush1.bf16.msra.mxu0 %v5958_v26  ;;  %v5845_v51 = vld [vmem:[%s7775_s6] ss:$0 sm:$0xff] }
 0x168   :  { %1256 = vmatpush1.bf16.msra.mxu1 %v5880_v50 }
 0x169   :  { %1257 = vmatprep.subr.bf16.mxu1 %v5897_v59  ;;  %v5869_v59 = vcombine.high %v377_v55, %v385_v56  ;;  %v378_v55 = vld [vmem:[#allocation8 + $0xa0] sm:$0xff] }
 0x16a   :  { %v386_v56 = vld [vmem:[#allocation8 + $0xe0] sm:$0xff] }
 0x16c   :  { %1258 = vmatpush1.bf16.msra.mxu1 %v5896_v58  ;;  %v5867_v58 = vcombine.high %v376_v53, %v384_v54 }
 0x16d   :  { %1259 = vmatprep.subr.bf16.mxu1 %v5913_v4  ;;  %v5885_v4 = vcombine.high %v393_v62, %v401_v63  ;;  %v5871_v62 = vcombine.high %v378_v55, %v386_v56 }
 0x170   :  { %1260 = vmatpush1.bf16.msra.mxu1 %v5912_v3  ;;  %v5883_v3 = vcombine.high %v392_v60, %v400_v61 }
 0x171   :  { %1261 = vmatprep.subr.bf16.mxu1 %v5929_v12  ;;  %v5901_v12 = vcombine.high %v409_v7, %v417_v8 }
 0x174   :  { %1262 = vmatpush1.bf16.msra.mxu1 %v5928_v11  ;;  %v5899_v11 = vcombine.high %v408_v5, %v416_v6 }
 0x232   :  { %v320_v29 = vpop.f32.mrb[0].mxu1 }
 0x233   :  { %v321_v30 = vadd.f32 %v5835_v28, %v320_v29  ;;  %v6798_v31 = vpop.f32.mrb[1].mxu1  ;;  %v5961_v28 = vcombine.high %v471_v23, %v479_v25  ;;  %v360_v29 = vld [vmem:[#allocation8 + $0x10] sm:$0xff]  ;;  %v441_v23 = vld [vmem:[#allocation8 + $0x298] sm:$0xff]  ;;  %v5914_v25 = vcombine.low %v424_v13, %v432_v14 }
 0x234   :  { %v323_v32 = vpop.f32.mrb[2].mxu1  ;;  %v361_v31 = vld [vmem:[#allocation8 + $0x18] sm:$0xff] }
 0x235   :  { %v7545_v33 = vadd.f32 %v321_v30, %v209_v15  ;;  %v6799_v34 = vpop.f32.mrb[3].mxu1  ;;  %v455_v15 = vld [vmem:[#allocation8 + $0x308] sm:$0xff]  ;;  %v368_v30 = vld [vmem:[#allocation8 + $0x50] sm:$0xff] }
 0x236   :  { %v5944_v19 = vcombine.low %v455_v15, %v463_v17  ;;  %v5945_v20 = vcombine.high %v455_v15, %v463_v17  ;;  %v5851_v32 = vcombine.high %v360_v29, %v368_v30  ;;  %v369_v34 = vld [vmem:[#allocation8 + $0x58] sm:$0xff]  ;;  %v5898_v17 = vcombine.low %v408_v5, %v416_v6 }
 0x237   :  { %329 = vadd.xlane.f32.xlu0 %v7545_v33  ;;  %v332_v35 = vmul.f32 %v7545_v33, %v7545_v33  ;;  %v5852_v36 = vcombine.low %v361_v31, %v369_v34  ;;  %v5853_v37 = vcombine.high %v361_v31, %v369_v34  ;;  %v425_v15 = vld [vmem:[#allocation8 + $0x218] sm:$0xff]  ;;  %v5930_v34 = vcombine.low %v440_v21, %v448_v22 }
 0x238   :  { %1263 = vmatprep.subr.bf16.mxu1 %v5945_v20  ;;  %1292 = vmatprep.subr.bf16.mxu0 %v5851_v32  ;;  %v5917_v20 = vcombine.high %v425_v15, %v433_v16  ;;  %v5916_v26 = vcombine.low %v425_v15, %v433_v16  ;;  %v457_v31 = vld [vmem:[#allocation8 + $0x318] sm:$0xff]  ;;  %v5870_v5 = vcombine.low %v378_v55, %v386_v56 }
 0x239   :  { %1264 = vmatpush1.bf16.msra.mxu1 %v5944_v19  ;;  %v5915_v19 = vcombine.high %v424_v13, %v432_v14  ;;  %v465_v32 = vld [vmem:[#allocation8 + $0x358] sm:$0xff] }
 0x23a   :  { %1265 = vmatprep.subr.bf16.mxu1 %v5961_v28  ;;  %v5933_v28 = vcombine.high %v441_v23, %v449_v24 }
 0x23b   :  { %333 = vadd.xlane.f32.xlu0 %v332_v35  ;;  %v5850_v35 = vcombine.low %v360_v29, %v368_v30  ;;  %v456_v29 = vld [vmem:[#allocation8 + $0x310] sm:$0xff] }
 0x23c   :  { %v464_v30 = vld [vmem:[#allocation8 + $0x350] sm:$0xff] }
 0x23d   :  { %1266 = vmatpush1.bf16.msra.mxu1 %v5960_v27  ;;  %v5931_v27 = vcombine.high %v440_v21, %v448_v22 }
 0x23e   :  { %1333 = vmatprep.subr.bf16.mxu1 %v5853_v37  ;;  %v5949_v37 = vcombine.high %v457_v31, %v465_v32 }
 0x2c4   :  { %v330_v39 = vpop.xlane.xlu0 %329 }
 0x2c5   :  { %v331_v40 = vmul.f32 0.03125, %v330_v39  ;;  %v472_v39 = vld [vmem:[#allocation8 + $0x390] sm:$0xff] }
 0x2c7   :  { %v336_v42 = vmul.f32 %v331_v40, %v331_v40  ;;  %v339_v47 = vsub.f32 %v7545_v33, %v331_v40  ;;  %v480_v40 = vld [vmem:[#allocation8 + $0x3d0] sm:$0xff] }
 0x2c8   :  { %v334_v41 = vpop.xlane.xlu0 %333 }
 0x2c9   :  { %v335_v43 = vmul.f32 0.03125, %v334_v41  ;;  %v473_v41 = vld [vmem:[#allocation8 + $0x398] sm:$0xff] }
 0x2cb   :  { %v337_v44 = vsub.f32 %v335_v43, %v336_v42  ;;  %v481_v42 = vld [vmem:[#allocation8 + $0x3d8] sm:$0xff]  ;;  %v5946_v43 = vcombine.low %v456_v29, %v464_v30 }
 0x2cd   :  { %v338_v45 = vmax.f32 %v337_v44, 0.0  ;;  %v5948_v44 = vcombine.low %v457_v31, %v465_v32 }
 0x2cf   :  { %v340_v46 = vadd.f32 1e-05, %v338_v45  ;;  %v5963_v45 = vcombine.high %v472_v39, %v480_v40 }
 0x2d1   :  { %7138 = vrsqrt.f32 %v340_v46  ;;  %v5965_v46 = vcombine.high %v473_v41, %v481_v42 }
 0x2db   :  { %v7139_v48 = vpop.eup %7138 }
 0x2dc   :  { %v342_v50 = vmul.f32 %v7139_v48, %v339_v47  ;;  %v362_v47 = vld [vmem:[#allocation8 + $0x20] sm:$0xff] }
 0x2dd   :  { %v370_v48 = vld [vmem:[#allocation8 + $0x60] sm:$0xff] }
 0x2de   :  { %v349_v52 = vmul.f32 %v5844_v49, %v342_v50  ;;  %v363_v49 = vld [vmem:[#allocation8 + $0x28] sm:$0xff]  ;;  %v5855_v53 = vcombine.high %v362_v47, %v370_v48  ;;  %v5854_v60 = vcombine.low %v362_v47, %v370_v48 }
 0x2df   :  { %v371_v50 = vld [vmem:[#allocation8 + $0x68] sm:$0xff] }
 0x2e0   :  { %v7559_v57 = vadd.f32 %v5845_v51, %v349_v52  ;;  %v5962_v51 = vcombine.low %v472_v39, %v480_v40  ;;  %v5964_v52 = vcombine.low %v473_v41, %v481_v42  ;;  %v5857_v54 = vcombine.high %v363_v49, %v371_v50 }
 0x2e1   :  { %v5856_v61 = vcombine.low %v363_v49, %v371_v50 }
 0x2e2   :  { %v7563_v33 = vpack.c.bf16 %v7559_v57, %v7559_v57 }
 0x2e4   :  { %1243 = vmatmul.mubr.bf16.vlgmr.msra.gmra.mrb[4].mxu0 %v7563_v33  ;;  %1284 = vmatmul.mubr.bf16.vlgmr.msra.gmra.mrb[4].mxu1 %v7563_v33 }
 0x2e5   :  { %1293 = vmatpush1.bf16.msra.mxu0 %v5850_v35  ;;  %1334 = vmatpush1.bf16.msra.mxu1 %v5852_v36  ;;  %v5932_v35 = vcombine.low %v441_v23, %v449_v24  ;;  %v5947_v36 = vcombine.high %v456_v29, %v464_v30 }
 0x2e6   :  { %1294 = vmatprep.subr.bf16.mxu0 %v5867_v58  ;;  %1335 = vmatprep.subr.bf16.mxu1 %v5869_v59  ;;  %v379_v58 = vld [vmem:[#allocation8 + $0xa8] sm:$0xff] }
 0x2e7   :  { %1324 = vmatprep.mubr.bf16.mxu0 %v7346_v38  ;;  %1365 = vmatprep.mubr.bf16.mxu1 %v7346_v38  ;;  %v387_v59 = vld [vmem:[#allocation8 + $0xe8] sm:$0xff] }
 0x2e8   :  { %v5873_v63 = vcombine.high %v379_v58, %v387_v59  ;;  %v5872_v6 = vcombine.low %v379_v58, %v387_v59 }
 0x2e9   :  { %1295 = vmatpush1.bf16.msra.mxu0 %v5866_v1  ;;  %1336 = vmatpush1.bf16.msra.mxu1 %v5868_v2  ;;  %v394_v1 = vld [vmem:[#allocation8 + $0x120] sm:$0xff] }
 0x2ea   :  { %1296 = vmatprep.subr.bf16.mxu0 %v5883_v3  ;;  %1337 = vmatprep.subr.bf16.mxu1 %v5885_v4  ;;  %v402_v2 = vld [vmem:[#allocation8 + $0x160] sm:$0xff]  ;;  %v395_v3 = vld [vmem:[#allocation8 + $0x128] sm:$0xff] }
 0x2eb   :  { %v403_v4 = vld [vmem:[#allocation8 + $0x168] sm:$0xff]  ;;  %v5887_v7 = vcombine.high %v394_v1, %v402_v2  ;;  %v5886_v13 = vcombine.low %v394_v1, %v402_v2 }
 0x2ec   :  { %v5889_v8 = vcombine.high %v395_v3, %v403_v4  ;;  %v5888_v14 = vcombine.low %v395_v3, %v403_v4 }
 0x2ed   :  { %1297 = vmatpush1.bf16.msra.mxu0 %v5882_v9  ;;  %1338 = vmatpush1.bf16.msra.mxu1 %v5884_v10  ;;  %v410_v9 = vld [vmem:[#allocation8 + $0x1a0] sm:$0xff] }
 0x2ee   :  { %1298 = vmatprep.subr.bf16.mxu0 %v5899_v11  ;;  %1339 = vmatprep.subr.bf16.mxu1 %v5901_v12  ;;  %v418_v10 = vld [vmem:[#allocation8 + $0x1e0] sm:$0xff]  ;;  %v411_v11 = vld [vmem:[#allocation8 + $0x1a8] sm:$0xff] }
 0x2ef   :  { %v419_v12 = vld [vmem:[#allocation8 + $0x1e8] sm:$0xff]  ;;  %v5903_v15 = vcombine.high %v410_v9, %v418_v10  ;;  %v5902_v21 = vcombine.low %v410_v9, %v418_v10 }
 0x2f0   :  { %v5905_v16 = vcombine.high %v411_v11, %v419_v12  ;;  %v5904_v22 = vcombine.low %v411_v11, %v419_v12 }
 0x2f1   :  { %1299 = vmatpush1.bf16.msra.mxu0 %v5898_v17  ;;  %1340 = vmatpush1.bf16.msra.mxu1 %v5900_v18  ;;  %v426_v17 = vld [vmem:[#allocation8 + $0x220] sm:$0xff] }
 0x2f2   :  { %1300 = vmatprep.subr.bf16.mxu0 %v5915_v19  ;;  %1341 = vmatprep.subr.bf16.mxu1 %v5917_v20  ;;  %v434_v18 = vld [vmem:[#allocation8 + $0x260] sm:$0xff]  ;;  %v427_v19 = vld [vmem:[#allocation8 + $0x228] sm:$0xff] }
 0x2f3   :  { %v435_v20 = vld [vmem:[#allocation8 + $0x268] sm:$0xff]  ;;  %v5919_v23 = vcombine.high %v426_v17, %v434_v18  ;;  %v5918_v29 = vcombine.low %v426_v17, %v434_v18 }
 0x2f4   :  { %v5921_v24 = vcombine.high %v427_v19, %v435_v20  ;;  %v5920_v30 = vcombine.low %v427_v19, %v435_v20 }
 0x2f5   :  { %1301 = vmatpush1.bf16.msra.mxu0 %v5914_v25  ;;  %1342 = vmatpush1.bf16.msra.mxu1 %v5916_v26  ;;  %v442_v25 = vld [vmem:[#allocation8 + $0x2a0] sm:$0xff] }
 0x2f6   :  { %1302 = vmatprep.subr.bf16.mxu0 %v5931_v27  ;;  %1343 = vmatprep.subr.bf16.mxu1 %v5933_v28  ;;  %v450_v26 = vld [vmem:[#allocation8 + $0x2e0] sm:$0xff]  ;;  %v443_v27 = vld [vmem:[#allocation8 + $0x2a8] sm:$0xff] }
 0x2f7   :  { %v451_v28 = vld [vmem:[#allocation8 + $0x2e8] sm:$0xff]  ;;  %v5935_v31 = vcombine.high %v442_v25, %v450_v26  ;;  %v5934_v39 = vcombine.low %v442_v25, %v450_v26 }
 0x2f8   :  { %v5937_v32 = vcombine.high %v443_v27, %v451_v28  ;;  %v5936_v40 = vcombine.low %v443_v27, %v451_v28 }
 0x2f9   :  { %1303 = vmatpush1.bf16.msra.mxu0 %v5930_v34  ;;  %1344 = vmatpush1.bf16.msra.mxu1 %v5932_v35  ;;  %v458_v34 = vld [vmem:[#allocation8 + $0x320] sm:$0xff] }
 0x2fa   :  { %1304 = vmatprep.subr.bf16.mxu0 %v5947_v36  ;;  %1345 = vmatprep.subr.bf16.mxu1 %v5949_v37  ;;  %v466_v35 = vld [vmem:[#allocation8 + $0x360] sm:$0xff]  ;;  %v459_v36 = vld [vmem:[#allocation8 + $0x328] sm:$0xff] }
 0x2fb   :  { %v467_v37 = vld [vmem:[#allocation8 + $0x368] sm:$0xff]  ;;  %v5951_v41 = vcombine.high %v458_v34, %v466_v35  ;;  %v5950_v47 = vcombine.low %v458_v34, %v466_v35 }
 0x2fc   :  { %v5953_v42 = vcombine.high %v459_v36, %v467_v37  ;;  %v5952_v48 = vcombine.low %v459_v36, %v467_v37 }
 0x2fd   :  { %1305 = vmatpush1.bf16.msra.mxu0 %v5946_v43  ;;  %1346 = vmatpush1.bf16.msra.mxu1 %v5948_v44  ;;  %v474_v43 = vld [vmem:[#allocation8 + $0x3a0] sm:$0xff] }
 0x2fe   :  { %1306 = vmatprep.subr.bf16.mxu0 %v5963_v45  ;;  %1347 = vmatprep.subr.bf16.mxu1 %v5965_v46  ;;  %v482_v44 = vld [vmem:[#allocation8 + $0x3e0] sm:$0xff]  ;;  %v475_v45 = vld [vmem:[#allocation8 + $0x3a8] sm:$0xff] }
 0x2ff   :  { %v483_v46 = vld [vmem:[#allocation8 + $0x3e8] sm:$0xff]  ;;  %v5967_v49 = vcombine.high %v474_v43, %v482_v44  ;;  %v5966_v55 = vcombine.low %v474_v43, %v482_v44 }
 0x300   :  { %v5969_v50 = vcombine.high %v475_v45, %v483_v46  ;;  %v5968_v56 = vcombine.low %v475_v45, %v483_v46 }
 0x301   :  { %1307 = vmatpush1.bf16.msra.mxu0 %v5962_v51  ;;  %1348 = vmatpush1.bf16.msra.mxu1 %v5964_v52  ;;  %v364_v51 = vld [vmem:[#allocation8 + $0x30] sm:$0xff] }
 0x302   :  { %1374 = vmatprep.subr.bf16.mxu0 %v5855_v53  ;;  %1415 = vmatprep.subr.bf16.mxu1 %v5857_v54  ;;  %v372_v52 = vld [vmem:[#allocation8 + $0x70] sm:$0xff]  ;;  %v365_v53 = vld [vmem:[#allocation8 + $0x38] sm:$0xff] }
 0x303   :  { %v373_v54 = vld [vmem:[#allocation8 + $0x78] sm:$0xff]  ;;  %v5859_v58 = vcombine.high %v364_v51, %v372_v52  ;;  %v5858_v1 = vcombine.low %v364_v51, %v372_v52 }
 0x304   :  { %1325 = vmatmul.mubr.bf16.vlgmr.msra.gmra.mrb[8].mxu0 %v7563_v33  ;;  %1366 = vmatmul.mubr.bf16.vlgmr.msra.gmra.mrb[8].mxu1 %v7563_v33  ;;  %v5861_v59 = vcombine.high %v365_v53, %v373_v54  ;;  %v5860_v2 = vcombine.low %v365_v53, %v373_v54 }
 0x305   :  { %1375 = vmatpush1.bf16.msra.mxu0 %v5854_v60  ;;  %1416 = vmatpush1.bf16.msra.mxu1 %v5856_v61  ;;  %v380_v60 = vld [vmem:[#allocation8 + $0xb0] sm:$0xff] }
 0x306   :  { %1376 = vmatprep.subr.bf16.mxu0 %v5871_v62  ;;  %1417 = vmatprep.subr.bf16.mxu1 %v5873_v63  ;;  %v388_v61 = vld [vmem:[#allocation8 + $0xf0] sm:$0xff]  ;;  %v381_v62 = vld [vmem:[#allocation8 + $0xb8] sm:$0xff] }
 0x307   :  { %1406 = vmatprep.mubr.bf16.mxu0 %v7346_v38  ;;  %1447 = vmatprep.mubr.bf16.mxu1 %v7346_v38  ;;  %v389_v63 = vld [vmem:[#allocation8 + $0xf8] sm:$0xff]  ;;  %v5875_v3 = vcombine.high %v380_v60, %v388_v61  ;;  %v5874_v9 = vcombine.low %v380_v60, %v388_v61  ;;  %v6868_v60 = vld [vmem:[#allocation11] sm:$0xff]  }
 0x308   :  { %v5877_v4 = vcombine.high %v381_v62, %v389_v63  ;;  %v5876_v10 = vcombine.low %v381_v62, %v389_v63  ;;  %v6869_v61 = vld [vmem:[#allocation11 + $0x80] sm:$0xff]   ;;  %v6870_v62 = vld [vmem:[#allocation11 + $0x48] sm:$0xff]  }
 0x309   :  { %1377 = vmatpush1.bf16.msra.mxu0 %v5870_v5  ;;  %1418 = vmatpush1.bf16.msra.mxu1 %v5872_v6  ;;  %v396_v5 = vld [vmem:[#allocation8 + $0x130] sm:$0xff]  ;;  %v6871_v63 = vld [vmem:[#allocation11 + $0xc8] sm:$0xff]  }
 0x30a   :  { %1378 = vmatprep.subr.bf16.mxu0 %v5887_v7  ;;  %1419 = vmatprep.subr.bf16.mxu1 %v5889_v8  ;;  %v404_v6 = vld [vmem:[#allocation8 + $0x170] sm:$0xff]  ;;  %v397_v7 = vld [vmem:[#allocation8 + $0x138] sm:$0xff] }
 0x30b   :  { %v405_v8 = vld [vmem:[#allocation8 + $0x178] sm:$0xff]  ;;  %v5891_v11 = vcombine.high %v396_v5, %v404_v6  ;;  %v5890_v17 = vcombine.low %v396_v5, %v404_v6  ;;  %v6876_v5 = vld [vmem:[#allocation11 + $0x10] sm:$0xff]  }
 0x30c   :  { %v5893_v12 = vcombine.high %v397_v7, %v405_v8  ;;  %v5892_v18 = vcombine.low %v397_v7, %v405_v8  ;;  %v6877_v6 = vld [vmem:[#allocation11 + $0x90] sm:$0xff]   ;;  %v6878_v7 = vld [vmem:[#allocation11 + $0x58] sm:$0xff]  }
 0x30d   :  { %1379 = vmatpush1.bf16.msra.mxu0 %v5886_v13  ;;  %1420 = vmatpush1.bf16.msra.mxu1 %v5888_v14  ;;  %v412_v13 = vld [vmem:[#allocation8 + $0x1b0] sm:$0xff]  ;;  %v6879_v8 = vld [vmem:[#allocation11 + $0xd8] sm:$0xff]  }
 0x30e   :  { %1380 = vmatprep.subr.bf16.mxu0 %v5903_v15  ;;  %1421 = vmatprep.subr.bf16.mxu1 %v5905_v16  ;;  %v420_v14 = vld [vmem:[#allocation8 + $0x1f0] sm:$0xff]  ;;  %v413_v15 = vld [vmem:[#allocation8 + $0x1b8] sm:$0xff] }
 0x30f   :  { %v421_v16 = vld [vmem:[#allocation8 + $0x1f8] sm:$0xff]  ;;  %v5907_v19 = vcombine.high %v412_v13, %v420_v14  ;;  %v5906_v25 = vcombine.low %v412_v13, %v420_v14  ;;  %v6885_v13 = vld [vmem:[#allocation11 + $0xa0] sm:$0xff]   ;;  %v6886_v14 = vld [vmem:[#allocation11 + $0x68] sm:$0xff]  }
 0x310   :  { %v5909_v20 = vcombine.high %v413_v15, %v421_v16  ;;  %v5908_v26 = vcombine.low %v413_v15, %v421_v16  ;;  %v6887_v15 = vld [vmem:[#allocation11 + $0xe8] sm:$0xff]  }
 0x311   :  { %1381 = vmatpush1.bf16.msra.mxu0 %v5902_v21  ;;  %1422 = vmatpush1.bf16.msra.mxu1 %v5904_v22  ;;  %v428_v21 = vld [vmem:[#allocation8 + $0x230] sm:$0xff]  ;;  %v6888_v16 = vld [vmem:[#allocation11 + $0x28] sm:$0xff]  }
 0x312   :  { %1382 = vmatprep.subr.bf16.mxu0 %v5919_v23  ;;  %1423 = vmatprep.subr.bf16.mxu1 %v5921_v24  ;;  %v436_v22 = vld [vmem:[#allocation8 + $0x270] sm:$0xff]  ;;  %v429_v23 = vld [vmem:[#allocation8 + $0x238] sm:$0xff] }
 0x313   :  { %v437_v24 = vld [vmem:[#allocation8 + $0x278] sm:$0xff]  ;;  %v5923_v27 = vcombine.high %v428_v21, %v436_v22  ;;  %v5922_v34 = vcombine.low %v428_v21, %v436_v22  ;;  %v6893_v21 = vld [vmem:[#allocation11 + $0xb0] sm:$0xff]  }
 0x314   :  { %v5925_v28 = vcombine.high %v429_v23, %v437_v24  ;;  %v5924_v35 = vcombine.low %v429_v23, %v437_v24  ;;  %v6894_v22 = vld [vmem:[#allocation11 + $0x78] sm:$0xff]  }
 0x315   :  { %1383 = vmatpush1.bf16.msra.mxu0 %v5918_v29  ;;  %1424 = vmatpush1.bf16.msra.mxu1 %v5920_v30  ;;  %v444_v29 = vld [vmem:[#allocation8 + $0x2b0] sm:$0xff]  ;;  %v6895_v23 = vld [vmem:[#allocation11 + $0xf8] sm:$0xff]  }
 0x316   :  { %1384 = vmatprep.subr.bf16.mxu0 %v5935_v31  ;;  %1425 = vmatprep.subr.bf16.mxu1 %v5937_v32  ;;  %v452_v30 = vld [vmem:[#allocation8 + $0x2f0] sm:$0xff]  ;;  %v445_v31 = vld [vmem:[#allocation8 + $0x2b8] sm:$0xff] }
 0x317   :  { %v453_v32 = vld [vmem:[#allocation8 + $0x2f8] sm:$0xff]  ;;  %v5939_v36 = vcombine.high %v444_v29, %v452_v30  ;;  %v5938_v43 = vcombine.low %v444_v29, %v452_v30 }
 0x318   :  { %v5941_v37 = vcombine.high %v445_v31, %v453_v32  ;;  %v5940_v44 = vcombine.low %v445_v31, %v453_v32  ;;  %v6896_v24 = vld [vmem:[#allocation11 + $0x38] sm:$0xff]   ;;  %v7587_v32 = vld [vmem:[#allocation10] sm:$0xff] }
 0x319   :  { %1385 = vmatpush1.bf16.msra.mxu0 %v5934_v39  ;;  %1426 = vmatpush1.bf16.msra.mxu1 %v5936_v40  ;;  %v460_v39 = vld [vmem:[#allocation8 + $0x330] sm:$0xff] }
 0x31a   :  { %1386 = vmatprep.subr.bf16.mxu0 %v5951_v41  ;;  %1427 = vmatprep.subr.bf16.mxu1 %v5953_v42  ;;  %v468_v40 = vld [vmem:[#allocation8 + $0x370] sm:$0xff]  ;;  %v461_v41 = vld [vmem:[#allocation8 + $0x338] sm:$0xff] }
 0x31b   :  { %v469_v42 = vld [vmem:[#allocation8 + $0x378] sm:$0xff]  ;;  %v5955_v45 = vcombine.high %v460_v39, %v468_v40  ;;  %v5954_v51 = vcombine.low %v460_v39, %v468_v40 }
 0x31c   :  { %v5957_v46 = vcombine.high %v461_v41, %v469_v42  ;;  %v5956_v52 = vcombine.low %v461_v41, %v469_v42 }
 0x31d   :  { %1387 = vmatpush1.bf16.msra.mxu0 %v5950_v47  ;;  %1428 = vmatpush1.bf16.msra.mxu1 %v5952_v48  ;;  %v476_v47 = vld [vmem:[#allocation8 + $0x3b0] sm:$0xff] }
 0x31e   :  { %1388 = vmatprep.subr.bf16.mxu0 %v5967_v49  ;;  %1429 = vmatprep.subr.bf16.mxu1 %v5969_v50  ;;  %v484_v48 = vld [vmem:[#allocation8 + $0x3f0] sm:$0xff]  ;;  %v477_v49 = vld [vmem:[#allocation8 + $0x3b8] sm:$0xff] }
 0x31f   :  { %v485_v50 = vld [vmem:[#allocation8 + $0x3f8] sm:$0xff]  ;;  %v5971_v53 = vcombine.high %v476_v47, %v484_v48 }
 0x320   :  { %v5973_v54 = vcombine.high %v477_v49, %v485_v50 }
 0x321   :  { %1389 = vmatpush1.bf16.msra.mxu0 %v5966_v55  ;;  %1430 = vmatpush1.bf16.msra.mxu1 %v5968_v56  ;;  %v5970_v55 = vcombine.low %v476_v47, %v484_v48  ;;  %v5972_v56 = vcombine.low %v477_v49, %v485_v50 }
 0x322   :  { %1456 = vmatprep.subr.bf16.mxu0 %v5859_v58  ;;  %1497 = vmatprep.subr.bf16.mxu1 %v5861_v59  ;;  %v6866_v58 = vld [vmem:[#allocation11 + $0x40] sm:$0xff]  }
 0x323   :  { %v6867_v59 = vld [vmem:[#allocation11 + $0xc0] sm:$0xff]  }
 0x324   :  { %1407 = vmatmul.mubr.bf16.vlgmr.msra.gmra.mrb[12].mxu0 %v7563_v33  ;;  %1448 = vmatmul.mubr.bf16.vlgmr.msra.gmra.mrb[12].mxu1 %v7563_v33 }
 0x325   :  { %1457 = vmatpush1.bf16.msra.mxu0 %v5858_v1  ;;  %1498 = vmatpush1.bf16.msra.mxu1 %v5860_v2  ;;  %v6872_v1 = vld [vmem:[#allocation11 + $0x8] sm:$0xff]  }
 0x326   :  { %1458 = vmatprep.subr.bf16.mxu0 %v5875_v3  ;;  %1499 = vmatprep.subr.bf16.mxu1 %v5877_v4  ;;  %v6873_v2 = vld [vmem:[#allocation11 + $0x88] sm:$0xff]   ;;  %v6874_v3 = vld [vmem:[#allocation11 + $0x50] sm:$0xff]  }
 0x327   :  { %1488 = vmatprep.mubr.bf16.mxu0 %v7346_v38  ;;  %1529 = vmatprep.mubr.bf16.mxu1 %v7346_v38  ;;  %v6875_v4 = vld [vmem:[#allocation11 + $0xd0] sm:$0xff]  }
 0x329   :  { %1459 = vmatpush1.bf16.msra.mxu0 %v5874_v9  ;;  %1500 = vmatpush1.bf16.msra.mxu1 %v5876_v10  ;;  %v6880_v9 = vld [vmem:[#allocation11 + $0x18] sm:$0xff]   ;;  %v6882_v10 = vld [vmem:[#allocation11 + $0x60] sm:$0xff]  }
 0x32a   :  { %1460 = vmatprep.subr.bf16.mxu0 %v5891_v11  ;;  %1501 = vmatprep.subr.bf16.mxu1 %v5893_v12  ;;  %v6883_v11 = vld [vmem:[#allocation11 + $0xe0] sm:$0xff]  }
 0x32b   :  { %v6884_v12 = vld [vmem:[#allocation11 + $0x20] sm:$0xff]  }
 0x32d   :  { %1461 = vmatpush1.bf16.msra.mxu0 %v5890_v17  ;;  %1502 = vmatpush1.bf16.msra.mxu1 %v5892_v18  ;;  %v6889_v17 = vld [vmem:[#allocation11 + $0xa8] sm:$0xff]   ;;  %v6890_v18 = vld [vmem:[#allocation11 + $0x70] sm:$0xff]  }
 0x32e   :  { %1462 = vmatprep.subr.bf16.mxu0 %v5907_v19  ;;  %1503 = vmatprep.subr.bf16.mxu1 %v5909_v20  ;;  %v6891_v19 = vld [vmem:[#allocation11 + $0xf0] sm:$0xff]  }
 0x32f   :  { %v6892_v20 = vld [vmem:[#allocation11 + $0x30] sm:$0xff]  }
 0x331   :  { %1463 = vmatpush1.bf16.msra.mxu0 %v5906_v25  ;;  %1504 = vmatpush1.bf16.msra.mxu1 %v5908_v26  ;;  %v6897_v25 = vld [vmem:[#allocation11 + $0xb8] sm:$0xff]   ;;  %v6898_v26 = vld [vmem:[#allocation11 + $0x140] sm:$0xff]  }
 0x332   :  { %1464 = vmatprep.subr.bf16.mxu0 %v5923_v27  ;;  %1505 = vmatprep.subr.bf16.mxu1 %v5925_v28  ;;  %v6899_v27 = vld [vmem:[#allocation11 + $0x1c0] sm:$0xff]   ;;  %v490_v28 = vlaneseq }
 0x334   :  { %v7579_v29 = vshrl.u32 %v490_v28, 7 }
 0x335   :  { %1465 = vmatpush1.bf16.msra.mxu0 %v5922_v34  ;;  %1506 = vmatpush1.bf16.msra.mxu1 %v5924_v35 }
 0x336   :  { %1466 = vmatprep.subr.bf16.mxu0 %v5939_v36  ;;  %1507 = vmatprep.subr.bf16.mxu1 %v5941_v37  ;;  %v7582_v30 = vsub.s32 0, %v7579_v29  ;;  %v7585_v31 = vsub.s32 2, %v7579_v29  ;;  %v7590_v34 = vsub.s32 1, %v7579_v29  ;;  %v7593_v35 = vsub.s32 3, %v7579_v29 }
 0x338   :  { %v493_v36 = vrot.slane %v7587_v32, %v7582_v30  ;;  %v501_v37 = vrot.slane %v7587_v32, %v7585_v31  ;;  %v497_v39 = vrot.slane %v7587_v32, %v7590_v34  ;;  %v505_v40 = vrot.slane %v7587_v32, %v7593_v35 }
 0x339   :  { %1467 = vmatpush1.bf16.msra.mxu0 %v5938_v43  ;;  %1508 = vmatpush1.bf16.msra.mxu1 %v5940_v44 }
 0x33a   :  { %1468 = vmatprep.subr.bf16.mxu0 %v5955_v45  ;;  %1509 = vmatprep.subr.bf16.mxu1 %v5957_v46 }
 0x33d   :  { %1469 = vmatpush1.bf16.msra.mxu0 %v5954_v51  ;;  %1510 = vmatpush1.bf16.msra.mxu1 %v5956_v52 }
 0x33e   :  { %1470 = vmatprep.subr.bf16.mxu0 %v5971_v53  ;;  %1511 = vmatprep.subr.bf16.mxu1 %v5973_v54 }
 0x341   :  { %1471 = vmatpush1.bf16.msra.mxu0 %v5970_v55  ;;  %1512 = vmatpush1.bf16.msra.mxu1 %v5972_v56 }
 0x342   :  { %6402 = vmatprep.subr.bf16.mxu0 %v6866_v58  ;;  %6424 = vmatprep.subr.bf16.mxu1 %v6867_v59 }
 0x344   :  { %1489 = vmatmul.mubr.bf16.vlgmr.msra.gmra.mrb[16].mxu0 %v7563_v33  ;;  %1530 = vmatmul.mubr.bf16.vlgmr.msra.gmra.mrb[16].mxu1 %v7563_v33  ;;  %v6881_v33 = vld [vmem:[#allocation11 + $0x98] sm:$0xff]  }
 0x345   :  { %6403 = vmatpush3.bf16.msra.mxu0 %v6868_v60  ;;  %6425 = vmatpush3.bf16.msra.mxu1 %v6869_v61  ;;  %v6900_v60 = vld [vmem:[#allocation11 + $0x100] sm:$0xff]  }
 0x346   :  { %6404 = vmatprep.subr.bf16.mxu0 %v6870_v62  ;;  %6426 = vmatprep.subr.bf16.mxu1 %v6871_v63  ;;  %v6901_v61 = vld [vmem:[#allocation11 + $0x180] sm:$0xff]  }
 0x349   :  { %6405 = vmatpush3.bf16.msra.mxu0 %v6872_v1  ;;  %6427 = vmatpush3.bf16.msra.mxu1 %v6873_v2  ;;  %v6902_v1 = vld [vmem:[#allocation11 + $0x148] sm:$0xff]  }
 0x34a   :  { %6406 = vmatprep.subr.bf16.mxu0 %v6874_v3  ;;  %6428 = vmatprep.subr.bf16.mxu1 %v6875_v4  ;;  %v6903_v2 = vld [vmem:[#allocation11 + $0x1c8] sm:$0xff]  }
 0x34b   :  { %v6904_v3 = vld [vmem:[#allocation11 + $0x108] sm:$0xff]  }
 0x34c   :  { %v6905_v4 = vld [vmem:[#allocation11 + $0x188] sm:$0xff]  }
 0x34d   :  { %6407 = vmatpush3.bf16.msra.mxu0 %v6876_v5  ;;  %6429 = vmatpush3.bf16.msra.mxu1 %v6877_v6  ;;  %v6906_v5 = vld [vmem:[#allocation11 + $0x150] sm:$0xff]  }
 0x34e   :  { %6408 = vmatprep.subr.bf16.mxu0 %v6878_v7  ;;  %6430 = vmatprep.subr.bf16.mxu1 %v6879_v8  ;;  %v6907_v6 = vld [vmem:[#allocation11 + $0x1d0] sm:$0xff]  }
 0x34f   :  { %v6908_v7 = vld [vmem:[#allocation11 + $0x110] sm:$0xff]  }
 0x350   :  { %v6909_v8 = vld [vmem:[#allocation11 + $0x190] sm:$0xff]  }
 0x351   :  { %6409 = vmatpush3.bf16.msra.mxu0 %v6880_v9  ;;  %6431 = vmatpush3.bf16.msra.mxu1 %v6881_v33  ;;  %v6910_v9 = vld [vmem:[#allocation11 + $0x158] sm:$0xff]  }
 0x352   :  { %6410 = vmatprep.subr.bf16.mxu0 %v6882_v10  ;;  %6432 = vmatprep.subr.bf16.mxu1 %v6883_v11  ;;  %v6911_v33 = vld [vmem:[#allocation11 + $0x1d8] sm:$0xff]  }
 0x353   :  { %v6912_v10 = vld [vmem:[#allocation11 + $0x118] sm:$0xff]  }
 0x354   :  { %v6913_v11 = vld [vmem:[#allocation11 + $0x198] sm:$0xff]  }
 0x355   :  { %6411 = vmatpush3.bf16.msra.mxu0 %v6884_v12  ;;  %6433 = vmatpush3.bf16.msra.mxu1 %v6885_v13  ;;  %v6914_v12 = vld [vmem:[#allocation11 + $0x160] sm:$0xff]  }
 0x356   :  { %6412 = vmatprep.subr.bf16.mxu0 %v6886_v14  ;;  %6434 = vmatprep.subr.bf16.mxu1 %v6887_v15  ;;  %v6915_v13 = vld [vmem:[#allocation11 + $0x1e0] sm:$0xff]  }
 0x357   :  { %v6916_v14 = vld [vmem:[#allocation11 + $0x120] sm:$0xff]  }
 0x358   :  { %v6917_v15 = vld [vmem:[#allocation11 + $0x1a0] sm:$0xff]  }
 0x359   :  { %6413 = vmatpush3.bf16.msra.mxu0 %v6888_v16  ;;  %6435 = vmatpush3.bf16.msra.mxu1 %v6889_v17  ;;  %v6918_v16 = vld [vmem:[#allocation11 + $0x168] sm:$0xff]  }
 0x35a   :  { %6414 = vmatprep.subr.bf16.mxu0 %v6890_v18  ;;  %6436 = vmatprep.subr.bf16.mxu1 %v6891_v19  ;;  %v6919_v17 = vld [vmem:[#allocation11 + $0x1e8] sm:$0xff]   ;;  %v7604_v18 = vsub.s32 4, %v7579_v29  ;;  %v7607_v19 = vsub.s32 6, %v7579_v29 }
 0x35d   :  { %6415 = vmatpush3.bf16.msra.mxu0 %v6892_v20  ;;  %6437 = vmatpush3.bf16.msra.mxu1 %v6893_v21  ;;  %v6920_v20 = vld [vmem:[#allocation11 + $0x128] sm:$0xff]  }
 0x35e   :  { %6416 = vmatprep.subr.bf16.mxu0 %v6894_v22  ;;  %6438 = vmatprep.subr.bf16.mxu1 %v6895_v23  ;;  %v6921_v21 = vld [vmem:[#allocation11 + $0x1a8] sm:$0xff]   ;;  %v7610_v22 = vsub.s32 5, %v7579_v29  ;;  %v7613_v23 = vsub.s32 7, %v7579_v29  ;;  %v6924_v29 = vld [vmem:[#allocation11 + $0x130] sm:$0xff]  }
 0x360   :  { %v513_v28 = vrot.slane %v7587_v32, %v7610_v22 }
 0x361   :  { %6417 = vmatpush3.bf16.msra.mxu0 %v6896_v24  ;;  %6439 = vmatpush3.bf16.msra.mxu1 %v6897_v25  ;;  %v6922_v24 = vld [vmem:[#allocation11 + $0x170] sm:$0xff]  }
 0x362   :  { %6446 = vmatprep.subr.bf16.mxu0 %v6898_v26  ;;  %6468 = vmatprep.subr.bf16.mxu1 %v6899_v27  ;;  %v6923_v25 = vld [vmem:[#allocation11 + $0x1f0] sm:$0xff]   ;;  %v509_v26 = vrot.slane %v7587_v32, %v7604_v18  ;;  %v517_v27 = vrot.slane %v7587_v32, %v7607_v19 }
 0x3b7   :  { %v1244_v41 = vpop.f32.mrb[4].mxu0  ;;  %v1285_v42 = vpop.f32.mrb[4].mxu1 }
 0x3b8   :  { %v1245_v43 = vadd.f32 %v1244_v41, %v493_v36  ;;  %v1286_v44 = vadd.f32 %v1285_v42, %v501_v37  ;;  %v1246_v45 = vpop.f32.mrb[5].mxu0  ;;  %v1287_v46 = vpop.f32.mrb[5].mxu1  ;;  %v521_v36 = vrot.slane %v7587_v32, %v7613_v23  ;;  %v6925_v37 = vld [vmem:[#allocation11 + $0x1b0] sm:$0xff]   ;;  %v6929_v32 = vld [vmem:[#allocation11 + $0x1b8] sm:$0xff]  }
 0x3b9   :  { %v1247_v47 = vadd.f32 %v1246_v45, %v497_v39  ;;  %v1288_v48 = vadd.f32 %v1287_v46, %v505_v40  ;;  %v1248_v49 = vpop.f32.mrb[6].mxu0  ;;  %v1289_v50 = vpop.f32.mrb[6].mxu1  ;;  %v6926_v39 = vld [vmem:[#allocation11 + $0x178] sm:$0xff]  }
 0x3ba   :  { %v1538_v51 = vmax.f32 %v1245_v43, 0.0  ;;  %v1540_v52 = vmax.f32 %v1286_v44, 0.0  ;;  %v1249_v53 = vpop.f32.mrb[7].mxu0  ;;  %v1290_v54 = vpop.f32.mrb[7].mxu1  ;;  %v6927_v40 = vld [vmem:[#allocation11 + $0x1f8] sm:$0xff]  }
 0x3bb   :  { %v1539_v55 = vmax.f32 %v1247_v47, 0.0  ;;  %v1541_v56 = vmax.f32 %v1288_v48, 0.0 }
 0x3bc   :  { %v1554_v62 = vpack.c.bf16 %v1538_v51, %v1538_v51  ;;  %v1556_v63 = vpack.c.bf16 %v1540_v52, %v1540_v52  ;;  %v6928_v51 = vld [vmem:[#allocation11 + $0x138] sm:$0xff]  }
 0x3bd   :  { %v1555_v58 = vpack.c.bf16 %v1539_v55, %v1539_v55  ;;  %v1557_v59 = vpack.c.bf16 %v1541_v56, %v1541_v56  ;;  %v6930_v56 = vld [vmem:[#allocation11 + $0x240] sm:$0xff]  }
 0x3bf   :  { %2633 = vmatprep.mubr.bf16.mxu0 %v1555_v58  ;;  %2673 = vmatprep.mubr.bf16.mxu1 %v1557_v59  ;;  %v6931_v58 = vld [vmem:[#allocation11 + $0x2c0] sm:$0xff]  }
 0x3c0   :  { %2634 = vmatmul.mubr.bf16.vlgmr.msra.gmra.mrb[20].mxu0 %v1554_v62  ;;  %2674 = vmatmul.mubr.bf16.vlgmr.msra.gmra.mrb[20].mxu1 %v1556_v63  ;;  %v6932_v63 = vld [vmem:[#allocation11 + $0x200] sm:$0xff]  }
 0x3c1   :  { %6447 = vmatpush3.bf16.msra.mxu0 %v6900_v60  ;;  %6469 = vmatpush3.bf16.msra.mxu1 %v6901_v61 }
 0x3c2   :  { %6448 = vmatprep.subr.bf16.mxu0 %v6902_v1  ;;  %6470 = vmatprep.subr.bf16.mxu1 %v6903_v2  ;;  %v6933_v1 = vld [vmem:[#allocation11 + $0x280] sm:$0xff]  }
 0x3c5   :  { %6449 = vmatpush3.bf16.msra.mxu0 %v6904_v3  ;;  %6471 = vmatpush3.bf16.msra.mxu1 %v6905_v4  ;;  %v6934_v4 = vld [vmem:[#allocation11 + $0x248] sm:$0xff]  }
 0x3c6   :  { %6450 = vmatprep.subr.bf16.mxu0 %v6906_v5  ;;  %6472 = vmatprep.subr.bf16.mxu1 %v6907_v6  ;;  %v6935_v5 = vld [vmem:[#allocation11 + $0x2c8] sm:$0xff]  }
 0x3c7   :  { %v6936_v6 = vld [vmem:[#allocation11 + $0x208] sm:$0xff]  }
 0x3c9   :  { %6451 = vmatpush3.bf16.msra.mxu0 %v6908_v7  ;;  %6473 = vmatpush3.bf16.msra.mxu1 %v6909_v8  ;;  %v6937_v7 = vld [vmem:[#allocation11 + $0x288] sm:$0xff]   ;;  %v6938_v8 = vld [vmem:[#allocation11 + $0x250] sm:$0xff]  }
 0x3ca   :  { %6452 = vmatprep.subr.bf16.mxu0 %v6910_v9  ;;  %6474 = vmatprep.subr.bf16.mxu1 %v6911_v33  ;;  %v6939_v9 = vld [vmem:[#allocation11 + $0x2d0] sm:$0xff]  }
 0x3cb   :  { %v6940_v33 = vld [vmem:[#allocation11 + $0x210] sm:$0xff]  }
 0x3cd   :  { %6453 = vmatpush3.bf16.msra.mxu0 %v6912_v10  ;;  %6475 = vmatpush3.bf16.msra.mxu1 %v6913_v11  ;;  %v6941_v10 = vld [vmem:[#allocation11 + $0x290] sm:$0xff]   ;;  %v6942_v11 = vld [vmem:[#allocation11 + $0x258] sm:$0xff]  }
 0x3ce   :  { %6454 = vmatprep.subr.bf16.mxu0 %v6914_v12  ;;  %6476 = vmatprep.subr.bf16.mxu1 %v6915_v13  ;;  %v6943_v12 = vld [vmem:[#allocation11 + $0x2d8] sm:$0xff]  }
 0x3cf   :  { %v6944_v13 = vld [vmem:[#allocation11 + $0x218] sm:$0xff]  }
 0x3d1   :  { %6455 = vmatpush3.bf16.msra.mxu0 %v6916_v14  ;;  %6477 = vmatpush3.bf16.msra.mxu1 %v6917_v15  ;;  %v6945_v14 = vld [vmem:[#allocation11 + $0x298] sm:$0xff]   ;;  %v6946_v15 = vld [vmem:[#allocation11 + $0x260] sm:$0xff]  }
 0x3d2   :  { %6456 = vmatprep.subr.bf16.mxu0 %v6918_v16  ;;  %6478 = vmatprep.subr.bf16.mxu1 %v6919_v17  ;;  %v6947_v16 = vld [vmem:[#allocation11 + $0x2e0] sm:$0xff]  }
 0x3d3   :  { %v6948_v17 = vld [vmem:[#allocation11 + $0x220] sm:$0xff]  }
 0x3d5   :  { %6457 = vmatpush3.bf16.msra.mxu0 %v6920_v20  ;;  %6479 = vmatpush3.bf16.msra.mxu1 %v6921_v21  ;;  %v6949_v20 = vld [vmem:[#allocation11 + $0x2a0] sm:$0xff]   ;;  %v6950_v21 = vld [vmem:[#allocation11 + $0x268] sm:$0xff]  }
 0x3d6   :  { %6458 = vmatprep.subr.bf16.mxu0 %v6922_v24  ;;  %6480 = vmatprep.subr.bf16.mxu1 %v6923_v25  ;;  %v6951_v24 = vld [vmem:[#allocation11 + $0x2e8] sm:$0xff]  }
 0x3d7   :  { %v1326_v41 = vpop.f32.mrb[8].mxu0  ;;  %v1367_v42 = vpop.f32.mrb[8].mxu1  ;;  %v6952_v25 = vld [vmem:[#allocation11 + $0x228] sm:$0xff]  }
 0x3d8   :  { %v1327_v43 = vadd.f32 %v1326_v41, %v509_v26  ;;  %v1368_v44 = vadd.f32 %v1367_v42, %v517_v27  ;;  %v1328_v45 = vpop.f32.mrb[9].mxu0  ;;  %v1369_v46 = vpop.f32.mrb[9].mxu1  ;;  %v6953_v26 = vld [vmem:[#allocation11 + $0x2a8] sm:$0xff]   ;;  %v6956_v41 = vld [vmem:[#allocation11 + $0x230] sm:$0xff]  }
 0x3d9   :  { %v1329_v47 = vadd.f32 %v1328_v45, %v513_v28  ;;  %v1370_v48 = vadd.f32 %v1369_v46, %v521_v36  ;;  %v1330_v49 = vpop.f32.mrb[10].mxu0  ;;  %v1371_v50 = vpop.f32.mrb[10].mxu1  ;;  %6459 = vmatpush3.bf16.msra.mxu0 %v6924_v29  ;;  %6481 = vmatpush3.bf16.msra.mxu1 %v6925_v37  ;;  %v7623_v27 = vld [vmem:[#allocation10 + $0x8] sm:$0xff]  ;;  %v6954_v28 = vld [vmem:[#allocation11 + $0x270] sm:$0xff]  }
 0x3da   :  { %v1542_v52 = vmax.f32 %v1327_v43, 0.0  ;;  %v1544_v53 = vmax.f32 %v1368_v44, 0.0  ;;  %v1331_v54 = vpop.f32.mrb[11].mxu0  ;;  %v1372_v55 = vpop.f32.mrb[11].mxu1  ;;  %6460 = vmatprep.subr.bf16.mxu0 %v6926_v39  ;;  %6482 = vmatprep.subr.bf16.mxu1 %v6927_v40  ;;  %v6955_v36 = vld [vmem:[#allocation11 + $0x2f0] sm:$0xff]   ;;  %v525_v29 = vrot.slane %v7623_v27, %v7582_v30  ;;  %v533_v37 = vrot.slane %v7623_v27, %v7585_v31  ;;  %v6958_v43 = vld [vmem:[#allocation11 + $0x278] sm:$0xff]  }
 0x3db   :  { %v1543_v59 = vmax.f32 %v1329_v47, 0.0  ;;  %v1545_v60 = vmax.f32 %v1370_v48, 0.0  ;;  %v529_v39 = vrot.slane %v7623_v27, %v7590_v34  ;;  %v537_v40 = vrot.slane %v7623_v27, %v7593_v35  ;;  %v6957_v42 = vld [vmem:[#allocation11 + $0x2b0] sm:$0xff]   ;;  %v6959_v44 = vld [vmem:[#allocation11 + $0x2f8] sm:$0xff]  }
 0x3dc   :  { %v1558_v2 = vpack.c.bf16 %v1542_v52, %v1542_v52  ;;  %v1560_v3 = vpack.c.bf16 %v1544_v53, %v1544_v53  ;;  %v6960_v54 = vld [vmem:[#allocation11 + $0x238] sm:$0xff]  }
 0x3dd   :  { %v1559_v61 = vpack.c.bf16 %v1543_v59, %v1543_v59  ;;  %v1561_v62 = vpack.c.bf16 %v1545_v60, %v1545_v60  ;;  %6461 = vmatpush3.bf16.msra.mxu0 %v6928_v51  ;;  %6483 = vmatpush3.bf16.msra.mxu1 %v6929_v32  ;;  %v6961_v55 = vld [vmem:[#allocation11 + $0x2b8] sm:$0xff]  }
 0x3de   :  { %6490 = vmatprep.subr.bf16.mxu0 %v6930_v56  ;;  %6512 = vmatprep.subr.bf16.mxu1 %v6931_v58 }
 0x3df   :  { %2713 = vmatprep.mubr.bf16.mxu0 %v1559_v61  ;;  %2753 = vmatprep.mubr.bf16.mxu1 %v1561_v62  ;;  %v6962_v61 = vld [vmem:[#allocation11 + $0x340] sm:$0xff]  }
 0x3e0   :  { %2714 = vmatmul.mubr.bf16.vlgmr.msra.gmra.mrb[24].mxu0 %v1558_v2  ;;  %2754 = vmatmul.mubr.bf16.vlgmr.msra.gmra.mrb[24].mxu1 %v1560_v3  ;;  %v6963_v62 = vld [vmem:[#allocation11 + $0x3c0] sm:$0xff]  }
 0x3e1   :  { %6491 = vmatpush3.bf16.msra.mxu0 %v6932_v63  ;;  %6513 = vmatpush3.bf16.msra.mxu1 %v6933_v1 }
 0x3e2   :  { %6492 = vmatprep.subr.bf16.mxu0 %v6934_v4  ;;  %6514 = vmatprep.subr.bf16.mxu1 %v6935_v5  ;;  %v6964_v4 = vld [vmem:[#allocation11 + $0x300] sm:$0xff]  }
 0x3e3   :  { %v6965_v5 = vld [vmem:[#allocation11 + $0x380] sm:$0xff]  }
 0x3e5   :  { %6493 = vmatpush3.bf16.msra.mxu0 %v6936_v6  ;;  %6515 = vmatpush3.bf16.msra.mxu1 %v6937_v7 }
 0x3e6   :  { %6494 = vmatprep.subr.bf16.mxu0 %v6938_v8  ;;  %6516 = vmatprep.subr.bf16.mxu1 %v6939_v9  ;;  %v6966_v8 = vld [vmem:[#allocation11 + $0x348] sm:$0xff]  }
 0x3e7   :  { %v6967_v9 = vld [vmem:[#allocation11 + $0x3c8] sm:$0xff]  }
 0x3e9   :  { %6495 = vmatpush3.bf16.msra.mxu0 %v6940_v33  ;;  %6517 = vmatpush3.bf16.msra.mxu1 %v6941_v10  ;;  %v6968_v33 = vld [vmem:[#allocation11 + $0x308] sm:$0xff]  }
 0x3ea   :  { %6496 = vmatprep.subr.bf16.mxu0 %v6942_v11  ;;  %6518 = vmatprep.subr.bf16.mxu1 %v6943_v12  ;;  %v6969_v10 = vld [vmem:[#allocation11 + $0x388] sm:$0xff]   ;;  %v6970_v11 = vld [vmem:[#allocation11 + $0x350] sm:$0xff]  }
 0x3eb   :  { %v6971_v12 = vld [vmem:[#allocation11 + $0x3d0] sm:$0xff]  }
 0x3ed   :  { %6497 = vmatpush3.bf16.msra.mxu0 %v6944_v13  ;;  %6519 = vmatpush3.bf16.msra.mxu1 %v6945_v14  ;;  %v6972_v13 = vld [vmem:[#allocation11 + $0x310] sm:$0xff]  }
 0x3ee   :  { %6498 = vmatprep.subr.bf16.mxu0 %v6946_v15  ;;  %6520 = vmatprep.subr.bf16.mxu1 %v6947_v16  ;;  %v6973_v14 = vld [vmem:[#allocation11 + $0x390] sm:$0xff]   ;;  %v6974_v15 = vld [vmem:[#allocation11 + $0x358] sm:$0xff]  }
 0x3ef   :  { %v6975_v16 = vld [vmem:[#allocation11 + $0x3d8] sm:$0xff]  }
 0x3f1   :  { %6499 = vmatpush3.bf16.msra.mxu0 %v6948_v17  ;;  %6521 = vmatpush3.bf16.msra.mxu1 %v6949_v20  ;;  %v6976_v17 = vld [vmem:[#allocation11 + $0x318] sm:$0xff]  }
 0x3f2   :  { %6500 = vmatprep.subr.bf16.mxu0 %v6950_v21  ;;  %6522 = vmatprep.subr.bf16.mxu1 %v6951_v24  ;;  %v6977_v20 = vld [vmem:[#allocation11 + $0x398] sm:$0xff]   ;;  %v6978_v21 = vld [vmem:[#allocation11 + $0x360] sm:$0xff]  }
 0x3f3   :  { %v6979_v24 = vld [vmem:[#allocation11 + $0x3e0] sm:$0xff]  }
 0x3f5   :  { %6501 = vmatpush3.bf16.msra.mxu0 %v6952_v25  ;;  %6523 = vmatpush3.bf16.msra.mxu1 %v6953_v26  ;;  %v6980_v25 = vld [vmem:[#allocation11 + $0x320] sm:$0xff]  }
 0x3f6   :  { %6502 = vmatprep.subr.bf16.mxu0 %v6954_v28  ;;  %6524 = vmatprep.subr.bf16.mxu1 %v6955_v36  ;;  %v6981_v26 = vld [vmem:[#allocation11 + $0x3a0] sm:$0xff]   ;;  %v6982_v28 = vld [vmem:[#allocation11 + $0x368] sm:$0xff]  }
 0x3f7   :  { %v1408_v45 = vpop.f32.mrb[12].mxu0  ;;  %v1449_v46 = vpop.f32.mrb[12].mxu1  ;;  %v6983_v36 = vld [vmem:[#allocation11 + $0x3e8] sm:$0xff]  }
 0x3f8   :  { %v1409_v47 = vadd.f32 %v1408_v45, %v525_v29  ;;  %v1450_v48 = vadd.f32 %v1449_v46, %v533_v37  ;;  %v1410_v49 = vpop.f32.mrb[13].mxu0  ;;  %v1451_v50 = vpop.f32.mrb[13].mxu1  ;;  %v6984_v29 = vld [vmem:[#allocation11 + $0x328] sm:$0xff]   ;;  %v6988_v45 = vld [vmem:[#allocation11 + $0x330] sm:$0xff]  }
 0x3f9   :  { %v1411_v51 = vadd.f32 %v1410_v49, %v529_v39  ;;  %v1452_v32 = vadd.f32 %v1451_v50, %v537_v40  ;;  %v1412_v52 = vpop.f32.mrb[14].mxu0  ;;  %v1453_v53 = vpop.f32.mrb[14].mxu1  ;;  %6503 = vmatpush3.bf16.msra.mxu0 %v6956_v41  ;;  %6525 = vmatpush3.bf16.msra.mxu1 %v6957_v42  ;;  %v6985_v37 = vld [vmem:[#allocation11 + $0x3a8] sm:$0xff]   ;;  %v6986_v39 = vld [vmem:[#allocation11 + $0x370] sm:$0xff]   ;;  %v541_v41 = vrot.slane %v7623_v27, %v7604_v18 }
 0x3fa   :  { %v1546_v56 = vmax.f32 %v1409_v47, 0.0  ;;  %v1548_v58 = vmax.f32 %v1450_v48, 0.0  ;;  %v1413_v59 = vpop.f32.mrb[15].mxu0  ;;  %v1454_v60 = vpop.f32.mrb[15].mxu1  ;;  %6504 = vmatprep.subr.bf16.mxu0 %v6958_v43  ;;  %6526 = vmatprep.subr.bf16.mxu1 %v6959_v44  ;;  %v6987_v40 = vld [vmem:[#allocation11 + $0x3f0] sm:$0xff]   ;;  %v549_v42 = vrot.slane %v7623_v27, %v7607_v19  ;;  %v545_v43 = vrot.slane %v7623_v27, %v7610_v22  ;;  %v6990_v47 = vld [vmem:[#allocation11 + $0x378] sm:$0xff]  }
 0x3fb   :  { %v1547_v63 = vmax.f32 %v1411_v51, 0.0  ;;  %v1549_v1 = vmax.f32 %v1452_v32, 0.0  ;;  %v553_v44 = vrot.slane %v7623_v27, %v7613_v23  ;;  %v6989_v46 = vld [vmem:[#allocation11 + $0x3b0] sm:$0xff]   ;;  %v6991_v48 = vld [vmem:[#allocation11 + $0x3f8] sm:$0xff]  }
 0x3fc   :  { %v1562_v6 = vpack.c.bf16 %v1546_v56, %v1546_v56  ;;  %v1564_v7 = vpack.c.bf16 %v1548_v58, %v1548_v58  ;;  %v6992_v59 = vld [vmem:[#allocation11 + $0x338] sm:$0xff]  }
 0x3fd   :  { %v1563_v2 = vpack.c.bf16 %v1547_v63, %v1547_v63  ;;  %v1565_v3 = vpack.c.bf16 %v1549_v1, %v1549_v1  ;;  %6505 = vmatpush3.bf16.msra.mxu0 %v6960_v54  ;;  %6527 = vmatpush3.bf16.msra.mxu1 %v6961_v55  ;;  %v6993_v27 = vld [vmem:[#allocation11 + $0x3b8] sm:$0xff]  }
 0x3fe   :  { %6534 = vmatprep.subr.bf16.mxu0 %v6962_v61  ;;  %6556 = vmatprep.subr.bf16.mxu1 %v6963_v62 }
 0x3ff   :  { %2793 = vmatprep.mubr.bf16.mxu0 %v1563_v2  ;;  %2833 = vmatprep.mubr.bf16.mxu1 %v1565_v3 }
 0x400   :  { %2794 = vmatmul.mubr.bf16.vlgmr.msra.gmra.mrb[28].mxu0 %v1562_v6  ;;  %2834 = vmatmul.mubr.bf16.vlgmr.msra.gmra.mrb[28].mxu1 %v1564_v7 }
 0x401   :  { %6535 = vmatpush3.bf16.msra.mxu0 %v6964_v4  ;;  %6557 = vmatpush3.bf16.msra.mxu1 %v6965_v5 }
 0x402   :  { %6536 = vmatprep.subr.bf16.mxu0 %v6966_v8  ;;  %6558 = vmatprep.subr.bf16.mxu1 %v6967_v9  ;;  %v5974_v9 = vld [vmem:[%s7779_s10] ss:$0 sm:$0xff] }
 0x405   :  { %6537 = vmatpush3.bf16.msra.mxu0 %v6968_v33  ;;  %6559 = vmatpush3.bf16.msra.mxu1 %v6969_v10 }
 0x406   :  { %6538 = vmatprep.subr.bf16.mxu0 %v6970_v11  ;;  %6560 = vmatprep.subr.bf16.mxu1 %v6971_v12 }
 0x409   :  { %6539 = vmatpush3.bf16.msra.mxu0 %v6972_v13  ;;  %6561 = vmatpush3.bf16.msra.mxu1 %v6973_v14 }
 0x40a   :  { %6540 = vmatprep.subr.bf16.mxu0 %v6974_v15  ;;  %6562 = vmatprep.subr.bf16.mxu1 %v6975_v16 }
 0x40d   :  { %6541 = vmatpush3.bf16.msra.mxu0 %v6976_v17  ;;  %6563 = vmatpush3.bf16.msra.mxu1 %v6977_v20 }
 0x40e   :  { %6542 = vmatprep.subr.bf16.mxu0 %v6978_v21  ;;  %6564 = vmatprep.subr.bf16.mxu1 %v6979_v24 }
 0x411   :  { %6543 = vmatpush3.bf16.msra.mxu0 %v6980_v25  ;;  %6565 = vmatpush3.bf16.msra.mxu1 %v6981_v26 }
 0x412   :  { %6544 = vmatprep.subr.bf16.mxu0 %v6982_v28  ;;  %6566 = vmatprep.subr.bf16.mxu1 %v6983_v36 }
 0x415   :  { %6545 = vmatpush3.bf16.msra.mxu0 %v6984_v29  ;;  %6567 = vmatpush3.bf16.msra.mxu1 %v6985_v37 }
 0x416   :  { %6546 = vmatprep.subr.bf16.mxu0 %v6986_v39  ;;  %6568 = vmatprep.subr.bf16.mxu1 %v6987_v40 }
 0x417   :  { %v1490_v49 = vpop.f32.mrb[16].mxu0  ;;  %v1531_v50 = vpop.f32.mrb[16].mxu1 }
 0x418   :  { %v1491_v51 = vadd.f32 %v1490_v49, %v541_v41  ;;  %v1532_v32 = vadd.f32 %v1531_v50, %v549_v42  ;;  %v1492_v52 = vpop.f32.mrb[17].mxu0  ;;  %v1533_v53 = vpop.f32.mrb[17].mxu1 }
 0x419   :  { %v1493_v54 = vadd.f32 %v1492_v52, %v545_v43  ;;  %v1534_v55 = vadd.f32 %v1533_v53, %v553_v44  ;;  %v1494_v56 = vpop.f32.mrb[18].mxu0  ;;  %v1535_v58 = vpop.f32.mrb[18].mxu1  ;;  %6547 = vmatpush3.bf16.msra.mxu0 %v6988_v45  ;;  %6569 = vmatpush3.bf16.msra.mxu1 %v6989_v46 }
 0x41a   :  { %v1550_v60 = vmax.f32 %v1491_v51, 0.0  ;;  %v1552_v61 = vmax.f32 %v1532_v32, 0.0  ;;  %v1495_v62 = vpop.f32.mrb[19].mxu0  ;;  %v1536_v63 = vpop.f32.mrb[19].mxu1  ;;  %6548 = vmatprep.subr.bf16.mxu0 %v6990_v47  ;;  %6570 = vmatprep.subr.bf16.mxu1 %v6991_v48 }
 0x41b   :  { %v1551_v1 = vmax.f32 %v1493_v54, 0.0  ;;  %v1553_v2 = vmax.f32 %v1534_v55, 0.0 }
 0x41c   :  { %v1566_v5 = vpack.c.bf16 %v1550_v60, %v1550_v60  ;;  %v1568_v6 = vpack.c.bf16 %v1552_v61, %v1552_v61 }
 0x41d   :  { %v1567_v3 = vpack.c.bf16 %v1551_v1, %v1551_v1  ;;  %v1569_v4 = vpack.c.bf16 %v1553_v2, %v1553_v2  ;;  %6549 = vmatpush3.bf16.msra.mxu0 %v6992_v59  ;;  %6571 = vmatpush3.bf16.msra.mxu1 %v6993_v27 }
 0x41e   :  { %6800 = vmatprep.subr.bf16.mxu0 %v7344_v0 }
 0x41f   :  { %2873 = vmatprep.mubr.bf16.mxu0 %v1567_v3  ;;  %2913 = vmatprep.mubr.bf16.mxu1 %v1569_v4 }
 0x420   :  { %2874 = vmatmul.mubr.bf16.vlgmr.msra.gmra.mrb[32].mxu0 %v1566_v5  ;;  %2914 = vmatmul.mubr.bf16.vlgmr.msra.gmra.mrb[32].mxu1 %v1568_v6  ;;  %v6994_v5 = vld [vmem:[#allocation7 + $0x40] sm:$0xff]   ;;  %v6995_v6 = vld [vmem:[#allocation7 + $0x48] sm:$0xff]  }
 0x421   :  { %6816 = vmatprep.mubr.msk.bf16.mxu0 %vm7345_vm0, %v7344_v0  ;;  %3986 = vmatprep.mubr.bf16.mxu1 %v7346_v38 }
 0x422   :  { %6801 = vmatpush3.bf16.msra.mxu0 %v6994_v5 }
 0x423   :  { %6802 = vmatprep.subr.bf16.mxu0 %v7344_v0 }
 0x426   :  { %6803 = vmatpush3.bf16.msra.mxu0 %v6995_v6 }
 0x427   :  { %6804 = vmatprep.subr.bf16.mxu0 %v7344_v0 }
 0x493   :  { %v6418_v7 = vpop.f32.mrb[20].mxu0  ;;  %v6440_v8 = vpop.f32.mrb[20].mxu1 }
 0x494   :  { %v6419_v33 = vpop.f32.mrb[21].mxu0  ;;  %v6441_v10 = vpop.f32.mrb[21].mxu1 }
 0x495   :  { %v6420_v11 = vadd.f32 %v6419_v33, %v6418_v7  ;;  %v6442_v12 = vadd.f32 %v6441_v10, %v6440_v8  ;;  %v6421_v13 = vpop.f32.mrb[22].mxu0  ;;  %v6443_v14 = vpop.f32.mrb[22].mxu1  ;;  %v6996_v7 = vld [vmem:[#allocation7 + $0x50] sm:$0xff]   ;;  %v6997_v8 = vld [vmem:[#allocation7 + $0x58] sm:$0xff]  }
 0x496   :  { %v6422_v15 = vpop.f32.mrb[23].mxu0  ;;  %v6444_v16 = vpop.f32.mrb[23].mxu1  ;;  %6805 = vmatpush3.bf16.msra.mxu0 %v6996_v7  ;;  %v7000_v33 = vld [vmem:[#allocation7 + $0x70] sm:$0xff]   ;;  %v7001_v10 = vld [vmem:[#allocation7 + $0x78] sm:$0xff]   ;;  %v3149_v7 = vld [vmem:[#allocation8 + $0x580] sm:$0xff] }
 0x497   :  { %v2636_v17 = vadd.f32 %v6420_v11, %v5974_v9  ;;  %6806 = vmatprep.subr.bf16.mxu0 %v7344_v0  ;;  %v6998_v9 = vld [vmem:[#allocation7 + $0x60] sm:$0xff]  }
 0x499   :  { %v2676_v20 = vadd.f32 %v6442_v12, %v2636_v17 }
 0x49a   :  { %6807 = vmatpush3.bf16.msra.mxu0 %v6997_v8  ;;  %v3157_v8 = vld [vmem:[#allocation8 + $0x5c0] sm:$0xff] }
 0x49b   :  { %6808 = vmatprep.subr.bf16.mxu0 %v7344_v0 }
 0x49e   :  { %6809 = vmatpush3.bf16.msra.mxu0 %v6998_v9  ;;  %v3150_v9 = vld [vmem:[#allocation8 + $0x588] sm:$0xff] }
 0x49f   :  { %6810 = vmatprep.subr.bf16.mxu0 %v7344_v0 }
 0x4b3   :  { %v6462_v21 = vpop.f32.mrb[24].mxu0  ;;  %v6484_v24 = vpop.f32.mrb[24].mxu1 }
 0x4b4   :  { %v6463_v25 = vpop.f32.mrb[25].mxu0  ;;  %v6485_v26 = vpop.f32.mrb[25].mxu1 }
 0x4b5   :  { %v6464_v28 = vadd.f32 %v6463_v25, %v6462_v21  ;;  %v6486_v36 = vadd.f32 %v6485_v26, %v6484_v24  ;;  %v6465_v29 = vpop.f32.mrb[26].mxu0  ;;  %v6487_v37 = vpop.f32.mrb[26].mxu1  ;;  %v6103_v25 = vld [vmem:[%s7780_s11] ss:$0 sm:$0xff] }
 0x4b6   :  { %v6466_v39 = vpop.f32.mrb[27].mxu0  ;;  %v6488_v40 = vpop.f32.mrb[27].mxu1 }
 0x4b7   :  { %v2716_v41 = vadd.f32 %v6464_v28, %v2676_v20  ;;  %v6104_v28 = vld [vmem:[%s7781_s12] ss:$0 sm:$0xff]  ;;  %v3101_v39 = vld [vmem:[#allocation8 + $0x400] sm:$0xff] }
 0x4b8   :  { %v3109_v40 = vld [vmem:[#allocation8 + $0x440] sm:$0xff] }
 0x4b9   :  { %v2756_v42 = vadd.f32 %v6486_v36, %v2716_v41  ;;  %v3102_v41 = vld [vmem:[#allocation8 + $0x408] sm:$0xff] }
 0x4d3   :  { %v6506_v43 = vpop.f32.mrb[28].mxu0  ;;  %v6528_v44 = vpop.f32.mrb[28].mxu1 }
 0x4d4   :  { %v6507_v45 = vpop.f32.mrb[29].mxu0  ;;  %v6529_v46 = vpop.f32.mrb[29].mxu1 }
 0x4d5   :  { %v6508_v47 = vadd.f32 %v6507_v45, %v6506_v43  ;;  %v6530_v48 = vadd.f32 %v6529_v46, %v6528_v44  ;;  %v6509_v49 = vpop.f32.mrb[30].mxu0  ;;  %v6531_v50 = vpop.f32.mrb[30].mxu1  ;;  %v6120_v43 = vcombine.high %v3101_v39, %v3109_v40  ;;  %v3110_v44 = vld [vmem:[#allocation8 + $0x448] sm:$0xff] }
 0x4d6   :  { %v6510_v51 = vpop.f32.mrb[31].mxu0  ;;  %v6532_v32 = vpop.f32.mrb[31].mxu1  ;;  %v6121_v45 = vcombine.low %v3102_v41, %v3110_v44  ;;  %v6122_v46 = vcombine.high %v3102_v41, %v3110_v44  ;;  %v3197_v41 = vld [vmem:[#allocation8 + $0x700] sm:$0xff] }
 0x4d7   :  { %v2796_v52 = vadd.f32 %v6508_v47, %v2756_v42  ;;  %v6119_v42 = vcombine.low %v3101_v39, %v3109_v40  ;;  %3954 = vmatprep.subr.bf16.mxu1 %v6120_v43  ;;  %v6106_v47 = vld [vmem:[%s7773_s4 + $0x1] ss:$0 sm:$0xff] }
 0x4d8   :  { %v3198_v43 = vld [vmem:[#allocation8 + $0x708] sm:$0xff] }
 0x4d9   :  { %v2836_v53 = vadd.f32 %v6530_v48, %v2796_v52  ;;  %3955 = vmatpush1.bf16.msra.mxu1 %v6119_v42  ;;  %v3205_v42 = vld [vmem:[#allocation8 + $0x740] sm:$0xff] }
 0x4da   :  { %v6216_v44 = vcombine.high %v3197_v41, %v3205_v42 }
 0x4f3   :  { %v6550_v54 = vpop.f32.mrb[32].mxu0  ;;  %v6572_v55 = vpop.f32.mrb[32].mxu1 }
 0x4f4   :  { %v6551_v56 = vpop.f32.mrb[33].mxu0  ;;  %v6573_v58 = vpop.f32.mrb[33].mxu1 }
 0x4f5   :  { %v6552_v59 = vadd.f32 %v6551_v56, %v6550_v54  ;;  %v6574_v27 = vadd.f32 %v6573_v58, %v6572_v55  ;;  %v6553_v60 = vpop.f32.mrb[34].mxu0  ;;  %v6575_v61 = vpop.f32.mrb[34].mxu1  ;;  %v3117_v54 = vld [vmem:[#allocation8 + $0x480] sm:$0xff]  ;;  %v3118_v56 = vld [vmem:[#allocation8 + $0x488] sm:$0xff] }
 0x4f6   :  { %v6554_v62 = vpop.f32.mrb[35].mxu0  ;;  %v6576_v63 = vpop.f32.mrb[35].mxu1  ;;  %v3125_v55 = vld [vmem:[#allocation8 + $0x4c0] sm:$0xff] }
 0x4f7   :  { %v2876_v1 = vadd.f32 %v6552_v59, %v2836_v53  ;;  %v6136_v58 = vcombine.high %v3117_v54, %v3125_v55  ;;  %v3126_v59 = vld [vmem:[#allocation8 + $0x4c8] sm:$0xff]  ;;  %v3133_v62 = vld [vmem:[#allocation8 + $0x500] sm:$0xff] }
 0x4f8   :  { %v6137_v60 = vcombine.low %v3118_v56, %v3126_v59  ;;  %v6138_v61 = vcombine.high %v3118_v56, %v3126_v59  ;;  %v3141_v63 = vld [vmem:[#allocation8 + $0x540] sm:$0xff]  ;;  %v3111_v59 = vld [vmem:[#allocation8 + $0x450] sm:$0xff] }
 0x4f9   :  { %v2916_v2 = vadd.f32 %v6574_v27, %v2876_v1  ;;  %v6135_v27 = vcombine.low %v3117_v54, %v3125_v55  ;;  %3956 = vmatprep.subr.bf16.mxu1 %v6136_v58  ;;  %v3134_v1 = vld [vmem:[#allocation8 + $0x508] sm:$0xff]  ;;  %v3103_v58 = vld [vmem:[#allocation8 + $0x410] sm:$0xff] }
 0x4fb   :  { %v2921_v3 = vadd.f32 %v2916_v2, %v7559_v57  ;;  %v6999_v57 = vld [vmem:[#allocation7 + $0x68] sm:$0xff]   ;;  %3957 = vmatpush1.bf16.msra.mxu1 %v6135_v27  ;;  %v6152_v2 = vcombine.high %v3133_v62, %v3141_v63  ;;  %v3104_v27 = vld [vmem:[#allocation8 + $0x418] sm:$0xff] }
 0x4fc   :  { %6811 = vmatpush3.bf16.msra.mxu0 %v6999_v57  ;;  %v6168_v57 = vcombine.high %v3149_v7, %v3157_v8 }
 0x4fd   :  { %2924 = vadd.xlane.f32.xlu1 %v2921_v3  ;;  %v2927_v4 = vmul.f32 %v2921_v3, %v2921_v3  ;;  %6812 = vmatprep.subr.bf16.mxu0 %v7344_v0 }
 0x4fe   :  { %3958 = vmatprep.subr.bf16.mxu1 %v6152_v2 }
 0x500   :  { %6813 = vmatpush3.bf16.msra.mxu0 %v7000_v33  ;;  %v3158_v33 = vld [vmem:[#allocation8 + $0x5c8] sm:$0xff] }
 0x501   :  { %2928 = vadd.xlane.f32.xlu1 %v2927_v4  ;;  %6814 = vmatprep.subr.bf16.mxu0 %v7344_v0  ;;  %v6151_v4 = vcombine.low %v3133_v62, %v3141_v63  ;;  %v6123_v62 = vcombine.low %v3103_v58, %v3111_v59 }
 0x503   :  { %3959 = vmatpush1.bf16.msra.mxu1 %v6151_v4 }
 0x504   :  { %6815 = vmatpush3.bf16.msra.mxu0 %v7001_v10  ;;  %v6167_v10 = vcombine.low %v3149_v7, %v3157_v8  ;;  %3960 = vmatprep.subr.bf16.mxu1 %v6168_v57 }
 0x505   :  { %3995 = vmatprep.subr.bf16.mxu0 %v6122_v46  ;;  %v6215_v46 = vcombine.low %v3197_v41, %v3205_v42  ;;  %v3151_v41 = vld [vmem:[#allocation8 + $0x590] sm:$0xff] }
 0x506   :  { %v3159_v42 = vld [vmem:[#allocation8 + $0x5d0] sm:$0xff] }
 0x507   :  { %3961 = vmatpush1.bf16.msra.mxu1 %v6167_v10  ;;  %v6117_v10 = vld [vmem:[%s7774_s5 + $0x1] ss:$0 sm:$0xff] }
 0x58a   :  { %v2925_v11 = vpop.xlane.xlu1 %2924 }
 0x58b   :  { %v2926_v12 = vmul.f32 0.03125, %v2925_v11  ;;  %v6169_v11 = vcombine.low %v3150_v9, %v3158_v33 }
 0x58d   :  { %v2931_v14 = vmul.f32 %v2926_v12, %v2926_v12  ;;  %v2934_v21 = vsub.f32 %v2921_v3, %v2926_v12  ;;  %v3142_v3 = vld [vmem:[#allocation8 + $0x548] sm:$0xff]  ;;  %v6170_v12 = vcombine.high %v3150_v9, %v3158_v33 }
 0x58e   :  { %v2929_v13 = vpop.xlane.xlu1 %2928  ;;  %v6153_v5 = vcombine.low %v3134_v1, %v3142_v3  ;;  %v6154_v6 = vcombine.high %v3134_v1, %v3142_v3 }
 0x58f   :  { %v2930_v15 = vmul.f32 0.03125, %v2929_v13  ;;  %v3165_v13 = vld [vmem:[#allocation8 + $0x600] sm:$0xff] }
 0x591   :  { %v2932_v16 = vsub.f32 %v2930_v15, %v2931_v14  ;;  %v3173_v14 = vld [vmem:[#allocation8 + $0x640] sm:$0xff]  ;;  %v3166_v15 = vld [vmem:[#allocation8 + $0x608] sm:$0xff] }
 0x593   :  { %v2933_v17 = vmax.f32 %v2932_v16, 0.0  ;;  %v6184_v16 = vcombine.high %v3165_v13, %v3173_v14 }
 0x595   :  { %v2935_v20 = vadd.f32 1e-05, %v2933_v17  ;;  %v3174_v17 = vld [vmem:[#allocation8 + $0x648] sm:$0xff]  ;;  %3962 = vmatprep.subr.bf16.mxu1 %v6184_v16  ;;  %v3120_v16 = vld [vmem:[#allocation8 + $0x498] sm:$0xff] }
 0x597   :  { %7140 = vrsqrt.f32 %v2935_v20  ;;  %v6183_v20 = vcombine.low %v3165_v13, %v3173_v14  ;;  %v3119_v14 = vld [vmem:[#allocation8 + $0x490] sm:$0xff] }
 0x599   :  { %3963 = vmatpush1.bf16.msra.mxu1 %v6183_v20 }
 0x5a1   :  { %v7141_v24 = vpop.eup %7140 }
 0x5a2   :  { %v2937_v26 = vmul.f32 %v7141_v24, %v2934_v21  ;;  %v6185_v21 = vcombine.low %v3166_v15, %v3174_v17  ;;  %v6186_v24 = vcombine.high %v3166_v15, %v3174_v17  ;;  %v3127_v15 = vld [vmem:[#allocation8 + $0x4d0] sm:$0xff]  ;;  %v3128_v17 = vld [vmem:[#allocation8 + $0x4d8] sm:$0xff] }
 0x5a4   :  { %v2944_v36 = vmul.f32 %v6103_v25, %v2937_v26  ;;  %v3181_v25 = vld [vmem:[#allocation8 + $0x680] sm:$0xff] }
 0x5a5   :  { %v3189_v26 = vld [vmem:[#allocation8 + $0x6c0] sm:$0xff] }
 0x5a6   :  { %v2951_v29 = vadd.f32 %v6104_v28, %v2944_v36  ;;  %v3182_v28 = vld [vmem:[#allocation8 + $0x688] sm:$0xff]  ;;  %v6200_v36 = vcombine.high %v3181_v25, %v3189_v26 }
 0x5a8   :  { %v2952_v37 = vpack.c.bf16 %v2951_v29, %v2951_v29  ;;  %3964 = vmatprep.subr.bf16.mxu1 %v6200_v36  ;;  %v3144_v36 = vld [vmem:[#allocation8 + $0x558] sm:$0xff] }
 0x5aa   :  { %6817 = vmatmul.mubr.bf16.vlgmr.msra.gmra.mrb[36].mxu0 %v2952_v37  ;;  %v6199_v37 = vcombine.low %v3181_v25, %v3189_v26  ;;  %v3135_v25 = vld [vmem:[#allocation8 + $0x510] sm:$0xff] }
 0x5ab   :  { %4027 = vmatprep.mubr.bf16.mxu0 %v7346_v38  ;;  %3996 = vmatpush1.bf16.msra.mxu0 %v6121_v45  ;;  %v3206_v45 = vld [vmem:[#allocation8 + $0x748] sm:$0xff]  ;;  %v3143_v26 = vld [vmem:[#allocation8 + $0x550] sm:$0xff] }
 0x5ac   :  { %3997 = vmatprep.subr.bf16.mxu0 %v6138_v61  ;;  %3965 = vmatpush1.bf16.msra.mxu1 %v6199_v37  ;;  %v3112_v61 = vld [vmem:[#allocation8 + $0x458] sm:$0xff]  ;;  %v6141_v37 = vcombine.low %v3120_v16, %v3128_v17 }
 0x5ad   :  { %3966 = vmatprep.subr.bf16.mxu1 %v6216_v44  ;;  %v6125_v63 = vcombine.low %v3104_v27, %v3112_v61  ;;  %v6126_v1 = vcombine.high %v3104_v27, %v3112_v61  ;;  %v3160_v44 = vld [vmem:[#allocation8 + $0x5d8] sm:$0xff] }
 0x5ae   :  { %v3184_v27 = vld [vmem:[#allocation8 + $0x698] sm:$0xff] }
 0x5af   :  { %3998 = vmatpush1.bf16.msra.mxu0 %v6137_v60  ;;  %v6124_v60 = vcombine.high %v3103_v58, %v3111_v59  ;;  %v3183_v58 = vld [vmem:[#allocation8 + $0x690] sm:$0xff] }
 0x5b0   :  { %3999 = vmatprep.subr.bf16.mxu0 %v6154_v6  ;;  %3967 = vmatpush1.bf16.msra.mxu1 %v6215_v46  ;;  %v3191_v59 = vld [vmem:[#allocation8 + $0x6d0] sm:$0xff] }
 0x5b3   :  { %4000 = vmatpush1.bf16.msra.mxu0 %v6153_v5 }
 0x5b4   :  { %4001 = vmatprep.subr.bf16.mxu0 %v6170_v12  ;;  %v6118_v12 = vld [vmem:[%s7775_s6 + $0x1] ss:$0 sm:$0xff] }
 0x5b7   :  { %4002 = vmatpush1.bf16.msra.mxu0 %v6169_v11 }
 0x5b8   :  { %4003 = vmatprep.subr.bf16.mxu0 %v6186_v24  ;;  %v6142_v24 = vcombine.high %v3120_v16, %v3128_v17  ;;  %v3105_v16 = vld [vmem:[#allocation8 + $0x420] sm:$0xff] }
 0x5b9   :  { %v3113_v17 = vld [vmem:[#allocation8 + $0x460] sm:$0xff] }
 0x5bb   :  { %4004 = vmatpush1.bf16.msra.mxu0 %v6185_v21  ;;  %v6140_v21 = vcombine.high %v3119_v14, %v3127_v15 }
 0x67d   :  { %v3060_v48 = vpop.f32.mrb[36].mxu0 }
 0x67e   :  { %v3061_v49 = vadd.f32 %v6106_v47, %v3060_v48  ;;  %v6818_v50 = vpop.f32.mrb[37].mxu0  ;;  %v6217_v47 = vcombine.low %v3198_v43, %v3206_v45  ;;  %v6218_v48 = vcombine.high %v3198_v43, %v3206_v45  ;;  %v3152_v43 = vld [vmem:[#allocation8 + $0x598] sm:$0xff]  ;;  %v6155_v45 = vcombine.low %v3135_v25, %v3143_v26 }
 0x67f   :  { %v3063_v51 = vpop.f32.mrb[38].mxu0  ;;  %v3221_v50 = vld [vmem:[#allocation8 + $0x7c0] sm:$0xff] }
 0x680   :  { %v7666_v32 = vadd.f32 %v3061_v49, %v2951_v29  ;;  %v6819_v52 = vpop.f32.mrb[39].mxu0  ;;  %v3190_v29 = vld [vmem:[#allocation8 + $0x6c8] sm:$0xff]  ;;  %v3213_v49 = vld [vmem:[#allocation8 + $0x780] sm:$0xff] }
 0x681   :  { %v6201_v39 = vcombine.low %v3182_v28, %v3190_v29  ;;  %v6202_v40 = vcombine.high %v3182_v28, %v3190_v29  ;;  %v3214_v51 = vld [vmem:[#allocation8 + $0x788] sm:$0xff]  ;;  %v6232_v52 = vcombine.high %v3213_v49, %v3221_v50  ;;  %v6231_v54 = vcombine.low %v3213_v49, %v3221_v50  ;;  %v3136_v28 = vld [vmem:[#allocation8 + $0x518] sm:$0xff]  ;;  %v3167_v49 = vld [vmem:[#allocation8 + $0x610] sm:$0xff] }
 0x682   :  { %3071 = vadd.xlane.f32.xlu0 %v7666_v32  ;;  %v3074_v53 = vmul.f32 %v7666_v32, %v7666_v32  ;;  %v6139_v29 = vcombine.low %v3119_v14, %v3127_v15  ;;  %v6157_v46 = vcombine.low %v3136_v28, %v3144_v36  ;;  %v3175_v50 = vld [vmem:[#allocation8 + $0x650] sm:$0xff] }
 0x683   :  { %4005 = vmatprep.subr.bf16.mxu0 %v6202_v40  ;;  %3968 = vmatprep.subr.bf16.mxu1 %v6232_v52  ;;  %v6158_v40 = vcombine.high %v3136_v28, %v3144_v36  ;;  %v3176_v52 = vld [vmem:[#allocation8 + $0x658] sm:$0xff]  ;;  %v6187_v61 = vcombine.low %v3167_v49, %v3175_v50  ;;  %v6128_v28 = vcombine.high %v3105_v16, %v3113_v17 }
 0x684   :  { %3075 = vadd.xlane.f32.xlu1 %v3074_v53  ;;  %4006 = vmatpush1.bf16.msra.mxu0 %v6201_v39  ;;  %v3222_v53 = vld [vmem:[#allocation8 + $0x7c8] sm:$0xff]  ;;  %v6156_v39 = vcombine.high %v3135_v25, %v3143_v26 }
 0x685   :  { %4007 = vmatprep.subr.bf16.mxu0 %v6218_v48  ;;  %v6233_v55 = vcombine.low %v3214_v51, %v3222_v53  ;;  %v6234_v56 = vcombine.high %v3214_v51, %v3222_v53  ;;  %3969 = vmatpush1.bf16.msra.mxu1 %v6231_v54  ;;  %v6174_v48 = vcombine.high %v3152_v43, %v3160_v44  ;;  %v3168_v51 = vld [vmem:[#allocation8 + $0x618] sm:$0xff] }
 0x686   :  { %4036 = vmatprep.subr.bf16.mxu1 %v6124_v60  ;;  %v6171_v53 = vcombine.low %v3151_v41, %v3159_v42  ;;  %v6173_v54 = vcombine.low %v3152_v43, %v3160_v44  ;;  %v3192_v60 = vld [vmem:[#allocation8 + $0x6d8] sm:$0xff] }
 0x688   :  { %4008 = vmatpush1.bf16.msra.mxu0 %v6217_v47  ;;  %v6172_v47 = vcombine.high %v3151_v41, %v3159_v42  ;;  %v6127_v41 = vcombine.low %v3105_v16, %v3113_v17 }
 0x689   :  { %4009 = vmatprep.subr.bf16.mxu0 %v6234_v56  ;;  %v6190_v56 = vcombine.high %v3168_v51, %v3176_v52 }
 0x68c   :  { %4010 = vmatpush1.bf16.msra.mxu0 %v6233_v55  ;;  %v6188_v55 = vcombine.high %v3167_v49, %v3175_v50 }
 0x68d   :  { %4077 = vmatprep.subr.bf16.mxu0 %v6126_v1  ;;  %v6206_v1 = vcombine.high %v3184_v27, %v3192_v60 }
 0x70f   :  { %v3072_v2 = vpop.xlane.xlu0 %3071 }
 0x710   :  { %v3073_v3 = vmul.f32 0.03125, %v3072_v2  ;;  %v3199_v2 = vld [vmem:[#allocation8 + $0x710] sm:$0xff] }
 0x711   :  { %v3076_v4 = vpop.xlane.xlu1 %3075 }
 0x712   :  { %v3078_v5 = vmul.f32 %v3073_v3, %v3073_v3  ;;  %v3077_v6 = vmul.f32 0.03125, %v3076_v4  ;;  %v3081_v57 = vsub.f32 %v7666_v32, %v3073_v3  ;;  %v3207_v3 = vld [vmem:[#allocation8 + $0x750] sm:$0xff]  ;;  %v3200_v4 = vld [vmem:[#allocation8 + $0x718] sm:$0xff] }
 0x714   :  { %v3079_v7 = vsub.f32 %v3077_v6, %v3078_v5  ;;  %v3208_v5 = vld [vmem:[#allocation8 + $0x758] sm:$0xff]  ;;  %v6203_v6 = vcombine.low %v3183_v58, %v3191_v59 }
 0x716   :  { %v3080_v8 = vmax.f32 %v3079_v7, 0.0  ;;  %v6205_v7 = vcombine.low %v3184_v27, %v3192_v60 }
 0x718   :  { %v3082_v9 = vadd.f32 1e-05, %v3080_v8  ;;  %v6220_v8 = vcombine.high %v3199_v2, %v3207_v3 }
 0x71a   :  { %7142 = vrsqrt.f32 %v3082_v9  ;;  %v6222_v9 = vcombine.high %v3200_v4, %v3208_v5 }
 0x724   :  { %v7143_v33 = vpop.eup %7142 }
 0x725   :  { %v3084_v11 = vmul.f32 %v7143_v33, %v3081_v57  ;;  %v3215_v57 = vld [vmem:[#allocation8 + $0x790] sm:$0xff] }
 0x726   :  { %v3223_v33 = vld [vmem:[#allocation8 + $0x7d0] sm:$0xff] }
 0x727   :  { %v3091_v13 = vmul.f32 %v6117_v10, %v3084_v11  ;;  %v3216_v10 = vld [vmem:[#allocation8 + $0x798] sm:$0xff]  ;;  %v6236_v14 = vcombine.high %v3215_v57, %v3223_v33  ;;  %v6235_v25 = vcombine.low %v3215_v57, %v3223_v33 }
 0x728   :  { %v3224_v11 = vld [vmem:[#allocation8 + $0x7d8] sm:$0xff] }
 0x729   :  { %v7678_v20 = vadd.f32 %v6118_v12, %v3091_v13  ;;  %v6219_v12 = vcombine.low %v3199_v2, %v3207_v3  ;;  %v6221_v13 = vcombine.low %v3200_v4, %v3208_v5  ;;  %v6238_v15 = vcombine.high %v3216_v10, %v3224_v11 }
 0x72a   :  { %v6237_v26 = vcombine.low %v3216_v10, %v3224_v11 }
 0x72b   :  { %v7682_v32 = vpack.c.bf16 %v7678_v20, %v7678_v20 }
 0x72d   :  { %3987 = vmatmul.mubr.bf16.vlgmr.msra.gmra.mrb[36].mxu1 %v7682_v32  ;;  %4028 = vmatmul.mubr.bf16.vlgmr.msra.gmra.mrb[40].mxu0 %v7682_v32 }
 0x72e   :  { %4037 = vmatpush1.bf16.msra.mxu1 %v6123_v62  ;;  %4078 = vmatpush1.bf16.msra.mxu0 %v6125_v63  ;;  %v6189_v62 = vcombine.low %v3168_v51, %v3176_v52  ;;  %v6204_v63 = vcombine.high %v3183_v58, %v3191_v59 }
 0x72f   :  { %4038 = vmatprep.subr.bf16.mxu1 %v6140_v21  ;;  %4079 = vmatprep.subr.bf16.mxu0 %v6142_v24  ;;  %v3106_v21 = vld [vmem:[#allocation8 + $0x428] sm:$0xff] }
 0x730   :  { %4068 = vmatprep.mubr.bf16.mxu1 %v7346_v38  ;;  %4109 = vmatprep.mubr.bf16.mxu0 %v7346_v38  ;;  %v3114_v24 = vld [vmem:[#allocation8 + $0x468] sm:$0xff] }
 0x731   :  { %v6130_v36 = vcombine.high %v3106_v21, %v3114_v24  ;;  %v6129_v42 = vcombine.low %v3106_v21, %v3114_v24 }
 0x732   :  { %4039 = vmatpush1.bf16.msra.mxu1 %v6139_v29  ;;  %4080 = vmatpush1.bf16.msra.mxu0 %v6141_v37  ;;  %v3121_v29 = vld [vmem:[#allocation8 + $0x4a0] sm:$0xff] }
 0x733   :  { %4040 = vmatprep.subr.bf16.mxu1 %v6156_v39  ;;  %4081 = vmatprep.subr.bf16.mxu0 %v6158_v40  ;;  %v3129_v37 = vld [vmem:[#allocation8 + $0x4e0] sm:$0xff]  ;;  %v3122_v39 = vld [vmem:[#allocation8 + $0x4a8] sm:$0xff] }
 0x734   :  { %v3130_v40 = vld [vmem:[#allocation8 + $0x4e8] sm:$0xff]  ;;  %v6144_v43 = vcombine.high %v3121_v29, %v3129_v37  ;;  %v6143_v49 = vcombine.low %v3121_v29, %v3129_v37 }
 0x735   :  { %v6146_v44 = vcombine.high %v3122_v39, %v3130_v40  ;;  %v6145_v50 = vcombine.low %v3122_v39, %v3130_v40 }
 0x736   :  { %4041 = vmatpush1.bf16.msra.mxu1 %v6155_v45  ;;  %4082 = vmatpush1.bf16.msra.mxu0 %v6157_v46  ;;  %v3137_v45 = vld [vmem:[#allocation8 + $0x520] sm:$0xff] }
 0x737   :  { %4042 = vmatprep.subr.bf16.mxu1 %v6172_v47  ;;  %4083 = vmatprep.subr.bf16.mxu0 %v6174_v48  ;;  %v3145_v46 = vld [vmem:[#allocation8 + $0x560] sm:$0xff]  ;;  %v3138_v47 = vld [vmem:[#allocation8 + $0x528] sm:$0xff] }
 0x738   :  { %v3146_v48 = vld [vmem:[#allocation8 + $0x568] sm:$0xff]  ;;  %v6160_v51 = vcombine.high %v3137_v45, %v3145_v46  ;;  %v6159_v58 = vcombine.low %v3137_v45, %v3145_v46 }
 0x739   :  { %v6162_v52 = vcombine.high %v3138_v47, %v3146_v48  ;;  %v6161_v59 = vcombine.low %v3138_v47, %v3146_v48 }
 0x73a   :  { %4043 = vmatpush1.bf16.msra.mxu1 %v6171_v53  ;;  %4084 = vmatpush1.bf16.msra.mxu0 %v6173_v54  ;;  %v3153_v53 = vld [vmem:[#allocation8 + $0x5a0] sm:$0xff] }
 0x73b   :  { %4044 = vmatprep.subr.bf16.mxu1 %v6188_v55  ;;  %4085 = vmatprep.subr.bf16.mxu0 %v6190_v56  ;;  %v3161_v54 = vld [vmem:[#allocation8 + $0x5e0] sm:$0xff]  ;;  %v3154_v55 = vld [vmem:[#allocation8 + $0x5a8] sm:$0xff] }
 0x73c   :  { %v3162_v56 = vld [vmem:[#allocation8 + $0x5e8] sm:$0xff]  ;;  %v6176_v27 = vcombine.high %v3153_v53, %v3161_v54  ;;  %v6175_v2 = vcombine.low %v3153_v53, %v3161_v54 }
 0x73d   :  { %v6178_v60 = vcombine.high %v3154_v55, %v3162_v56  ;;  %v6177_v3 = vcombine.low %v3154_v55, %v3162_v56 }
 0x73e   :  { %4045 = vmatpush1.bf16.msra.mxu1 %v6187_v61  ;;  %4086 = vmatpush1.bf16.msra.mxu0 %v6189_v62  ;;  %v3169_v61 = vld [vmem:[#allocation8 + $0x620] sm:$0xff] }
 0x73f   :  { %4046 = vmatprep.subr.bf16.mxu1 %v6204_v63  ;;  %4087 = vmatprep.subr.bf16.mxu0 %v6206_v1  ;;  %v3177_v62 = vld [vmem:[#allocation8 + $0x660] sm:$0xff]  ;;  %v3170_v63 = vld [vmem:[#allocation8 + $0x628] sm:$0xff] }
 0x740   :  { %v3178_v1 = vld [vmem:[#allocation8 + $0x668] sm:$0xff]  ;;  %v6192_v4 = vcombine.high %v3169_v61, %v3177_v62  ;;  %v6191_v57 = vcombine.low %v3169_v61, %v3177_v62 }
 0x741   :  { %v6194_v5 = vcombine.high %v3170_v63, %v3178_v1  ;;  %v6193_v33 = vcombine.low %v3170_v63, %v3178_v1 }
 0x742   :  { %4047 = vmatpush1.bf16.msra.mxu1 %v6203_v6  ;;  %4088 = vmatpush1.bf16.msra.mxu0 %v6205_v7  ;;  %v3185_v6 = vld [vmem:[#allocation8 + $0x6a0] sm:$0xff] }
 0x743   :  { %4048 = vmatprep.subr.bf16.mxu1 %v6220_v8  ;;  %4089 = vmatprep.subr.bf16.mxu0 %v6222_v9  ;;  %v3193_v7 = vld [vmem:[#allocation8 + $0x6e0] sm:$0xff]  ;;  %v3186_v8 = vld [vmem:[#allocation8 + $0x6a8] sm:$0xff] }
 0x744   :  { %v3194_v9 = vld [vmem:[#allocation8 + $0x6e8] sm:$0xff]  ;;  %v6208_v10 = vcombine.high %v3185_v6, %v3193_v7  ;;  %v6207_v16 = vcombine.low %v3185_v6, %v3193_v7 }
 0x745   :  { %v6210_v11 = vcombine.high %v3186_v8, %v3194_v9  ;;  %v6209_v17 = vcombine.low %v3186_v8, %v3194_v9 }
 0x746   :  { %4049 = vmatpush1.bf16.msra.mxu1 %v6219_v12  ;;  %4090 = vmatpush1.bf16.msra.mxu0 %v6221_v13  ;;  %v3201_v12 = vld [vmem:[#allocation8 + $0x720] sm:$0xff] }
 0x747   :  { %4050 = vmatprep.subr.bf16.mxu1 %v6236_v14  ;;  %4091 = vmatprep.subr.bf16.mxu0 %v6238_v15  ;;  %v3209_v13 = vld [vmem:[#allocation8 + $0x760] sm:$0xff]  ;;  %v3202_v14 = vld [vmem:[#allocation8 + $0x728] sm:$0xff] }
 0x748   :  { %v3210_v15 = vld [vmem:[#allocation8 + $0x768] sm:$0xff]  ;;  %v6224_v21 = vcombine.high %v3201_v12, %v3209_v13  ;;  %v6223_v29 = vcombine.low %v3201_v12, %v3209_v13 }
 0x749   :  { %v6226_v24 = vcombine.high %v3202_v14, %v3210_v15  ;;  %v6225_v37 = vcombine.low %v3202_v14, %v3210_v15  ;;  %v3187_v15 = vld [vmem:[#allocation8 + $0x6b0] sm:$0xff] }
 0x74a   :  { %4051 = vmatpush1.bf16.msra.mxu1 %v6235_v25  ;;  %4092 = vmatpush1.bf16.msra.mxu0 %v6237_v26  ;;  %v3217_v25 = vld [vmem:[#allocation8 + $0x7a0] sm:$0xff] }
 0x74b   :  { %4118 = vmatprep.subr.bf16.mxu1 %v6128_v28  ;;  %4159 = vmatprep.subr.bf16.mxu0 %v6130_v36  ;;  %v3225_v26 = vld [vmem:[#allocation8 + $0x7e0] sm:$0xff]  ;;  %v3218_v28 = vld [vmem:[#allocation8 + $0x7a8] sm:$0xff] }
 0x74c   :  { %v3226_v36 = vld [vmem:[#allocation8 + $0x7e8] sm:$0xff]  ;;  %v6240_v39 = vcombine.high %v3217_v25, %v3225_v26  ;;  %v6239_v45 = vcombine.low %v3217_v25, %v3225_v26 }
 0x74d   :  { %4069 = vmatmul.mubr.bf16.vlgmr.msra.gmra.mrb[40].mxu1 %v7682_v32  ;;  %4110 = vmatmul.mubr.bf16.vlgmr.msra.gmra.mrb[44].mxu0 %v7682_v32  ;;  %v6242_v40 = vcombine.high %v3218_v28, %v3226_v36  ;;  %v6241_v46 = vcombine.low %v3218_v28, %v3226_v36  ;;  %v3203_v36 = vld [vmem:[#allocation8 + $0x730] sm:$0xff] }
 0x74e   :  { %4119 = vmatpush1.bf16.msra.mxu1 %v6127_v41  ;;  %4160 = vmatpush1.bf16.msra.mxu0 %v6129_v42  ;;  %v3107_v41 = vld [vmem:[#allocation8 + $0x430] sm:$0xff] }
 0x74f   :  { %4120 = vmatprep.subr.bf16.mxu1 %v6144_v43  ;;  %4161 = vmatprep.subr.bf16.mxu0 %v6146_v44  ;;  %v3115_v42 = vld [vmem:[#allocation8 + $0x470] sm:$0xff]  ;;  %v3108_v43 = vld [vmem:[#allocation8 + $0x438] sm:$0xff] }
 0x750   :  { %4150 = vmatprep.mubr.bf16.mxu1 %v7346_v38  ;;  %4191 = vmatprep.mubr.bf16.mxu0 %v7346_v38  ;;  %v3116_v44 = vld [vmem:[#allocation8 + $0x478] sm:$0xff]  ;;  %v6132_v47 = vcombine.high %v3107_v41, %v3115_v42  ;;  %v6131_v53 = vcombine.low %v3107_v41, %v3115_v42 }
 0x751   :  { %v6134_v48 = vcombine.high %v3108_v43, %v3116_v44  ;;  %v6133_v54 = vcombine.low %v3108_v43, %v3116_v44  ;;  %v3219_v44 = vld [vmem:[#allocation8 + $0x7b0] sm:$0xff] }
 0x752   :  { %4121 = vmatpush1.bf16.msra.mxu1 %v6143_v49  ;;  %4162 = vmatpush1.bf16.msra.mxu0 %v6145_v50  ;;  %v3123_v49 = vld [vmem:[#allocation8 + $0x4b0] sm:$0xff] }
 0x753   :  { %4122 = vmatprep.subr.bf16.mxu1 %v6160_v51  ;;  %4163 = vmatprep.subr.bf16.mxu0 %v6162_v52  ;;  %v3131_v50 = vld [vmem:[#allocation8 + $0x4f0] sm:$0xff]  ;;  %v3124_v51 = vld [vmem:[#allocation8 + $0x4b8] sm:$0xff] }
 0x754   :  { %v3132_v52 = vld [vmem:[#allocation8 + $0x4f8] sm:$0xff]  ;;  %v6148_v55 = vcombine.high %v3123_v49, %v3131_v50  ;;  %v6147_v61 = vcombine.low %v3123_v49, %v3131_v50 }
 0x755   :  { %v6150_v56 = vcombine.high %v3124_v51, %v3132_v52  ;;  %v6149_v62 = vcombine.low %v3124_v51, %v3132_v52 }
 0x756   :  { %4123 = vmatpush1.bf16.msra.mxu1 %v6159_v58  ;;  %4164 = vmatpush1.bf16.msra.mxu0 %v6161_v59  ;;  %v3139_v58 = vld [vmem:[#allocation8 + $0x530] sm:$0xff] }
 0x757   :  { %4124 = vmatprep.subr.bf16.mxu1 %v6176_v27  ;;  %4165 = vmatprep.subr.bf16.mxu0 %v6178_v60  ;;  %v3147_v59 = vld [vmem:[#allocation8 + $0x570] sm:$0xff]  ;;  %v3140_v27 = vld [vmem:[#allocation8 + $0x538] sm:$0xff] }
 0x758   :  { %v3148_v60 = vld [vmem:[#allocation8 + $0x578] sm:$0xff]  ;;  %v6164_v63 = vcombine.high %v3139_v58, %v3147_v59  ;;  %v6163_v6 = vcombine.low %v3139_v58, %v3147_v59  ;;  %v7005_v58 = vld [vmem:[#allocation11 + $0x480] sm:$0xff]   ;;  %v7006_v59 = vld [vmem:[#allocation11 + $0x448] sm:$0xff]  }
 0x759   :  { %v6166_v1 = vcombine.high %v3140_v27, %v3148_v60  ;;  %v6165_v7 = vcombine.low %v3140_v27, %v3148_v60  ;;  %v7007_v27 = vld [vmem:[#allocation11 + $0x4c8] sm:$0xff]  }
 0x75a   :  { %4125 = vmatpush1.bf16.msra.mxu1 %v6175_v2  ;;  %4166 = vmatpush1.bf16.msra.mxu0 %v6177_v3  ;;  %v3155_v2 = vld [vmem:[#allocation8 + $0x5b0] sm:$0xff]  ;;  %v7008_v60 = vld [vmem:[#allocation11 + $0x408] sm:$0xff]  }
 0x75b   :  { %4126 = vmatprep.subr.bf16.mxu1 %v6192_v4  ;;  %4167 = vmatprep.subr.bf16.mxu0 %v6194_v5  ;;  %v3163_v3 = vld [vmem:[#allocation8 + $0x5f0] sm:$0xff]  ;;  %v3156_v4 = vld [vmem:[#allocation8 + $0x5b8] sm:$0xff] }
 0x75c   :  { %v3164_v5 = vld [vmem:[#allocation8 + $0x5f8] sm:$0xff]  ;;  %v6180_v8 = vcombine.high %v3155_v2, %v3163_v3  ;;  %v6179_v12 = vcombine.low %v3155_v2, %v3163_v3  ;;  %v7013_v2 = vld [vmem:[#allocation11 + $0x490] sm:$0xff]  }
 0x75d   :  { %v6182_v9 = vcombine.high %v3156_v4, %v3164_v5  ;;  %v6181_v13 = vcombine.low %v3156_v4, %v3164_v5  ;;  %v7014_v3 = vld [vmem:[#allocation11 + $0x458] sm:$0xff]  }
 0x75e   :  { %4127 = vmatpush1.bf16.msra.mxu1 %v6191_v57  ;;  %4168 = vmatpush1.bf16.msra.mxu0 %v6193_v33  ;;  %v3171_v57 = vld [vmem:[#allocation8 + $0x630] sm:$0xff]  ;;  %v7015_v4 = vld [vmem:[#allocation11 + $0x4d8] sm:$0xff]  }
 0x75f   :  { %4128 = vmatprep.subr.bf16.mxu1 %v6208_v10  ;;  %4169 = vmatprep.subr.bf16.mxu0 %v6210_v11  ;;  %v3179_v33 = vld [vmem:[#allocation8 + $0x670] sm:$0xff]  ;;  %v3172_v10 = vld [vmem:[#allocation8 + $0x638] sm:$0xff] }
 0x760   :  { %v3180_v11 = vld [vmem:[#allocation8 + $0x678] sm:$0xff]  ;;  %v6196_v14 = vcombine.high %v3171_v57, %v3179_v33 }
 0x761   :  { %v6197_v25 = vcombine.low %v3172_v10, %v3180_v11  ;;  %v7016_v5 = vld [vmem:[#allocation11 + $0x418] sm:$0xff]  }
 0x762   :  { %4129 = vmatpush1.bf16.msra.mxu1 %v6207_v16  ;;  %4170 = vmatpush1.bf16.msra.mxu0 %v6209_v17  ;;  %v3195_v16 = vld [vmem:[#allocation8 + $0x6f0] sm:$0xff]  ;;  %v3188_v17 = vld [vmem:[#allocation8 + $0x6b8] sm:$0xff] }
 0x763   :  { %4130 = vmatprep.subr.bf16.mxu1 %v6224_v21  ;;  %4171 = vmatprep.subr.bf16.mxu0 %v6226_v24  ;;  %v3196_v21 = vld [vmem:[#allocation8 + $0x6f8] sm:$0xff]  ;;  %v6195_v24 = vcombine.low %v3171_v57, %v3179_v33  ;;  %v6212_v26 = vcombine.high %v3187_v15, %v3195_v16  ;;  %v7022_v57 = vld [vmem:[#allocation11 + $0x468] sm:$0xff]  }
 0x764   :  { %v6214_v28 = vcombine.high %v3188_v17, %v3196_v21  ;;  %v6213_v41 = vcombine.low %v3188_v17, %v3196_v21  ;;  %v7023_v33 = vld [vmem:[#allocation11 + $0x4e8] sm:$0xff]   ;;  %v7032_v17 = vld [vmem:[#allocation11 + $0x438] sm:$0xff]  }
 0x765   :  { %v7033_v21 = vld [vmem:[#allocation11 + $0x4b8] sm:$0xff]  }
 0x766   :  { %4131 = vmatpush1.bf16.msra.mxu1 %v6223_v29  ;;  %4172 = vmatpush1.bf16.msra.mxu0 %v6225_v37  ;;  %v3211_v29 = vld [vmem:[#allocation8 + $0x770] sm:$0xff]  ;;  %v3204_v37 = vld [vmem:[#allocation8 + $0x738] sm:$0xff] }
 0x767   :  { %4132 = vmatprep.subr.bf16.mxu1 %v6240_v39  ;;  %4173 = vmatprep.subr.bf16.mxu0 %v6242_v40  ;;  %v3212_v39 = vld [vmem:[#allocation8 + $0x778] sm:$0xff]  ;;  %v6211_v40 = vcombine.low %v3187_v15, %v3195_v16  ;;  %v6228_v42 = vcombine.high %v3203_v36, %v3211_v29 }
 0x768   :  { %v6230_v43 = vcombine.high %v3204_v37, %v3212_v39  ;;  %v6229_v49 = vcombine.low %v3204_v37, %v3212_v39  ;;  %v7030_v15 = vld [vmem:[#allocation11 + $0x478] sm:$0xff]  }
 0x769   :  { %v7031_v16 = vld [vmem:[#allocation11 + $0x4f8] sm:$0xff]  }
 0x76a   :  { %4133 = vmatpush1.bf16.msra.mxu1 %v6239_v45  ;;  %4174 = vmatpush1.bf16.msra.mxu0 %v6241_v46  ;;  %v3227_v45 = vld [vmem:[#allocation8 + $0x7f0] sm:$0xff]  ;;  %v3220_v46 = vld [vmem:[#allocation8 + $0x7b8] sm:$0xff] }
 0x76b   :  { %4200 = vmatprep.subr.bf16.mxu1 %v6132_v47  ;;  %4241 = vmatprep.subr.bf16.mxu0 %v6134_v48  ;;  %v3228_v47 = vld [vmem:[#allocation8 + $0x7f8] sm:$0xff]  ;;  %v6227_v48 = vcombine.low %v3203_v36, %v3211_v29  ;;  %v6244_v50 = vcombine.high %v3219_v44, %v3227_v45  ;;  %v6243_v52 = vcombine.low %v3219_v44, %v3227_v45 }
 0x76c   :  { %v6246_v51 = vcombine.high %v3220_v46, %v3228_v47 }
 0x76d   :  { %4151 = vmatmul.mubr.bf16.vlgmr.msra.gmra.mrb[44].mxu1 %v7682_v32  ;;  %4192 = vmatmul.mubr.bf16.vlgmr.msra.gmra.mrb[48].mxu0 %v7682_v32 }
 0x76e   :  { %4201 = vmatpush1.bf16.msra.mxu1 %v6131_v53  ;;  %4242 = vmatpush1.bf16.msra.mxu0 %v6133_v54  ;;  %v6245_v53 = vcombine.low %v3220_v46, %v3228_v47  ;;  %v7002_v54 = vld [vmem:[#allocation11 + $0x440] sm:$0xff]  }
 0x76f   :  { %4202 = vmatprep.subr.bf16.mxu1 %v6148_v55  ;;  %4243 = vmatprep.subr.bf16.mxu0 %v6150_v56  ;;  %v7003_v55 = vld [vmem:[#allocation11 + $0x4c0] sm:$0xff]  }
 0x770   :  { %4232 = vmatprep.mubr.bf16.mxu1 %v7346_v38  ;;  %4273 = vmatprep.mubr.bf16.mxu0 %v7346_v38  ;;  %v6198_v38 = vcombine.high %v3172_v10, %v3180_v11  ;;  %v7004_v56 = vld [vmem:[#allocation11 + $0x400] sm:$0xff]   ;;  %v7024_v10 = vld [vmem:[#allocation11 + $0x428] sm:$0xff]  }
 0x771   :  { %v7025_v11 = vld [vmem:[#allocation11 + $0x4a8] sm:$0xff]  }
 0x772   :  { %4203 = vmatpush1.bf16.msra.mxu1 %v6147_v61  ;;  %4244 = vmatpush1.bf16.msra.mxu0 %v6149_v62  ;;  %v7009_v61 = vld [vmem:[#allocation11 + $0x488] sm:$0xff]   ;;  %v7010_v62 = vld [vmem:[#allocation11 + $0x450] sm:$0xff]  }
 0x773   :  { %4204 = vmatprep.subr.bf16.mxu1 %v6164_v63  ;;  %4245 = vmatprep.subr.bf16.mxu0 %v6166_v1  ;;  %v7011_v63 = vld [vmem:[#allocation11 + $0x4d0] sm:$0xff]  }
 0x774   :  { %v7012_v1 = vld [vmem:[#allocation11 + $0x410] sm:$0xff]  }
 0x776   :  { %4205 = vmatpush1.bf16.msra.mxu1 %v6163_v6  ;;  %4246 = vmatpush1.bf16.msra.mxu0 %v6165_v7  ;;  %v7018_v6 = vld [vmem:[#allocation11 + $0x460] sm:$0xff]  }
 0x777   :  { %4206 = vmatprep.subr.bf16.mxu1 %v6180_v8  ;;  %4247 = vmatprep.subr.bf16.mxu0 %v6182_v9  ;;  %v7019_v7 = vld [vmem:[#allocation11 + $0x4e0] sm:$0xff]  }
 0x778   :  { %v7020_v8 = vld [vmem:[#allocation11 + $0x420] sm:$0xff]  }
 0x779   :  { %v7021_v9 = vld [vmem:[#allocation11 + $0x4a0] sm:$0xff]  }
 0x77a   :  { %4207 = vmatpush1.bf16.msra.mxu1 %v6179_v12  ;;  %4248 = vmatpush1.bf16.msra.mxu0 %v6181_v13  ;;  %v7026_v12 = vld [vmem:[#allocation11 + $0x470] sm:$0xff]  }
 0x77b   :  { %4208 = vmatprep.subr.bf16.mxu1 %v6196_v14  ;;  %4249 = vmatprep.subr.bf16.mxu0 %v6198_v38  ;;  %v7027_v13 = vld [vmem:[#allocation11 + $0x4f0] sm:$0xff]  }
 0x77c   :  { %v7028_v14 = vld [vmem:[#allocation11 + $0x430] sm:$0xff]  }
 0x77d   :  { %v7029_v38 = vld [vmem:[#allocation11 + $0x4b0] sm:$0xff]  }
 0x77e   :  { %4209 = vmatpush1.bf16.msra.mxu1 %v6195_v24  ;;  %4250 = vmatpush1.bf16.msra.mxu0 %v6197_v25  ;;  %v7034_v24 = vld [vmem:[#allocation11 + $0x540] sm:$0xff]  }
 0x77f   :  { %4210 = vmatprep.subr.bf16.mxu1 %v6212_v26  ;;  %4251 = vmatprep.subr.bf16.mxu0 %v6214_v28  ;;  %v7035_v25 = vld [vmem:[#allocation11 + $0x5c0] sm:$0xff]   ;;  %v7698_v26 = vld [vmem:[#allocation10 + $0x10] sm:$0xff] }
 0x780   :  { %v3237_v28 = vrot.slane %v7698_v26, %v7582_v30  ;;  %v3245_v36 = vrot.slane %v7698_v26, %v7585_v31  ;;  %v3241_v29 = vrot.slane %v7698_v26, %v7590_v34  ;;  %v3249_v37 = vrot.slane %v7698_v26, %v7593_v35 }
 0x782   :  { %4211 = vmatpush1.bf16.msra.mxu1 %v6211_v40  ;;  %4252 = vmatpush1.bf16.msra.mxu0 %v6213_v41 }
 0x783   :  { %4212 = vmatprep.subr.bf16.mxu1 %v6228_v42  ;;  %4253 = vmatprep.subr.bf16.mxu0 %v6230_v43 }
 0x786   :  { %4213 = vmatpush1.bf16.msra.mxu1 %v6227_v48  ;;  %4254 = vmatpush1.bf16.msra.mxu0 %v6229_v49 }
 0x787   :  { %4214 = vmatprep.subr.bf16.mxu1 %v6244_v50  ;;  %4255 = vmatprep.subr.bf16.mxu0 %v6246_v51 }
 0x78a   :  { %4215 = vmatpush1.bf16.msra.mxu1 %v6243_v52  ;;  %4256 = vmatpush1.bf16.msra.mxu0 %v6245_v53 }
 0x78b   :  { %6587 = vmatprep.subr.bf16.mxu1 %v7002_v54  ;;  %6609 = vmatprep.subr.bf16.mxu0 %v7003_v55 }
 0x78d   :  { %4233 = vmatmul.mubr.bf16.vlgmr.msra.gmra.mrb[48].mxu1 %v7682_v32  ;;  %4274 = vmatmul.mubr.bf16.vlgmr.msra.gmra.mrb[52].mxu0 %v7682_v32  ;;  %v7017_v32 = vld [vmem:[#allocation11 + $0x498] sm:$0xff]  }
 0x78e   :  { %6588 = vmatpush3.bf16.msra.mxu1 %v7004_v56  ;;  %6610 = vmatpush3.bf16.msra.mxu0 %v7005_v58  ;;  %v7036_v58 = vld [vmem:[#allocation11 + $0x500] sm:$0xff]  }
 0x78f   :  { %6589 = vmatprep.subr.bf16.mxu1 %v7006_v59  ;;  %6611 = vmatprep.subr.bf16.mxu0 %v7007_v27  ;;  %v7037_v59 = vld [vmem:[#allocation11 + $0x580] sm:$0xff]  }
 0x792   :  { %6590 = vmatpush3.bf16.msra.mxu1 %v7008_v60  ;;  %6612 = vmatpush3.bf16.msra.mxu0 %v7009_v61  ;;  %v7038_v61 = vld [vmem:[#allocation11 + $0x548] sm:$0xff]  }
 0x793   :  { %6591 = vmatprep.subr.bf16.mxu1 %v7010_v62  ;;  %6613 = vmatprep.subr.bf16.mxu0 %v7011_v63  ;;  %v7039_v62 = vld [vmem:[#allocation11 + $0x5c8] sm:$0xff]  }
 0x794   :  { %v7040_v63 = vld [vmem:[#allocation11 + $0x508] sm:$0xff]  }
 0x796   :  { %6592 = vmatpush3.bf16.msra.mxu1 %v7012_v1  ;;  %6614 = vmatpush3.bf16.msra.mxu0 %v7013_v2  ;;  %v7041_v1 = vld [vmem:[#allocation11 + $0x588] sm:$0xff]   ;;  %v7042_v2 = vld [vmem:[#allocation11 + $0x550] sm:$0xff]  }
 0x797   :  { %6593 = vmatprep.subr.bf16.mxu1 %v7014_v3  ;;  %6615 = vmatprep.subr.bf16.mxu0 %v7015_v4  ;;  %v7043_v3 = vld [vmem:[#allocation11 + $0x5d0] sm:$0xff]  }
 0x798   :  { %v7044_v4 = vld [vmem:[#allocation11 + $0x510] sm:$0xff]  }
 0x79a   :  { %6594 = vmatpush3.bf16.msra.mxu1 %v7016_v5  ;;  %6616 = vmatpush3.bf16.msra.mxu0 %v7017_v32  ;;  %v7045_v5 = vld [vmem:[#allocation11 + $0x590] sm:$0xff]   ;;  %v7046_v32 = vld [vmem:[#allocation11 + $0x558] sm:$0xff]  }
 0x79b   :  { %6595 = vmatprep.subr.bf16.mxu1 %v7018_v6  ;;  %6617 = vmatprep.subr.bf16.mxu0 %v7019_v7  ;;  %v7047_v6 = vld [vmem:[#allocation11 + $0x5d8] sm:$0xff]  }
 0x79c   :  { %v7048_v7 = vld [vmem:[#allocation11 + $0x518] sm:$0xff]  }
 0x79e   :  { %6596 = vmatpush3.bf16.msra.mxu1 %v7020_v8  ;;  %6618 = vmatpush3.bf16.msra.mxu0 %v7021_v9  ;;  %v7049_v8 = vld [vmem:[#allocation11 + $0x598] sm:$0xff]   ;;  %v7050_v9 = vld [vmem:[#allocation11 + $0x560] sm:$0xff]  }
 0x79f   :  { %6597 = vmatprep.subr.bf16.mxu1 %v7022_v57  ;;  %6619 = vmatprep.subr.bf16.mxu0 %v7023_v33  ;;  %v7051_v57 = vld [vmem:[#allocation11 + $0x5e0] sm:$0xff]  }
 0x7a0   :  { %v7052_v33 = vld [vmem:[#allocation11 + $0x520] sm:$0xff]  }
 0x7a2   :  { %6598 = vmatpush3.bf16.msra.mxu1 %v7024_v10  ;;  %6620 = vmatpush3.bf16.msra.mxu0 %v7025_v11  ;;  %v7053_v10 = vld [vmem:[#allocation11 + $0x5a0] sm:$0xff]   ;;  %v7054_v11 = vld [vmem:[#allocation11 + $0x568] sm:$0xff]  }
 0x7a3   :  { %6599 = vmatprep.subr.bf16.mxu1 %v7026_v12  ;;  %6621 = vmatprep.subr.bf16.mxu0 %v7027_v13  ;;  %v7055_v12 = vld [vmem:[#allocation11 + $0x5e8] sm:$0xff]  }
 0x7a4   :  { %v7056_v13 = vld [vmem:[#allocation11 + $0x528] sm:$0xff]  }
 0x7a6   :  { %6600 = vmatpush3.bf16.msra.mxu1 %v7028_v14  ;;  %6622 = vmatpush3.bf16.msra.mxu0 %v7029_v38  ;;  %v7057_v14 = vld [vmem:[#allocation11 + $0x5a8] sm:$0xff]   ;;  %v7058_v38 = vld [vmem:[#allocation11 + $0x570] sm:$0xff]  }
 0x7a7   :  { %6601 = vmatprep.subr.bf16.mxu1 %v7030_v15  ;;  %6623 = vmatprep.subr.bf16.mxu0 %v7031_v16  ;;  %v7059_v15 = vld [vmem:[#allocation11 + $0x5f0] sm:$0xff]   ;;  %v3253_v16 = vrot.slane %v7698_v26, %v7604_v18 }
 0x7aa   :  { %6602 = vmatpush3.bf16.msra.mxu1 %v7032_v17  ;;  %6624 = vmatpush3.bf16.msra.mxu0 %v7033_v21  ;;  %v3261_v17 = vrot.slane %v7698_v26, %v7607_v19  ;;  %v3257_v21 = vrot.slane %v7698_v26, %v7610_v22 }
 0x7ab   :  { %6631 = vmatprep.subr.bf16.mxu1 %v7034_v24  ;;  %6653 = vmatprep.subr.bf16.mxu0 %v7035_v25  ;;  %v3265_v24 = vrot.slane %v7698_v26, %v7613_v23  ;;  %v7060_v25 = vld [vmem:[#allocation11 + $0x530] sm:$0xff]   ;;  %v7065_v26 = vld [vmem:[#allocation11 + $0x5b8] sm:$0xff]  }
 0x800   :  { %v3988_v39 = vpop.f32.mrb[36].mxu1  ;;  %v4029_v40 = vpop.f32.mrb[40].mxu0 }
 0x801   :  { %v3989_v41 = vadd.f32 %v3988_v39, %v3237_v28  ;;  %v4030_v42 = vadd.f32 %v4029_v40, %v3245_v36  ;;  %v3990_v43 = vpop.f32.mrb[37].mxu1  ;;  %v4031_v44 = vpop.f32.mrb[41].mxu0  ;;  %v7061_v28 = vld [vmem:[#allocation11 + $0x5b0] sm:$0xff]   ;;  %v7062_v36 = vld [vmem:[#allocation11 + $0x578] sm:$0xff]  }
 0x802   :  { %v3991_v45 = vadd.f32 %v3990_v43, %v3241_v29  ;;  %v4032_v46 = vadd.f32 %v4031_v44, %v3249_v37  ;;  %v3992_v47 = vpop.f32.mrb[38].mxu1  ;;  %v4033_v48 = vpop.f32.mrb[42].mxu0  ;;  %v7063_v29 = vld [vmem:[#allocation11 + $0x5f8] sm:$0xff]  }
 0x803   :  { %v4282_v49 = vmax.f32 %v3989_v41, 0.0  ;;  %v4284_v50 = vmax.f32 %v4030_v42, 0.0  ;;  %v3993_v51 = vpop.f32.mrb[39].mxu1  ;;  %v4034_v52 = vpop.f32.mrb[43].mxu0  ;;  %v7064_v48 = vld [vmem:[#allocation11 + $0x538] sm:$0xff]  }
 0x804   :  { %v4283_v53 = vmax.f32 %v3991_v45, 0.0  ;;  %v4285_v54 = vmax.f32 %v4032_v46, 0.0 }
 0x805   :  { %v4298_v27 = vpack.c.bf16 %v4282_v49, %v4282_v49  ;;  %v4300_v60 = vpack.c.bf16 %v4284_v50, %v4284_v50 }
 0x806   :  { %v4299_v55 = vpack.c.bf16 %v4283_v53, %v4283_v53  ;;  %v4301_v56 = vpack.c.bf16 %v4285_v54, %v4285_v54  ;;  %v7066_v53 = vld [vmem:[#allocation11 + $0x640] sm:$0xff]  }
 0x807   :  { %v7067_v54 = vld [vmem:[#allocation11 + $0x6c0] sm:$0xff]  }
 0x808   :  { %5379 = vmatprep.mubr.bf16.mxu1 %v4299_v55  ;;  %5419 = vmatprep.mubr.bf16.mxu0 %v4301_v56 }
 0x809   :  { %5380 = vmatmul.mubr.bf16.vlgmr.msra.gmra.mrb[52].mxu1 %v4298_v27  ;;  %5420 = vmatmul.mubr.bf16.vlgmr.msra.gmra.mrb[56].mxu0 %v4300_v60  ;;  %v7068_v27 = vld [vmem:[#allocation11 + $0x600] sm:$0xff]  }
 0x80a   :  { %6632 = vmatpush3.bf16.msra.mxu1 %v7036_v58  ;;  %6654 = vmatpush3.bf16.msra.mxu0 %v7037_v59  ;;  %v7069_v60 = vld [vmem:[#allocation11 + $0x680] sm:$0xff]  }
 0x80b   :  { %6633 = vmatprep.subr.bf16.mxu1 %v7038_v61  ;;  %6655 = vmatprep.subr.bf16.mxu0 %v7039_v62 }
 0x80e   :  { %6634 = vmatpush3.bf16.msra.mxu1 %v7040_v63  ;;  %6656 = vmatpush3.bf16.msra.mxu0 %v7041_v1  ;;  %v7070_v63 = vld [vmem:[#allocation11 + $0x648] sm:$0xff]  }
 0x80f   :  { %6635 = vmatprep.subr.bf16.mxu1 %v7042_v2  ;;  %6657 = vmatprep.subr.bf16.mxu0 %v7043_v3  ;;  %v7071_v1 = vld [vmem:[#allocation11 + $0x6c8] sm:$0xff]  }
 0x810   :  { %v7072_v2 = vld [vmem:[#allocation11 + $0x608] sm:$0xff]  }
 0x811   :  { %v7073_v3 = vld [vmem:[#allocation11 + $0x688] sm:$0xff]  }
 0x812   :  { %6636 = vmatpush3.bf16.msra.mxu1 %v7044_v4  ;;  %6658 = vmatpush3.bf16.msra.mxu0 %v7045_v5  ;;  %v7074_v4 = vld [vmem:[#allocation11 + $0x650] sm:$0xff]  }
 0x813   :  { %6637 = vmatprep.subr.bf16.mxu1 %v7046_v32  ;;  %6659 = vmatprep.subr.bf16.mxu0 %v7047_v6  ;;  %v7075_v5 = vld [vmem:[#allocation11 + $0x6d0] sm:$0xff]  }
 0x814   :  { %v7076_v32 = vld [vmem:[#allocation11 + $0x610] sm:$0xff]  }
 0x815   :  { %v7077_v6 = vld [vmem:[#allocation11 + $0x690] sm:$0xff]  }
 0x816   :  { %6638 = vmatpush3.bf16.msra.mxu1 %v7048_v7  ;;  %6660 = vmatpush3.bf16.msra.mxu0 %v7049_v8  ;;  %v7078_v7 = vld [vmem:[#allocation11 + $0x658] sm:$0xff]  }
 0x817   :  { %6639 = vmatprep.subr.bf16.mxu1 %v7050_v9  ;;  %6661 = vmatprep.subr.bf16.mxu0 %v7051_v57  ;;  %v7079_v8 = vld [vmem:[#allocation11 + $0x6d8] sm:$0xff]  }
 0x818   :  { %v7080_v9 = vld [vmem:[#allocation11 + $0x618] sm:$0xff]  }
 0x819   :  { %v7081_v57 = vld [vmem:[#allocation11 + $0x698] sm:$0xff]  }
 0x81a   :  { %6640 = vmatpush3.bf16.msra.mxu1 %v7052_v33  ;;  %6662 = vmatpush3.bf16.msra.mxu0 %v7053_v10  ;;  %v7082_v33 = vld [vmem:[#allocation11 + $0x660] sm:$0xff]  }
 0x81b   :  { %6641 = vmatprep.subr.bf16.mxu1 %v7054_v11  ;;  %6663 = vmatprep.subr.bf16.mxu0 %v7055_v12  ;;  %v7083_v10 = vld [vmem:[#allocation11 + $0x6e0] sm:$0xff]  }
 0x81c   :  { %v7084_v11 = vld [vmem:[#allocation11 + $0x620] sm:$0xff]  }
 0x81d   :  { %v7085_v12 = vld [vmem:[#allocation11 + $0x6a0] sm:$0xff]  }
 0x81e   :  { %6642 = vmatpush3.bf16.msra.mxu1 %v7056_v13  ;;  %6664 = vmatpush3.bf16.msra.mxu0 %v7057_v14  ;;  %v7086_v13 = vld [vmem:[#allocation11 + $0x668] sm:$0xff]  }
 0x81f   :  { %6643 = vmatprep.subr.bf16.mxu1 %v7058_v38  ;;  %6665 = vmatprep.subr.bf16.mxu0 %v7059_v15  ;;  %v7087_v14 = vld [vmem:[#allocation11 + $0x6e8] sm:$0xff]  }
 0x820   :  { %v4070_v37 = vpop.f32.mrb[40].mxu1  ;;  %v4111_v39 = vpop.f32.mrb[44].mxu0  ;;  %v7088_v38 = vld [vmem:[#allocation11 + $0x628] sm:$0xff]  }
 0x821   :  { %v4071_v40 = vadd.f32 %v4070_v37, %v3253_v16  ;;  %v4112_v41 = vadd.f32 %v4111_v39, %v3261_v17  ;;  %v4072_v42 = vpop.f32.mrb[41].mxu1  ;;  %v4113_v43 = vpop.f32.mrb[45].mxu0  ;;  %v7089_v15 = vld [vmem:[#allocation11 + $0x6a8] sm:$0xff]   ;;  %v7716_v16 = vld [vmem:[#allocation10 + $0x18] sm:$0xff]  ;;  %v7090_v17 = vld [vmem:[#allocation11 + $0x670] sm:$0xff]  }
 0x822   :  { %v4073_v44 = vadd.f32 %v4072_v42, %v3257_v21  ;;  %v4114_v45 = vadd.f32 %v4113_v43, %v3265_v24  ;;  %v4074_v46 = vpop.f32.mrb[42].mxu1  ;;  %v4115_v47 = vpop.f32.mrb[46].mxu0  ;;  %6644 = vmatpush3.bf16.msra.mxu1 %v7060_v25  ;;  %6666 = vmatpush3.bf16.msra.mxu0 %v7061_v28  ;;  %v7091_v21 = vld [vmem:[#allocation11 + $0x6f0] sm:$0xff]   ;;  %v3269_v24 = vrot.slane %v7716_v16, %v7582_v30  ;;  %v7094_v39 = vld [vmem:[#allocation11 + $0x678] sm:$0xff]  }
 0x823   :  { %v4286_v49 = vmax.f32 %v4071_v40, 0.0  ;;  %v4288_v50 = vmax.f32 %v4112_v41, 0.0  ;;  %v4075_v51 = vpop.f32.mrb[43].mxu1  ;;  %v4116_v52 = vpop.f32.mrb[47].mxu0  ;;  %6645 = vmatprep.subr.bf16.mxu1 %v7062_v36  ;;  %6667 = vmatprep.subr.bf16.mxu0 %v7063_v29  ;;  %v3277_v25 = vrot.slane %v7716_v16, %v7585_v31  ;;  %v3273_v28 = vrot.slane %v7716_v16, %v7590_v34  ;;  %v7092_v29 = vld [vmem:[#allocation11 + $0x630] sm:$0xff]   ;;  %v7095_v40 = vld [vmem:[#allocation11 + $0x6f8] sm:$0xff]  }
 0x824   :  { %v4287_v55 = vmax.f32 %v4073_v44, 0.0  ;;  %v4289_v56 = vmax.f32 %v4114_v45, 0.0  ;;  %v3281_v36 = vrot.slane %v7716_v16, %v7593_v35  ;;  %v7093_v37 = vld [vmem:[#allocation11 + $0x6b0] sm:$0xff]   ;;  %v7096_v34 = vld [vmem:[#allocation11 + $0x638] sm:$0xff]   ;;  %v7098_v52 = vld [vmem:[#allocation11 + $0x740] sm:$0xff]  }
 0x825   :  { %v4302_v61 = vpack.c.bf16 %v4286_v49, %v4286_v49  ;;  %v4304_v62 = vpack.c.bf16 %v4288_v50, %v4288_v50  ;;  %v7097_v35 = vld [vmem:[#allocation11 + $0x6b8] sm:$0xff]  }
 0x826   :  { %v4303_v58 = vpack.c.bf16 %v4287_v55, %v4287_v55  ;;  %v4305_v59 = vpack.c.bf16 %v4289_v56, %v4289_v56  ;;  %6646 = vmatpush3.bf16.msra.mxu1 %v7064_v48  ;;  %6668 = vmatpush3.bf16.msra.mxu0 %v7065_v26 }
 0x827   :  { %6675 = vmatprep.subr.bf16.mxu1 %v7066_v53  ;;  %6697 = vmatprep.subr.bf16.mxu0 %v7067_v54  ;;  %v7099_v53 = vld [vmem:[#allocation11 + $0x7c0] sm:$0xff]  }
 0x828   :  { %5459 = vmatprep.mubr.bf16.mxu1 %v4303_v58  ;;  %5499 = vmatprep.mubr.bf16.mxu0 %v4305_v59  ;;  %v7100_v59 = vld [vmem:[#allocation11 + $0x700] sm:$0xff]  }
 0x829   :  { %5460 = vmatmul.mubr.bf16.vlgmr.msra.gmra.mrb[56].mxu1 %v4302_v61  ;;  %5500 = vmatmul.mubr.bf16.vlgmr.msra.gmra.mrb[60].mxu0 %v4304_v62  ;;  %v7102_v62 = vld [vmem:[#allocation11 + $0x748] sm:$0xff]  }
 0x82a   :  { %6676 = vmatpush3.bf16.msra.mxu1 %v7068_v27  ;;  %6698 = vmatpush3.bf16.msra.mxu0 %v7069_v60  ;;  %v7101_v27 = vld [vmem:[#allocation11 + $0x780] sm:$0xff]  }
 0x82b   :  { %6677 = vmatprep.subr.bf16.mxu1 %v7070_v63  ;;  %6699 = vmatprep.subr.bf16.mxu0 %v7071_v1  ;;  %v7103_v63 = vld [vmem:[#allocation11 + $0x7c8] sm:$0xff]  }
 0x82c   :  { %v7104_v1 = vld [vmem:[#allocation11 + $0x708] sm:$0xff]  }
 0x82e   :  { %6678 = vmatpush3.bf16.msra.mxu1 %v7072_v2  ;;  %6700 = vmatpush3.bf16.msra.mxu0 %v7073_v3  ;;  %v7105_v2 = vld [vmem:[#allocation11 + $0x788] sm:$0xff]   ;;  %v7106_v3 = vld [vmem:[#allocation11 + $0x750] sm:$0xff]  }
 0x82f   :  { %6679 = vmatprep.subr.bf16.mxu1 %v7074_v4  ;;  %6701 = vmatprep.subr.bf16.mxu0 %v7075_v5  ;;  %v7107_v4 = vld [vmem:[#allocation11 + $0x7d0] sm:$0xff]  }
 0x830   :  { %v7108_v5 = vld [vmem:[#allocation11 + $0x710] sm:$0xff]  }
 0x832   :  { %6680 = vmatpush3.bf16.msra.mxu1 %v7076_v32  ;;  %6702 = vmatpush3.bf16.msra.mxu0 %v7077_v6  ;;  %v7109_v32 = vld [vmem:[#allocation11 + $0x790] sm:$0xff]   ;;  %v7110_v6 = vld [vmem:[#allocation11 + $0x758] sm:$0xff]  }
 0x833   :  { %6681 = vmatprep.subr.bf16.mxu1 %v7078_v7  ;;  %6703 = vmatprep.subr.bf16.mxu0 %v7079_v8  ;;  %v7111_v7 = vld [vmem:[#allocation11 + $0x7d8] sm:$0xff]  }
 0x834   :  { %v7112_v8 = vld [vmem:[#allocation11 + $0x718] sm:$0xff]  }
 0x836   :  { %6682 = vmatpush3.bf16.msra.mxu1 %v7080_v9  ;;  %6704 = vmatpush3.bf16.msra.mxu0 %v7081_v57  ;;  %v7113_v9 = vld [vmem:[#allocation11 + $0x798] sm:$0xff]   ;;  %v7114_v57 = vld [vmem:[#allocation11 + $0x760] sm:$0xff]  }
 0x837   :  { %6683 = vmatprep.subr.bf16.mxu1 %v7082_v33  ;;  %6705 = vmatprep.subr.bf16.mxu0 %v7083_v10  ;;  %v7115_v33 = vld [vmem:[#allocation11 + $0x7e0] sm:$0xff]  }
 0x838   :  { %v7116_v10 = vld [vmem:[#allocation11 + $0x720] sm:$0xff]  }
 0x83a   :  { %6684 = vmatpush3.bf16.msra.mxu1 %v7084_v11  ;;  %6706 = vmatpush3.bf16.msra.mxu0 %v7085_v12  ;;  %v7117_v11 = vld [vmem:[#allocation11 + $0x7a0] sm:$0xff]   ;;  %v7118_v12 = vld [vmem:[#allocation11 + $0x768] sm:$0xff]  }
 0x83b   :  { %6685 = vmatprep.subr.bf16.mxu1 %v7086_v13  ;;  %6707 = vmatprep.subr.bf16.mxu0 %v7087_v14  ;;  %v7119_v13 = vld [vmem:[#allocation11 + $0x7e8] sm:$0xff]  }
 0x83c   :  { %v7120_v14 = vld [vmem:[#allocation11 + $0x728] sm:$0xff]  }
 0x83e   :  { %6686 = vmatpush3.bf16.msra.mxu1 %v7088_v38  ;;  %6708 = vmatpush3.bf16.msra.mxu0 %v7089_v15  ;;  %v7121_v38 = vld [vmem:[#allocation11 + $0x7a8] sm:$0xff]   ;;  %v7122_v15 = vld [vmem:[#allocation11 + $0x770] sm:$0xff]  }
 0x83f   :  { %6687 = vmatprep.subr.bf16.mxu1 %v7090_v17  ;;  %6709 = vmatprep.subr.bf16.mxu0 %v7091_v21  ;;  %v7123_v17 = vld [vmem:[#allocation11 + $0x7f0] sm:$0xff]   ;;  %v3285_v21 = vrot.slane %v7716_v16, %v7604_v18 }
 0x840   :  { %v4152_v41 = vpop.f32.mrb[44].mxu1  ;;  %v4193_v42 = vpop.f32.mrb[48].mxu0 }
 0x841   :  { %v4153_v30 = vadd.f32 %v4152_v41, %v3269_v24  ;;  %v4194_v43 = vadd.f32 %v4193_v42, %v3277_v25  ;;  %v4154_v44 = vpop.f32.mrb[45].mxu1  ;;  %v4195_v31 = vpop.f32.mrb[49].mxu0  ;;  %v3293_v24 = vrot.slane %v7716_v16, %v7607_v19  ;;  %v3289_v25 = vrot.slane %v7716_v16, %v7610_v22  ;;  %v7128_v22 = vld [vmem:[#allocation11 + $0x738] sm:$0xff]  }
 0x842   :  { %v4155_v45 = vadd.f32 %v4154_v44, %v3273_v28  ;;  %v4196_v46 = vadd.f32 %v4195_v31, %v3281_v36  ;;  %v4156_v47 = vpop.f32.mrb[46].mxu1  ;;  %v4197_v48 = vpop.f32.mrb[50].mxu0  ;;  %6688 = vmatpush3.bf16.msra.mxu1 %v7092_v29  ;;  %6710 = vmatpush3.bf16.msra.mxu0 %v7093_v37  ;;  %v3297_v28 = vrot.slane %v7716_v16, %v7613_v23  ;;  %v7124_v36 = vld [vmem:[#allocation11 + $0x730] sm:$0xff]   ;;  %v7126_v37 = vld [vmem:[#allocation11 + $0x778] sm:$0xff]  }
 0x843   :  { %v4290_v26 = vmax.f32 %v4153_v30, 0.0  ;;  %v4292_v49 = vmax.f32 %v4194_v43, 0.0  ;;  %v4157_v50 = vpop.f32.mrb[47].mxu1  ;;  %v4198_v51 = vpop.f32.mrb[51].mxu0  ;;  %6689 = vmatprep.subr.bf16.mxu1 %v7094_v39  ;;  %6711 = vmatprep.subr.bf16.mxu0 %v7095_v40  ;;  %v7125_v29 = vld [vmem:[#allocation11 + $0x7b0] sm:$0xff]   ;;  %v7127_v39 = vld [vmem:[#allocation11 + $0x7f8] sm:$0xff]  }
 0x844   :  { %v4291_v54 = vmax.f32 %v4155_v45, 0.0  ;;  %v4293_v55 = vmax.f32 %v4196_v46, 0.0  ;;  %v7129_v23 = vld [vmem:[#allocation11 + $0x7b8] sm:$0xff]  }
 0x845   :  { %v4306_v60 = vpack.c.bf16 %v4290_v26, %v4290_v26  ;;  %v4308_v61 = vpack.c.bf16 %v4292_v49, %v4292_v49 }
 0x846   :  { %v4307_v56 = vpack.c.bf16 %v4291_v54, %v4291_v54  ;;  %v4309_v58 = vpack.c.bf16 %v4293_v55, %v4293_v55  ;;  %6690 = vmatpush3.bf16.msra.mxu1 %v7096_v34  ;;  %6712 = vmatpush3.bf16.msra.mxu0 %v7097_v35  ;;  %v6248_v55 = vld [vmem:[%s7779_s10 + $0x1] ss:$0 sm:$0xff] }
 0x847   :  { %6719 = vmatprep.subr.bf16.mxu1 %v7098_v52  ;;  %6741 = vmatprep.subr.bf16.mxu0 %v7099_v53  ;;  %v7130_v52 = vld [vmem:[#allocation13] sm:$0xff]  }
 0x848   :  { %5539 = vmatprep.mubr.bf16.mxu1 %v4307_v56  ;;  %5579 = vmatprep.mubr.bf16.mxu0 %v4309_v58 }
 0x849   :  { %5540 = vmatmul.mubr.bf16.vlgmr.msra.gmra.mrb[60].mxu1 %v4306_v60  ;;  %5580 = vmatmul.mubr.bf16.vlgmr.msra.gmra.mrb[64].mxu0 %v4308_v61 }
 0x84a   :  { %6720 = vmatpush3.bf16.msra.mxu1 %v7100_v59  ;;  %6742 = vmatpush3.bf16.msra.mxu0 %v7101_v27 }
 0x84b   :  { %6721 = vmatprep.subr.bf16.mxu1 %v7102_v62  ;;  %6743 = vmatprep.subr.bf16.mxu0 %v7103_v63 }
 0x84e   :  { %6722 = vmatpush3.bf16.msra.mxu1 %v7104_v1  ;;  %6744 = vmatpush3.bf16.msra.mxu0 %v7105_v2 }
 0x84f   :  { %6723 = vmatprep.subr.bf16.mxu1 %v7106_v3  ;;  %6745 = vmatprep.subr.bf16.mxu0 %v7107_v4 }
 0x852   :  { %6724 = vmatpush3.bf16.msra.mxu1 %v7108_v5  ;;  %6746 = vmatpush3.bf16.msra.mxu0 %v7109_v32 }
 0x853   :  { %6725 = vmatprep.subr.bf16.mxu1 %v7110_v6  ;;  %6747 = vmatprep.subr.bf16.mxu0 %v7111_v7 }
 0x856   :  { %6726 = vmatpush3.bf16.msra.mxu1 %v7112_v8  ;;  %6748 = vmatpush3.bf16.msra.mxu0 %v7113_v9 }
 0x857   :  { %6727 = vmatprep.subr.bf16.mxu1 %v7114_v57  ;;  %6749 = vmatprep.subr.bf16.mxu0 %v7115_v33 }
 0x85a   :  { %6728 = vmatpush3.bf16.msra.mxu1 %v7116_v10  ;;  %6750 = vmatpush3.bf16.msra.mxu0 %v7117_v11 }
 0x85b   :  { %6729 = vmatprep.subr.bf16.mxu1 %v7118_v12  ;;  %6751 = vmatprep.subr.bf16.mxu0 %v7119_v13 }
 0x85e   :  { %6730 = vmatpush3.bf16.msra.mxu1 %v7120_v14  ;;  %6752 = vmatpush3.bf16.msra.mxu0 %v7121_v38 }
 0x85f   :  { %6731 = vmatprep.subr.bf16.mxu1 %v7122_v15  ;;  %6753 = vmatprep.subr.bf16.mxu0 %v7123_v17 }
 0x860   :  { %v4234_v40 = vpop.f32.mrb[48].mxu1  ;;  %v4275_v41 = vpop.f32.mrb[52].mxu0 }
 0x861   :  { %v4235_v18 = vadd.f32 %v4234_v40, %v3285_v21  ;;  %v4276_v42 = vadd.f32 %v4275_v41, %v3293_v24  ;;  %v4236_v30 = vpop.f32.mrb[49].mxu1  ;;  %v4277_v19 = vpop.f32.mrb[53].mxu0 }
 0x862   :  { %v4237_v43 = vadd.f32 %v4236_v30, %v3289_v25  ;;  %v4278_v44 = vadd.f32 %v4277_v19, %v3297_v28  ;;  %v4238_v31 = vpop.f32.mrb[50].mxu1  ;;  %v4279_v45 = vpop.f32.mrb[54].mxu0  ;;  %6732 = vmatpush3.bf16.msra.mxu1 %v7124_v36  ;;  %6754 = vmatpush3.bf16.msra.mxu0 %v7125_v29 }
 0x863   :  { %v4294_v16 = vmax.f32 %v4235_v18, 0.0  ;;  %v4296_v46 = vmax.f32 %v4276_v42, 0.0  ;;  %v4239_v47 = vpop.f32.mrb[51].mxu1  ;;  %v4280_v48 = vpop.f32.mrb[55].mxu0  ;;  %6733 = vmatprep.subr.bf16.mxu1 %v7126_v37  ;;  %6755 = vmatprep.subr.bf16.mxu0 %v7127_v39 }
 0x864   :  { %v4295_v34 = vmax.f32 %v4237_v43, 0.0  ;;  %v4297_v35 = vmax.f32 %v4278_v44, 0.0  ;;  %v7133_v47 = vld [vmem:[#allocation13 + $0x18] sm:$0xff]   ;;  %v7134_v48 = vld [vmem:[#allocation13 + $0x20] sm:$0xff]  }
 0x865   :  { %v4310_v50 = vpack.c.bf16 %v4294_v16, %v4294_v16  ;;  %v4312_v51 = vpack.c.bf16 %v4296_v46, %v4296_v46  ;;  %v7131_v16 = vld [vmem:[#allocation13 + $0x8] sm:$0xff]   ;;  %v7132_v46 = vld [vmem:[#allocation13 + $0x10] sm:$0xff]  }
 0x866   :  { %v4311_v26 = vpack.c.bf16 %v4295_v34, %v4295_v34  ;;  %v4313_v49 = vpack.c.bf16 %v4297_v35, %v4297_v35  ;;  %6734 = vmatpush3.bf16.msra.mxu1 %v7128_v22  ;;  %6756 = vmatpush3.bf16.msra.mxu0 %v7129_v23  ;;  %v7135_v34 = vld [vmem:[#allocation13 + $0x28] sm:$0xff]   ;;  %v7137_v35 = vld [vmem:[#allocation13 + $0x38] sm:$0xff]  }
 0x867   :  { %6820 = vmatprep.subr.bf16.mxu1 %v7344_v0 }
 0x868   :  { %5619 = vmatprep.mubr.bf16.mxu1 %v4311_v26  ;;  %5659 = vmatprep.mubr.bf16.mxu0 %v4313_v49 }
 0x869   :  { %5620 = vmatmul.mubr.bf16.vlgmr.msra.gmra.mrb[64].mxu1 %v4310_v50  ;;  %5660 = vmatmul.mubr.bf16.vlgmr.msra.gmra.mrb[68].mxu0 %v4312_v51 }
 0x86a   :  { %6836 = vmatprep.mubr.msk.bf16.mxu1 %vm7345_vm0, %v7344_v0  ;;  %6821 = vmatpush3.bf16.msra.mxu1 %v7130_v52 }
 0x86b   :  { %6822 = vmatprep.subr.bf16.mxu1 %v7344_v0 }
 0x86e   :  { %6823 = vmatpush3.bf16.msra.mxu1 %v7131_v16 }
 0x86f   :  { %6824 = vmatprep.subr.bf16.mxu1 %v7344_v0 }
 0x872   :  { %6825 = vmatpush3.bf16.msra.mxu1 %v7132_v46 }
 0x873   :  { %6826 = vmatprep.subr.bf16.mxu1 %v7344_v0 }
 0x876   :  { %6827 = vmatpush3.bf16.msra.mxu1 %v7133_v47 }
 0x877   :  { %6828 = vmatprep.subr.bf16.mxu1 %v7344_v0 }
 0x87a   :  { %6829 = vmatpush3.bf16.msra.mxu1 %v7134_v48 }
 0x87b   :  { %6830 = vmatprep.subr.bf16.mxu1 %v7344_v0 }
 0x87e   :  { %6831 = vmatpush3.bf16.msra.mxu1 %v7135_v34 }
 0x87f   :  { %6832 = vmatprep.subr.bf16.mxu1 %v7344_v0 }
 0x8dc   :  { %v6603_v53 = vpop.f32.mrb[52].mxu1  ;;  %v6625_v54 = vpop.f32.mrb[56].mxu0 }
 0x8dd   :  { %v6604_v56 = vpop.f32.mrb[53].mxu1  ;;  %v6626_v58 = vpop.f32.mrb[57].mxu0 }
 0x8de   :  { %v6605_v59 = vadd.f32 %v6604_v56, %v6603_v53  ;;  %v6627_v27 = vadd.f32 %v6626_v58, %v6625_v54  ;;  %v6606_v60 = vpop.f32.mrb[54].mxu1  ;;  %v6628_v61 = vpop.f32.mrb[58].mxu0 }
 0x8df   :  { %v6607_v62 = vpop.f32.mrb[55].mxu1  ;;  %v6629_v63 = vpop.f32.mrb[59].mxu0 }
 0x8e0   :  { %v5382_v1 = vadd.f32 %v6605_v59, %v6248_v55  ;;  %v6379_v59 = vld [vmem:[%s7780_s11 + $0x1] ss:$0 sm:$0xff]  ;;  %v6381_v63 = vld [vmem:[%s7783_s14] ss:$0 sm:$0xff]  ;;  %s7300_s11 = scalar_lea.vmem %s5820_s2, 128 }
 0x8e1   :  { %p7301_p0 = scmp.ne.s32.totalorder %s5820_s2, %s7300_s11  ;;  %p7306_p2 = scmp.lt.s32.totalorder %s7300_s11, %s7300_s11 }
 0x8e2   :  { %v5422_v2 = vadd.f32 %v6627_v27, %v5382_v1 }
 0x8e3   :  { %p7307_p3 = por %p7306_p2, %p7305_p1 }
 0x8e5   :  { %p7308_p4 = pnand %p7307_p3, %p7301_p0 }
 0x8fc   :  { %v6647_v3 = vpop.f32.mrb[56].mxu1  ;;  %v6669_v4 = vpop.f32.mrb[60].mxu0 }
 0x8fd   :  { %v6648_v5 = vpop.f32.mrb[57].mxu1  ;;  %v6670_v32 = vpop.f32.mrb[61].mxu0 }
 0x8fe   :  { %v6649_v6 = vadd.f32 %v6648_v5, %v6647_v3  ;;  %v6671_v7 = vadd.f32 %v6670_v32, %v6669_v4  ;;  %v6650_v8 = vpop.f32.mrb[58].mxu1  ;;  %v6672_v9 = vpop.f32.mrb[62].mxu0 }
 0x8ff   :  { %v6651_v57 = vpop.f32.mrb[59].mxu1  ;;  %v6673_v33 = vpop.f32.mrb[63].mxu0 }
 0x900   :  { %v5462_v10 = vadd.f32 %v6649_v6, %v5422_v2 }
 0x902   :  { %v5502_v11 = vadd.f32 %v6671_v7, %v5462_v10 }
 0x91c   :  { %v6691_v12 = vpop.f32.mrb[60].mxu1  ;;  %v6713_v13 = vpop.f32.mrb[64].mxu0 }
 0x91d   :  { %v6692_v14 = vpop.f32.mrb[61].mxu1  ;;  %v6714_v38 = vpop.f32.mrb[65].mxu0 }
 0x91e   :  { %v6693_v15 = vadd.f32 %v6692_v14, %v6691_v12  ;;  %v6715_v17 = vadd.f32 %v6714_v38, %v6713_v13  ;;  %v6694_v21 = vpop.f32.mrb[62].mxu1  ;;  %v6716_v24 = vpop.f32.mrb[66].mxu0 }
 0x91f   :  { %v6695_v25 = vpop.f32.mrb[63].mxu1  ;;  %v6717_v28 = vpop.f32.mrb[67].mxu0 }
 0x920   :  { %v5542_v36 = vadd.f32 %v6693_v15, %v5502_v11 }
 0x922   :  { %v5582_v29 = vadd.f32 %v6715_v17, %v5542_v36 }
 0x93c   :  { %v6735_v37 = vpop.f32.mrb[64].mxu1  ;;  %v6757_v39 = vpop.f32.mrb[68].mxu0 }
 0x93d   :  { %v6736_v40 = vpop.f32.mrb[65].mxu1  ;;  %v6758_v41 = vpop.f32.mrb[69].mxu0 }
 0x93e   :  { %v6737_v18 = vadd.f32 %v6736_v40, %v6735_v37  ;;  %v6759_v42 = vadd.f32 %v6758_v41, %v6757_v39  ;;  %v6738_v30 = vpop.f32.mrb[66].mxu1  ;;  %v6760_v19 = vpop.f32.mrb[70].mxu0 }
 0x93f   :  { %v6739_v43 = vpop.f32.mrb[67].mxu1  ;;  %v6761_v44 = vpop.f32.mrb[71].mxu0 }
 0x940   :  { %v5622_v31 = vadd.f32 %v6737_v18, %v5582_v29 }
 0x942   :  { %v5662_v45 = vadd.f32 %v6759_v42, %v5622_v31 }
 0x944   :  { %v5667_v22 = vadd.f32 %v5662_v45, %v7678_v20  ;;  %v7136_v20 = vld [vmem:[#allocation13 + $0x30] sm:$0xff]  }
 0x945   :  { %6833 = vmatpush3.bf16.msra.mxu1 %v7136_v20 }
 0x946   :  { %5672 = vadd.xlane.f32.xlu0 %v5667_v22  ;;  %v5675_v23 = vmul.f32 %v5667_v22, %v5667_v22  ;;  %6834 = vmatprep.subr.bf16.mxu1 %v7344_v0  ;;  %v6380_v0 = vld [vmem:[%s7781_s12 + $0x1] ss:$0 sm:$0xff] }
 0x948   :  { %5676 = vadd.xlane.f32.xlu1 %v5675_v23 }
 0x949   :  { %6835 = vmatpush3.bf16.msra.mxu1 %v7137_v35 }
 0x9d3   :  { %v5673_v26 = vpop.xlane.xlu0 %5672 }
 0x9d4   :  { %v5674_v49 = vmul.f32 0.03125, %v5673_v26 }
 0x9d5   :  { %v5677_v50 = vpop.xlane.xlu1 %5676 }
 0x9d6   :  { %v5679_v51 = vmul.f32 %v5674_v49, %v5674_v49  ;;  %v5678_v52 = vmul.f32 0.03125, %v5677_v50  ;;  %v5682_v56 = vsub.f32 %v5667_v22, %v5674_v49 }
 0x9d8   :  { %v5680_v53 = vsub.f32 %v5678_v52, %v5679_v51 }
 0x9da   :  { %v5681_v54 = vmax.f32 %v5680_v53, 0.0 }
 0x9dc   :  { %v5683_v55 = vadd.f32 1e-05, %v5681_v54 }
 0x9de   :  { %7144 = vrsqrt.f32 %v5683_v55 }
 0x9e8   :  { %v7145_v58 = vpop.eup %7144 }
 0x9e9   :  { %v5685_v27 = vmul.f32 %v7145_v58, %v5682_v56 }
 0x9eb   :  { %v5692_v60 = vmul.f32 %v6379_v59, %v5685_v27 }
 0x9ed   :  { %v5699_v61 = vadd.f32 %v6380_v0, %v5692_v60 }
 0x9ef   :  { %v5700_v62 = vpack.c.bf16 %v5699_v61, %v5699_v61 }
 0x9f1   :  { %6837 = vmatmul.mubr.bf16.vlgmr.msra.gmra.mrb[68].mxu1 %v5700_v62 }
 0xac4   :  { %v5806_v1 = vpop.f32.mrb[68].mxu1 }
 0xac5   :  { %v5807_v2 = vadd.f32 %v6381_v63, %v5806_v1  ;;  %v6838_v3 = vpop.f32.mrb[69].mxu1 }
 0xac6   :  { %v5809_v4 = vpop.f32.mrb[70].mxu1 }
 0xac7   :  { %5812 = vst [vmem:[#allocation14] sm:$0xff] %v5807_v2  ;;  %v6839_v5 = vpop.f32.mrb[71].mxu1 }
 0xac8   :  { %7311 = shalt.err (!%p7308_p4)
}
 0xac9   :  { %s7312_s14 = scalar_lea.hbm %s7784_s15, 128 }
 0xaca   :  { %p7313_p5 = scmp.ne.s32.totalorder %s7784_s15, %s7312_s14  ;;  %p7316_p6 = scmp.lt.u32.totalorder %s7312_s14, %s7784_s15 }
 0xacc   :  { %p7318_p7 = pnand %p7316_p6, %p7313_p5 }
 0xace   :  { %7321 = shalt.err (!%p7318_p7)
}
 0xacf   :  { %5822 = dma.vmem_to_hbm [thread:$0]  %s5820_s2, 128, %s7784_s15, [#allocation4]  }
 0xad0   :  { %7330 = dma.done.wait [#allocation4], 128  }
 0xad1   :  { %7331 = vsyncadd [#allocation4], 4294967168 }
 0xad2   :  { %5826 = vsyncpa [#allocation3], 1 }
 0xad3   :  { %5827 = vsyncpa [#allocation6], 1 }
 0xad4   :  { %5828 = vsyncpa [#allocation9], 1 }
 0xad5   :  { %5829 = vsyncpa [#allocation12], 1 }
 0xad6   :  { %5830 = vsyncpa [#allocation4], 1 }

</bundles_post_ra>
